<compile_context>
chip_gen: v7x
topology: tpu7x:2x2x1
jax: 0.10.0
libtpu: 0.0.40
codegen_flags: <defaults>
</compile_context>

<pallas_src>
import jax
import jax.numpy as jnp
from jax.experimental import pallas as pl
from jax.experimental.pallas import tpu as pltpu

# ----------------------------- configuration -----------------------------
B   = 2      # batch
N   = 8      # residues (sequence length)
DIM = 32     # single-repr channels
H   = 4      # heads
DKS = 8      # scalar key/query dim
DVS = 8      # scalar value dim
DKP = 4      # point key/query dim
DVP = 4      # point value dim
PD  = 16     # pairwise-repr channels

NUM_LOGITS     = 3
SCALAR_SCALE   = (NUM_LOGITS * DKS) ** -0.5
POINT_SCALE    = (NUM_LOGITS * DKP * (9.0 / 2.0)) ** -0.5
PAIRWISE_SCALE = NUM_LOGITS ** -0.5
EPS    = 1e-8    # point-norm eps
LN_EPS = 1e-5    # LayerNorm eps (torch default)
DCAT   = H * (DVS + PD + DVP * 4)   # 160 = to_out input dim

OS_PT  = H * DVS                 # 32  points section offset in cat
OS_NRM = H * (DVS + 3 * DVP)     # 80  point-norm section offset
OS_PW  = H * (DVS + 4 * DVP)     # 96  pairwise section offset


# ------------------------- fused IPA block kernel -------------------------
def ipa_block_kernel(x_ref, prow_ref, rot_ref, trans_ref,
                     wqs_ref, wks_ref, wvs_ref, wqp_ref, wkp_ref, wvp_ref,
                     wpbd_ref, wout_ref, bout_ref, g1_ref, be1_ref,
                     w1_ref, b1_ref, w2_ref, b2_ref, w3_ref, b3_ref,
                     g2_ref, be2_ref, pwc_ref, bpbs_ref,
                     o_ref, cat_ref):
    f32 = jnp.float32
    x     = x_ref[0]        # (N, DIM)
    prow  = prow_ref[0]     # (N, N*PD)   pair[i, j*PD + d]
    rot   = rot_ref[0]      # (N, 9)      rot[n, c*3 + r]
    trans = trans_ref[0]    # (N, 3)

    def mm(a, b):
        return jnp.dot(a, b, preferred_element_type=f32)

    dn = (((1,), (1,)), ((), ()))      # contract last dims of both operands

    # Hoisted width-1 column views (reused across heads / coords; JAX does not
    # CSE slice + broadcast, so materialize them exactly once).
    rot_col   = [rot[:, k:k + 1] for k in range(9)]        # (N, 1) each
    trans_col = [trans[:, c:c + 1] for c in range(3)]      # (N, 1) each
    prow_blk  = [prow[:, j * PD:(j + 1) * PD] for j in range(N)]   # (N, PD)

    # ---- fused projections, all heads at once (lane-dense) ----
    qs_all = mm(x, wqs_ref[...])       # (N, H*DKS)
    ks_all = mm(x, wks_ref[...])       # (N, H*DKS)
    vs_all = mm(x, wvs_ref[...])       # (N, H*DVS)
    qp_all = mm(x, wqp_ref[...])       # (N, 3*H*DKP)  coordinate-major
    kp_all = mm(x, wkp_ref[...])       # (N, 3*H*DKP)
    vp_all = mm(x, wvp_ref[...])       # (N, 3*H*DVP)

    # pairwise attention bias for all heads via block-diag weight: (N, H*N)
    pbias_all = mm(prow, wpbd_ref[...])

    HKP = H * DKP
    HVP = H * DVP

    def to_global(p_all, hd):
        # local -> global frame for all heads at once; returns 3 coord comps
        comps = []
        for r in range(3):
            acc = trans_col[r]
            for c in range(3):
                acc = acc + p_all[:, c * hd:(c + 1) * hd] * rot_col[c * 3 + r]
            comps.append(acc)
        return comps

    qpg = to_global(qp_all, HKP)       # 3 x (N, H*DKP)
    kpg = to_global(kp_all, HKP)
    vpg = to_global(vp_all, HVP)       # 3 x (N, H*DVP)

    ones_row = jnp.ones((1, DKP), f32)

    for h in range(H):
        qs = qs_all[:, h * DKS:(h + 1) * DKS]
        ks = ks_all[:, h * DKS:(h + 1) * DKS]
        vs = vs_all[:, h * DVS:(h + 1) * DVS]

        # scalar logits
        logits = jax.lax.dot_general(qs, ks, dn,
                                     preferred_element_type=f32) * SCALAR_SCALE

        # point logits:  sum_{c,d} (q - k)^2 = |q|^2 + |k|^2 - 2 q.k
        sumsq = jnp.zeros((N, N), f32)
        for c in range(3):
            qc = qpg[c][:, h * DKP:(h + 1) * DKP]
            kc = kpg[c][:, h * DKP:(h + 1) * DKP]
            qk  = jax.lax.dot_general(qc, kc, dn, preferred_element_type=f32)
            qsq = jnp.sum(qc * qc, axis=-1, keepdims=True)              # (N, 1)
            ksq = jax.lax.dot_general(ones_row, kc * kc, dn,
                                      preferred_element_type=f32)       # (1, N)
            sumsq = sumsq + qsq + ksq - 2.0 * qk

        pwc  = pwc_ref[0, h]    # -0.5 * POINT_SCALE * softplus(point_weight[h])
        bpbs = bpbs_ref[0, h]   # PAIRWISE_SCALE * pairwise-bias[h]

        logits = logits + pwc * sumsq + pbias_all[:, h * N:(h + 1) * N] + bpbs

        # softmax over j (divide on the EUP)
        mx = jnp.max(logits, axis=-1, keepdims=True)
        e = jnp.exp(logits - mx)
        attn = e * pl.reciprocal(jnp.sum(e, axis=-1, keepdims=True), approx=True)

        # scalar values
        cat_ref[:, h * DVS:(h + 1) * DVS] = mm(attn, vs)

        # point values -> inverse frame + norm
        rp = [mm(attn, vpg[c][:, h * DVP:(h + 1) * DVP]) for c in range(3)]
        nsq = jnp.full((N, DVP), EPS, f32)
        pbase = OS_PT + h * (3 * DVP)
        for r in range(3):
            acc = jnp.zeros((N, DVP), f32)
            for c in range(3):
                acc = acc + (rp[c] - trans_col[c]) * rot_col[r * 3 + c]
            cat_ref[:, pbase + r * DVP:pbase + (r + 1) * DVP] = acc
            nsq = nsq + acc * acc
        cat_ref[:, OS_NRM + h * DVP:OS_NRM + (h + 1) * DVP] = jnp.sqrt(nsq)

        # pairwise values: out[i,:] = sum_j attn[i,j] * pair[i,j,:]  (pure VPU)
        rpw = attn[:, 0:1] * prow_blk[0]
        for j in range(1, N):
            rpw = rpw + attn[:, j:j + 1] * prow_blk[j]
        cat_ref[:, OS_PW + h * PD:OS_PW + (h + 1) * PD] = rpw

    # ---- to_out + residual + LayerNorm + FeedForward + residual + LayerNorm ----
    def layer_norm(v, g, bta):
        mu = jnp.mean(v, axis=-1, keepdims=True)
        var = jnp.mean((v - mu) ** 2, axis=-1, keepdims=True)
        return (v - mu) * jax.lax.rsqrt(var + LN_EPS) * g + bta

    cat = cat_ref[...]                                   # (N, DCAT)
    attn_out = mm(cat, wout_ref[...]) + bout_ref[...]
    x1 = layer_norm(attn_out + x, g1_ref[...], be1_ref[...])
    h1 = jnp.maximum(mm(x1, w1_ref[...]) + b1_ref[...], 0.0)
    h2 = jnp.maximum(mm(h1, w2_ref[...]) + b2_ref[...], 0.0)
    ff = mm(h2, w3_ref[...]) + b3_ref[...]
    o_ref[0] = layer_norm(ff + x1, g2_ref[...], be2_ref[...])


# ----------------------------- Pallas wrapper -----------------------------
def ipa_block_pallas(x, pair, rot, trans, P):
    b, n, _ = x.shape
    assert n == N and x.shape[2] == DIM

    # ---- weight-space prep (tiny, activation-independent) ----
    def point_w(Wp, d):
        # projection columns (h, d, c) -> (c, h, d): coordinate-major, all heads
        return Wp.reshape(DIM, H, d, 3).transpose(0, 3, 1, 2).reshape(DIM, 3 * H * d)

    Wqp_k = point_w(P['Wqp'], DKP)
    Wkp_k = point_w(P['Wkp'], DKP)
    Wvp_k = point_w(P['Wvp'], DVP)

    # Wout rows of the points section reordered (h, d, r) -> (h, r, d) to match
    # the kernel's cat layout
    s0, s1 = H * DVS, H * DVS + H * DVP * 3
    sec = P['Wout'][s0:s1].reshape(H, DVP, 3, DIM).transpose(0, 2, 1, 3)
    Wout_k = jnp.concatenate(
        [P['Wout'][:s0], sec.reshape(H * DVP * 3, DIM), P['Wout'][s1:]], axis=0)

    # block-diagonal pairwise-bias weight: (N*PD, H*N),
    #   wpb_diag[j*PD + d, h*N + j] = PAIRWISE_SCALE * Wpb[d, h]
    wpb_diag = jnp.einsum('dh,jk->jdhk', P['Wpb'] * PAIRWISE_SCALE,
                          jnp.eye(n, dtype=jnp.float32)).reshape(n * PD, H * n)

    pwc  = ((-0.5 * POINT_SCALE) * jax.nn.softplus(P['point_weights'])).reshape(1, H)
    bpbs = (PAIRWISE_SCALE * P['bpb']).reshape(1, H)

    pair_rowflat = pair.reshape(b, n, n * PD)   # pair[b, i, j*PD + d]
    rot_flat = rot.reshape(b, n, 9)             # rot[b, n, c*3 + r]

    row = lambda v: v.reshape(1, -1)
    bmap3 = lambda i: (i, 0, 0)
    wmap = lambda i: (0, 0)
    smem_spec = pl.BlockSpec(memory_space=pltpu.MemorySpace.SMEM)

    out = pl.pallas_call(
        ipa_block_kernel,
        grid=(b,),
        in_specs=[
            pl.BlockSpec((1, n, DIM), bmap3),          # x
            pl.BlockSpec((1, n, n * PD), bmap3),       # pair (row-flattened)
            pl.BlockSpec((1, n, 9), bmap3),            # rotations
            pl.BlockSpec((1, n, 3), bmap3),            # translations
            pl.BlockSpec((DIM, H * DKS), wmap),        # Wqs
            pl.BlockSpec((DIM, H * DKS), wmap),        # Wks
            pl.BlockSpec((DIM, H * DVS), wmap),        # Wvs
            pl.BlockSpec((DIM, 3 * H * DKP), wmap),    # Wqp (coord-major)
            pl.BlockSpec((DIM, 3 * H * DKP), wmap),    # Wkp
            pl.BlockSpec((DIM, 3 * H * DVP), wmap),    # Wvp
            pl.BlockSpec((n * PD, H * n), wmap),       # Wpb block-diag
            pl.BlockSpec((DCAT, DIM), wmap),           # Wout (rows permuted)
            pl.BlockSpec((1, DIM), wmap),              # bout
            pl.BlockSpec((1, DIM), wmap),              # g1
            pl.BlockSpec((1, DIM), wmap),              # be1
            pl.BlockSpec((DIM, DIM), wmap),            # W1
            pl.BlockSpec((1, DIM), wmap),              # b1
            pl.BlockSpec((DIM, DIM), wmap),            # W2
            pl.BlockSpec((1, DIM), wmap),              # b2
            pl.BlockSpec((DIM, DIM), wmap),            # W3
            pl.BlockSpec((1, DIM), wmap),              # b3
            pl.BlockSpec((1, DIM), wmap),              # g2
            pl.BlockSpec((1, DIM), wmap),              # be2
            smem_spec,                                 # pwc  (per-head scalar)
            smem_spec,                                 # bpbs (per-head scalar)
        ],
        out_specs=pl.BlockSpec((1, n, DIM), bmap3),
        out_shape=jax.ShapeDtypeStruct((b, n, DIM), jnp.float32),
        scratch_shapes=[pltpu.VMEM((n, DCAT), jnp.float32)],
        compiler_params=pltpu.CompilerParams(dimension_semantics=("parallel",)),
    )(x, pair_rowflat, rot_flat, trans,
      P['Wqs'], P['Wks'], P['Wvs'], Wqp_k, Wkp_k, Wvp_k,
      wpb_diag, Wout_k, row(P['bout']), row(P['g1']), row(P['be1']),
      P['W1'], row(P['b1']), P['W2'], row(P['b2']), P['W3'], row(P['b3']),
      row(P['g2']), row(P['be2']), pwc, bpbs)
    return out


# ----------------------------- pure-JAX reference -----------------------------
HI = jax.lax.Precision.HIGHEST   # full-f32 reference (torch spec disables tf32)


def _ln(v, g, bta):
    mu = jnp.mean(v, axis=-1, keepdims=True)
    var = jnp.mean((v - mu) ** 2, axis=-1, keepdims=True)
    return (v - mu) / jnp.sqrt(var + LN_EPS) * g + bta


def ipa_block_ref(x, pair, rot, trans, P):
    b, n, _ = x.shape
    mmh = lambda a, w: jnp.dot(a, w, precision=HI)
    ein = lambda eq, *ops: jnp.einsum(eq, *ops, precision=HI)

    qs, ks, vs = mmh(x, P['Wqs']), mmh(x, P['Wks']), mmh(x, P['Wvs'])
    qp, kp, vp = mmh(x, P['Wqp']), mmh(x, P['Wkp']), mmh(x, P['Wvp'])

    sc = lambda t, d: t.reshape(b, n, H, d).transpose(0, 2, 1, 3).reshape(b * H, n, d)
    pt = lambda t, d: t.reshape(b, n, H, d, 3).transpose(0, 2, 1, 3, 4).reshape(b * H, n, d, 3)
    qs, ks, vs = sc(qs, DKS), sc(ks, DKS), sc(vs, DVS)
    qp, kp, vp = pt(qp, DKP), pt(kp, DKP), pt(vp, DVP)

    rot_r = jnp.repeat(rot[:, None], H, axis=1).reshape(b * H, n, 3, 3)
    tr_r = jnp.repeat(trans[:, None], H, axis=1).reshape(b * H, n, 3)[:, :, None, :]

    qp = ein('bndc,bncr->bndr', qp, rot_r) + tr_r
    kp = ein('bndc,bncr->bndr', kp, rot_r) + tr_r
    vp = ein('bndc,bncr->bndr', vp, rot_r) + tr_r

    logits = ein('bid,bjd->bij', qs, ks) * SCALAR_SCALE
    pbias = ein('bijd,dh->bijh', pair, P['Wpb']) + P['bpb']
    pbias = jnp.transpose(pbias, (0, 3, 1, 2)).reshape(b * H, n, n) * PAIRWISE_SCALE

    diff = qp[:, :, None] - kp[:, None]            # (bh, i, j, d, 3)
    pdist = (diff ** 2).sum(-2)                    # (bh, i, j, 3)
    pw = jax.nn.softplus(P['point_weights'])
    pw = jnp.tile(pw, b).reshape(b * H, 1, 1, 1)
    logits = logits + (-0.5) * (pdist * pw * POINT_SCALE).sum(-1) + pbias

    attn = jax.nn.softmax(logits, axis=-1)
    rs = ein('bij,bjd->bid', attn, vs)
    attn_h = attn.reshape(b, H, n, n)
    rpw = ein('bhij,bijd->bhid', attn_h, pair)
    rp = ein('bij,bjdc->bidc', attn, vp)
    rp = ein('bndc,bnrc->bndr', rp - tr_r, rot_r)
    rpn = jnp.sqrt((rp ** 2).sum(-1) + EPS)

    rs = rs.reshape(b, H, n, DVS).transpose(0, 2, 1, 3).reshape(b, n, H * DVS)
    rp = rp.reshape(b, H, n, DVP, 3).transpose(0, 2, 1, 3, 4).reshape(b, n, H * DVP * 3)
    rpn = rpn.reshape(b, H, n, DVP).transpose(0, 2, 1, 3).reshape(b, n, H * DVP)
    rpw = rpw.transpose(0, 2, 1, 3).reshape(b, n, H * PD)
    cat = jnp.concatenate([rs, rp, rpn, rpw], axis=-1)

    attn_out = mmh(cat, P['Wout']) + P['bout']
    x1 = _ln(attn_out + x, P['g1'], P['be1'])
    h1 = jax.nn.relu(mmh(x1, P['W1']) + P['b1'])
    h2 = jax.nn.relu(mmh(h1, P['W2']) + P['b2'])
    ff = mmh(h2, P['W3']) + P['b3']
    return _ln(ff + x1, P['g2'], P['be2'])


# ----------------------------- parameter init -----------------------------
def init_params(key):
    keys = jax.random.split(key, 16)
    lin = lambda k, fi, fo: (jax.random.normal(k, (fi, fo), jnp.float32)
                             / jnp.sqrt(fi)).astype(jnp.float32)
    P = {}
    P['Wqs'] = lin(keys[0], DIM, H * DKS)
    P['Wks'] = lin(keys[1], DIM, H * DKS)
    P['Wvs'] = lin(keys[2], DIM, H * DVS)
    P['Wqp'] = lin(keys[3], DIM, H * DKP * 3)
    P['Wkp'] = lin(keys[4], DIM, H * DKP * 3)
    P['Wvp'] = lin(keys[5], DIM, H * DVP * 3)
    P['Wpb'] = lin(keys[6], PD, H)
    P['bpb'] = jax.random.normal(keys[7], (H,), jnp.float32) * 0.1
    P['point_weights'] = jnp.log(jnp.exp(jnp.ones((H,), jnp.float32)) - 1.0)
    P['Wout'] = lin(keys[8], DCAT, DIM)
    P['bout'] = jax.random.normal(keys[9], (DIM,), jnp.float32) * 0.1
    P['g1'] = jnp.ones((DIM,), jnp.float32); P['be1'] = jnp.zeros((DIM,), jnp.float32)
    P['W1'] = lin(keys[10], DIM, DIM); P['b1'] = jax.random.normal(keys[11], (DIM,), jnp.float32) * 0.1
    P['W2'] = lin(keys[12], DIM, DIM); P['b2'] = jax.random.normal(keys[13], (DIM,), jnp.float32) * 0.1
    P['W3'] = lin(keys[14], DIM, DIM); P['b3'] = jax.random.normal(keys[15], (DIM,), jnp.float32) * 0.1
    P['g2'] = jnp.ones((DIM,), jnp.float32); P['be2'] = jnp.zeros((DIM,), jnp.float32)
    return P


if __name__ == "__main__":
    key = jax.random.PRNGKey(0)
    k1, k2, k3, k4, k5 = jax.random.split(key, 5)
    x = jax.random.normal(k1, (B, N, DIM), jnp.float32)
    pair = jax.random.normal(k2, (B, N, N, PD), jnp.float32)
    rot, _ = jnp.linalg.qr(jax.random.normal(k3, (B, N, 3, 3), jnp.float32))
    trans = jax.random.normal(k4, (B, N, 3), jnp.float32)
    P = init_params(k5)

    ipa_block = jax.jit(ipa_block_pallas)
    out = jax.block_until_ready(ipa_block(x, pair, rot, trans, P))

    ref = ipa_block_ref(x, pair, rot, trans, P)
    assert out.shape == (B, N, DIM)
    assert bool(jnp.all(jnp.isfinite(out)))
    # Kernel runs MXU dots at default precision (per perf guidance) and uses the
    # approximate EUP reciprocal in the softmax; the reference is full-f32
    # (HIGHEST), so allow bf16-pass-level tolerance.
    assert bool(jnp.allclose(out, ref, atol=5e-2, rtol=5e-2)), \
        float(jnp.max(jnp.abs(out - ref)))
    print("KERNEL_OK")
</pallas_src>

<mosaic_0001>
module attributes {stable_mosaic.version = 11 : i64} {
  func.func @ipa_block_kernel(%arg0: i32, %arg1: memref<1x8x32xf32, #tpu.memory_space<vmem>>, %arg2: memref<1x8x128xf32, #tpu.memory_space<vmem>>, %arg3: memref<1x8x9xf32, #tpu.memory_space<vmem>>, %arg4: memref<1x8x3xf32, #tpu.memory_space<vmem>>, %arg5: memref<32x32xf32, #tpu.memory_space<vmem>>, %arg6: memref<32x32xf32, #tpu.memory_space<vmem>>, %arg7: memref<32x32xf32, #tpu.memory_space<vmem>>, %arg8: memref<32x48xf32, #tpu.memory_space<vmem>>, %arg9: memref<32x48xf32, #tpu.memory_space<vmem>>, %arg10: memref<32x48xf32, #tpu.memory_space<vmem>>, %arg11: memref<128x32xf32, #tpu.memory_space<vmem>>, %arg12: memref<160x32xf32, #tpu.memory_space<vmem>>, %arg13: memref<1x32xf32, #tpu.memory_space<vmem>>, %arg14: memref<1x32xf32, #tpu.memory_space<vmem>>, %arg15: memref<1x32xf32, #tpu.memory_space<vmem>>, %arg16: memref<32x32xf32, #tpu.memory_space<vmem>>, %arg17: memref<1x32xf32, #tpu.memory_space<vmem>>, %arg18: memref<32x32xf32, #tpu.memory_space<vmem>>, %arg19: memref<1x32xf32, #tpu.memory_space<vmem>>, %arg20: memref<32x32xf32, #tpu.memory_space<vmem>>, %arg21: memref<1x32xf32, #tpu.memory_space<vmem>>, %arg22: memref<1x32xf32, #tpu.memory_space<vmem>>, %arg23: memref<1x32xf32, #tpu.memory_space<vmem>>, %arg24: memref<1x4xf32, #tpu.memory_space<smem>>, %arg25: memref<1x4xf32, #tpu.memory_space<smem>>, %arg26: memref<1x8x32xf32, #tpu.memory_space<vmem>>, %arg27: memref<8x160xf32, #tpu.memory_space<vmem>>) attributes {dimension_semantics = [#tpu.dimension_semantics<parallel>], iteration_bounds = array<i64: 2>, scalar_prefetch = 0 : i64, scratch_operands = 1 : i64, tpu.core_type = #tpu.core_type<tc>, window_params = [{transform_indices = @transform_0, window_bounds = array<i64: 1, 8, 32>}, {transform_indices = @transform_1, window_bounds = array<i64: 1, 8, 128>}, {transform_indices = @transform_2, window_bounds = array<i64: 1, 8, 9>}, {transform_indices = @transform_3, window_bounds = array<i64: 1, 8, 3>}, {pipeline_mode = #tpu.pipeline_mode<synchronous>, transform_indices = @transform_4, window_bounds = array<i64: 32, 32>}, {pipeline_mode = #tpu.pipeline_mode<synchronous>, transform_indices = @transform_5, window_bounds = array<i64: 32, 32>}, {pipeline_mode = #tpu.pipeline_mode<synchronous>, transform_indices = @transform_6, window_bounds = array<i64: 32, 32>}, {pipeline_mode = #tpu.pipeline_mode<synchronous>, transform_indices = @transform_7, window_bounds = array<i64: 32, 48>}, {pipeline_mode = #tpu.pipeline_mode<synchronous>, transform_indices = @transform_8, window_bounds = array<i64: 32, 48>}, {pipeline_mode = #tpu.pipeline_mode<synchronous>, transform_indices = @transform_9, window_bounds = array<i64: 32, 48>}, {pipeline_mode = #tpu.pipeline_mode<synchronous>, transform_indices = @transform_10, window_bounds = array<i64: 128, 32>}, {pipeline_mode = #tpu.pipeline_mode<synchronous>, transform_indices = @transform_11, window_bounds = array<i64: 160, 32>}, {pipeline_mode = #tpu.pipeline_mode<synchronous>, transform_indices = @transform_12, window_bounds = array<i64: 1, 32>}, {pipeline_mode = #tpu.pipeline_mode<synchronous>, transform_indices = @transform_13, window_bounds = array<i64: 1, 32>}, {pipeline_mode = #tpu.pipeline_mode<synchronous>, transform_indices = @transform_14, window_bounds = array<i64: 1, 32>}, {pipeline_mode = #tpu.pipeline_mode<synchronous>, transform_indices = @transform_15, window_bounds = array<i64: 32, 32>}, {pipeline_mode = #tpu.pipeline_mode<synchronous>, transform_indices = @transform_16, window_bounds = array<i64: 1, 32>}, {pipeline_mode = #tpu.pipeline_mode<synchronous>, transform_indices = @transform_17, window_bounds = array<i64: 32, 32>}, {pipeline_mode = #tpu.pipeline_mode<synchronous>, transform_indices = @transform_18, window_bounds = array<i64: 1, 32>}, {pipeline_mode = #tpu.pipeline_mode<synchronous>, transform_indices = @transform_19, window_bounds = array<i64: 32, 32>}, {pipeline_mode = #tpu.pipeline_mode<synchronous>, transform_indices = @transform_20, window_bounds = array<i64: 1, 32>}, {pipeline_mode = #tpu.pipeline_mode<synchronous>, transform_indices = @transform_21, window_bounds = array<i64: 1, 32>}, {pipeline_mode = #tpu.pipeline_mode<synchronous>, transform_indices = @transform_22, window_bounds = array<i64: 1, 32>}, {transform_indices = @transform_23, window_bounds = array<i64: 1, 4>}, {transform_indices = @transform_24, window_bounds = array<i64: 1, 4>}, {transform_indices = @transform_25, window_bounds = array<i64: 1, 8, 32>}]} {
    %c0 = arith.constant 0 : index
    %c0_0 = arith.constant 0 : index
    %c0_1 = arith.constant 0 : index
    %0 = vector.load %arg1[%c0, %c0_0, %c0_1] : memref<1x8x32xf32, #tpu.memory_space<vmem>>, vector<1x8x32xf32>
    %1 = vector.shape_cast %0 : vector<1x8x32xf32> to vector<8x32xf32>
    %c0_2 = arith.constant 0 : index
    %c0_3 = arith.constant 0 : index
    %c0_4 = arith.constant 0 : index
    %2 = vector.load %arg2[%c0_2, %c0_3, %c0_4] : memref<1x8x128xf32, #tpu.memory_space<vmem>>, vector<1x8x128xf32>
    %3 = vector.shape_cast %2 : vector<1x8x128xf32> to vector<8x128xf32>
    %c0_5 = arith.constant 0 : index
    %c0_6 = arith.constant 0 : index
    %c0_7 = arith.constant 0 : index
    %4 = vector.load %arg3[%c0_5, %c0_6, %c0_7] : memref<1x8x9xf32, #tpu.memory_space<vmem>>, vector<1x8x9xf32>
    %5 = vector.shape_cast %4 : vector<1x8x9xf32> to vector<8x9xf32>
    %c0_8 = arith.constant 0 : index
    %c0_9 = arith.constant 0 : index
    %c0_10 = arith.constant 0 : index
    %6 = vector.load %arg4[%c0_8, %c0_9, %c0_10] : memref<1x8x3xf32, #tpu.memory_space<vmem>>, vector<1x8x3xf32>
    %7 = vector.shape_cast %6 : vector<1x8x3xf32> to vector<8x3xf32>
    %8 = vector.extract_strided_slice %5 {offsets = [0, 0], sizes = [8, 1], strides = [1, 1]} : vector<8x9xf32> to vector<8x1xf32>
    %9 = vector.extract_strided_slice %5 {offsets = [0, 1], sizes = [8, 1], strides = [1, 1]} : vector<8x9xf32> to vector<8x1xf32>
    %10 = vector.extract_strided_slice %5 {offsets = [0, 2], sizes = [8, 1], strides = [1, 1]} : vector<8x9xf32> to vector<8x1xf32>
    %11 = vector.extract_strided_slice %5 {offsets = [0, 3], sizes = [8, 1], strides = [1, 1]} : vector<8x9xf32> to vector<8x1xf32>
    %12 = vector.extract_strided_slice %5 {offsets = [0, 4], sizes = [8, 1], strides = [1, 1]} : vector<8x9xf32> to vector<8x1xf32>
    %13 = vector.extract_strided_slice %5 {offsets = [0, 5], sizes = [8, 1], strides = [1, 1]} : vector<8x9xf32> to vector<8x1xf32>
    %14 = vector.extract_strided_slice %5 {offsets = [0, 6], sizes = [8, 1], strides = [1, 1]} : vector<8x9xf32> to vector<8x1xf32>
    %15 = vector.extract_strided_slice %5 {offsets = [0, 7], sizes = [8, 1], strides = [1, 1]} : vector<8x9xf32> to vector<8x1xf32>
    %16 = vector.extract_strided_slice %5 {offsets = [0, 8], sizes = [8, 1], strides = [1, 1]} : vector<8x9xf32> to vector<8x1xf32>
    %17 = vector.extract_strided_slice %7 {offsets = [0, 0], sizes = [8, 1], strides = [1, 1]} : vector<8x3xf32> to vector<8x1xf32>
    %18 = vector.extract_strided_slice %7 {offsets = [0, 1], sizes = [8, 1], strides = [1, 1]} : vector<8x3xf32> to vector<8x1xf32>
    %19 = vector.extract_strided_slice %7 {offsets = [0, 2], sizes = [8, 1], strides = [1, 1]} : vector<8x3xf32> to vector<8x1xf32>
    %20 = vector.extract_strided_slice %3 {offsets = [0, 0], sizes = [8, 16], strides = [1, 1]} : vector<8x128xf32> to vector<8x16xf32>
    %21 = vector.extract_strided_slice %3 {offsets = [0, 16], sizes = [8, 16], strides = [1, 1]} : vector<8x128xf32> to vector<8x16xf32>
    %22 = vector.extract_strided_slice %3 {offsets = [0, 32], sizes = [8, 16], strides = [1, 1]} : vector<8x128xf32> to vector<8x16xf32>
    %23 = vector.extract_strided_slice %3 {offsets = [0, 48], sizes = [8, 16], strides = [1, 1]} : vector<8x128xf32> to vector<8x16xf32>
    %24 = vector.extract_strided_slice %3 {offsets = [0, 64], sizes = [8, 16], strides = [1, 1]} : vector<8x128xf32> to vector<8x16xf32>
    %25 = vector.extract_strided_slice %3 {offsets = [0, 80], sizes = [8, 16], strides = [1, 1]} : vector<8x128xf32> to vector<8x16xf32>
    %26 = vector.extract_strided_slice %3 {offsets = [0, 96], sizes = [8, 16], strides = [1, 1]} : vector<8x128xf32> to vector<8x16xf32>
    %27 = vector.extract_strided_slice %3 {offsets = [0, 112], sizes = [8, 16], strides = [1, 1]} : vector<8x128xf32> to vector<8x16xf32>
    %c0_11 = arith.constant 0 : index
    %c0_12 = arith.constant 0 : index
    %28 = vector.load %arg5[%c0_11, %c0_12] : memref<32x32xf32, #tpu.memory_space<vmem>>, vector<32x32xf32>
    %cst = arith.constant dense<0.000000e+00> : vector<8x32xf32>
    %29 = tpu.matmul %1, %28, %cst {dimension_numbers = #tpu.dot_dimension_numbers<[1], [0], [0], [1], [0, 0, 1, 1], [], []>} : vector<8x32xf32>, vector<32x32xf32>, vector<8x32xf32> -> vector<8x32xf32>
    %c0_13 = arith.constant 0 : index
    %c0_14 = arith.constant 0 : index
    %30 = vector.load %arg6[%c0_13, %c0_14] : memref<32x32xf32, #tpu.memory_space<vmem>>, vector<32x32xf32>
    %cst_15 = arith.constant dense<0.000000e+00> : vector<8x32xf32>
    %31 = tpu.matmul %1, %30, %cst_15 {dimension_numbers = #tpu.dot_dimension_numbers<[1], [0], [0], [1], [0, 0, 1, 1], [], []>} : vector<8x32xf32>, vector<32x32xf32>, vector<8x32xf32> -> vector<8x32xf32>
    %c0_16 = arith.constant 0 : index
    %c0_17 = arith.constant 0 : index
    %32 = vector.load %arg7[%c0_16, %c0_17] : memref<32x32xf32, #tpu.memory_space<vmem>>, vector<32x32xf32>
    %cst_18 = arith.constant dense<0.000000e+00> : vector<8x32xf32>
    %33 = tpu.matmul %1, %32, %cst_18 {dimension_numbers = #tpu.dot_dimension_numbers<[1], [0], [0], [1], [0, 0, 1, 1], [], []>} : vector<8x32xf32>, vector<32x32xf32>, vector<8x32xf32> -> vector<8x32xf32>
    %c0_19 = arith.constant 0 : index
    %c0_20 = arith.constant 0 : index
    %34 = vector.load %arg8[%c0_19, %c0_20] : memref<32x48xf32, #tpu.memory_space<vmem>>, vector<32x48xf32>
    %cst_21 = arith.constant dense<0.000000e+00> : vector<8x48xf32>
    %35 = tpu.matmul %1, %34, %cst_21 {dimension_numbers = #tpu.dot_dimension_numbers<[1], [0], [0], [1], [0, 0, 1, 1], [], []>} : vector<8x32xf32>, vector<32x48xf32>, vector<8x48xf32> -> vector<8x48xf32>
    %c0_22 = arith.constant 0 : index
    %c0_23 = arith.constant 0 : index
    %36 = vector.load %arg9[%c0_22, %c0_23] : memref<32x48xf32, #tpu.memory_space<vmem>>, vector<32x48xf32>
    %cst_24 = arith.constant dense<0.000000e+00> : vector<8x48xf32>
    %37 = tpu.matmul %1, %36, %cst_24 {dimension_numbers = #tpu.dot_dimension_numbers<[1], [0], [0], [1], [0, 0, 1, 1], [], []>} : vector<8x32xf32>, vector<32x48xf32>, vector<8x48xf32> -> vector<8x48xf32>
    %c0_25 = arith.constant 0 : index
    %c0_26 = arith.constant 0 : index
    %38 = vector.load %arg10[%c0_25, %c0_26] : memref<32x48xf32, #tpu.memory_space<vmem>>, vector<32x48xf32>
    %cst_27 = arith.constant dense<0.000000e+00> : vector<8x48xf32>
    %39 = tpu.matmul %1, %38, %cst_27 {dimension_numbers = #tpu.dot_dimension_numbers<[1], [0], [0], [1], [0, 0, 1, 1], [], []>} : vector<8x32xf32>, vector<32x48xf32>, vector<8x48xf32> -> vector<8x48xf32>
    %c0_28 = arith.constant 0 : index
    %c0_29 = arith.constant 0 : index
    %40 = vector.load %arg11[%c0_28, %c0_29] : memref<128x32xf32, #tpu.memory_space<vmem>>, vector<128x32xf32>
    %cst_30 = arith.constant dense<0.000000e+00> : vector<8x32xf32>
    %41 = tpu.matmul %3, %40, %cst_30 {dimension_numbers = #tpu.dot_dimension_numbers<[1], [0], [0], [1], [0, 0, 1, 1], [], []>} : vector<8x128xf32>, vector<128x32xf32>, vector<8x32xf32> -> vector<8x32xf32>
    %42 = vector.extract_strided_slice %35 {offsets = [0, 0], sizes = [8, 16], strides = [1, 1]} : vector<8x48xf32> to vector<8x16xf32>
    %43 = vector.broadcast %8 : vector<8x1xf32> to vector<8x16xf32>
    %44 = arith.mulf %42, %43 : vector<8x16xf32>
    %45 = vector.broadcast %17 : vector<8x1xf32> to vector<8x16xf32>
    %46 = arith.addf %45, %44 : vector<8x16xf32>
    %47 = vector.extract_strided_slice %35 {offsets = [0, 16], sizes = [8, 16], strides = [1, 1]} : vector<8x48xf32> to vector<8x16xf32>
    %48 = vector.broadcast %11 : vector<8x1xf32> to vector<8x16xf32>
    %49 = arith.mulf %47, %48 : vector<8x16xf32>
    %50 = arith.addf %46, %49 : vector<8x16xf32>
    %51 = vector.extract_strided_slice %35 {offsets = [0, 32], sizes = [8, 16], strides = [1, 1]} : vector<8x48xf32> to vector<8x16xf32>
    %52 = vector.broadcast %14 : vector<8x1xf32> to vector<8x16xf32>
    %53 = arith.mulf %51, %52 : vector<8x16xf32>
    %54 = arith.addf %50, %53 : vector<8x16xf32>
    %55 = vector.extract_strided_slice %35 {offsets = [0, 0], sizes = [8, 16], strides = [1, 1]} : vector<8x48xf32> to vector<8x16xf32>
    %56 = vector.broadcast %9 : vector<8x1xf32> to vector<8x16xf32>
    %57 = arith.mulf %55, %56 : vector<8x16xf32>
    %58 = vector.broadcast %18 : vector<8x1xf32> to vector<8x16xf32>
    %59 = arith.addf %58, %57 : vector<8x16xf32>
    %60 = vector.extract_strided_slice %35 {offsets = [0, 16], sizes = [8, 16], strides = [1, 1]} : vector<8x48xf32> to vector<8x16xf32>
    %61 = vector.broadcast %12 : vector<8x1xf32> to vector<8x16xf32>
    %62 = arith.mulf %60, %61 : vector<8x16xf32>
    %63 = arith.addf %59, %62 : vector<8x16xf32>
    %64 = vector.extract_strided_slice %35 {offsets = [0, 32], sizes = [8, 16], strides = [1, 1]} : vector<8x48xf32> to vector<8x16xf32>
    %65 = vector.broadcast %15 : vector<8x1xf32> to vector<8x16xf32>
    %66 = arith.mulf %64, %65 : vector<8x16xf32>
    %67 = arith.addf %63, %66 : vector<8x16xf32>
    %68 = vector.extract_strided_slice %35 {offsets = [0, 0], sizes = [8, 16], strides = [1, 1]} : vector<8x48xf32> to vector<8x16xf32>
    %69 = vector.broadcast %10 : vector<8x1xf32> to vector<8x16xf32>
    %70 = arith.mulf %68, %69 : vector<8x16xf32>
    %71 = vector.broadcast %19 : vector<8x1xf32> to vector<8x16xf32>
    %72 = arith.addf %71, %70 : vector<8x16xf32>
    %73 = vector.extract_strided_slice %35 {offsets = [0, 16], sizes = [8, 16], strides = [1, 1]} : vector<8x48xf32> to vector<8x16xf32>
    %74 = vector.broadcast %13 : vector<8x1xf32> to vector<8x16xf32>
    %75 = arith.mulf %73, %74 : vector<8x16xf32>
    %76 = arith.addf %72, %75 : vector<8x16xf32>
    %77 = vector.extract_strided_slice %35 {offsets = [0, 32], sizes = [8, 16], strides = [1, 1]} : vector<8x48xf32> to vector<8x16xf32>
    %78 = vector.broadcast %16 : vector<8x1xf32> to vector<8x16xf32>
    %79 = arith.mulf %77, %78 : vector<8x16xf32>
    %80 = arith.addf %76, %79 : vector<8x16xf32>
    %81 = vector.extract_strided_slice %37 {offsets = [0, 0], sizes = [8, 16], strides = [1, 1]} : vector<8x48xf32> to vector<8x16xf32>
    %82 = vector.broadcast %8 : vector<8x1xf32> to vector<8x16xf32>
    %83 = arith.mulf %81, %82 : vector<8x16xf32>
    %84 = vector.broadcast %17 : vector<8x1xf32> to vector<8x16xf32>
    %85 = arith.addf %84, %83 : vector<8x16xf32>
    %86 = vector.extract_strided_slice %37 {offsets = [0, 16], sizes = [8, 16], strides = [1, 1]} : vector<8x48xf32> to vector<8x16xf32>
    %87 = vector.broadcast %11 : vector<8x1xf32> to vector<8x16xf32>
    %88 = arith.mulf %86, %87 : vector<8x16xf32>
    %89 = arith.addf %85, %88 : vector<8x16xf32>
    %90 = vector.extract_strided_slice %37 {offsets = [0, 32], sizes = [8, 16], strides = [1, 1]} : vector<8x48xf32> to vector<8x16xf32>
    %91 = vector.broadcast %14 : vector<8x1xf32> to vector<8x16xf32>
    %92 = arith.mulf %90, %91 : vector<8x16xf32>
    %93 = arith.addf %89, %92 : vector<8x16xf32>
    %94 = vector.extract_strided_slice %37 {offsets = [0, 0], sizes = [8, 16], strides = [1, 1]} : vector<8x48xf32> to vector<8x16xf32>
    %95 = vector.broadcast %9 : vector<8x1xf32> to vector<8x16xf32>
    %96 = arith.mulf %94, %95 : vector<8x16xf32>
    %97 = vector.broadcast %18 : vector<8x1xf32> to vector<8x16xf32>
    %98 = arith.addf %97, %96 : vector<8x16xf32>
    %99 = vector.extract_strided_slice %37 {offsets = [0, 16], sizes = [8, 16], strides = [1, 1]} : vector<8x48xf32> to vector<8x16xf32>
    %100 = vector.broadcast %12 : vector<8x1xf32> to vector<8x16xf32>
    %101 = arith.mulf %99, %100 : vector<8x16xf32>
    %102 = arith.addf %98, %101 : vector<8x16xf32>
    %103 = vector.extract_strided_slice %37 {offsets = [0, 32], sizes = [8, 16], strides = [1, 1]} : vector<8x48xf32> to vector<8x16xf32>
    %104 = vector.broadcast %15 : vector<8x1xf32> to vector<8x16xf32>
    %105 = arith.mulf %103, %104 : vector<8x16xf32>
    %106 = arith.addf %102, %105 : vector<8x16xf32>
    %107 = vector.extract_strided_slice %37 {offsets = [0, 0], sizes = [8, 16], strides = [1, 1]} : vector<8x48xf32> to vector<8x16xf32>
    %108 = vector.broadcast %10 : vector<8x1xf32> to vector<8x16xf32>
    %109 = arith.mulf %107, %108 : vector<8x16xf32>
    %110 = vector.broadcast %19 : vector<8x1xf32> to vector<8x16xf32>
    %111 = arith.addf %110, %109 : vector<8x16xf32>
    %112 = vector.extract_strided_slice %37 {offsets = [0, 16], sizes = [8, 16], strides = [1, 1]} : vector<8x48xf32> to vector<8x16xf32>
    %113 = vector.broadcast %13 : vector<8x1xf32> to vector<8x16xf32>
    %114 = arith.mulf %112, %113 : vector<8x16xf32>
    %115 = arith.addf %111, %114 : vector<8x16xf32>
    %116 = vector.extract_strided_slice %37 {offsets = [0, 32], sizes = [8, 16], strides = [1, 1]} : vector<8x48xf32> to vector<8x16xf32>
    %117 = vector.broadcast %16 : vector<8x1xf32> to vector<8x16xf32>
    %118 = arith.mulf %116, %117 : vector<8x16xf32>
    %119 = arith.addf %115, %118 : vector<8x16xf32>
    %120 = vector.extract_strided_slice %39 {offsets = [0, 0], sizes = [8, 16], strides = [1, 1]} : vector<8x48xf32> to vector<8x16xf32>
    %121 = vector.broadcast %8 : vector<8x1xf32> to vector<8x16xf32>
    %122 = arith.mulf %120, %121 : vector<8x16xf32>
    %123 = vector.broadcast %17 : vector<8x1xf32> to vector<8x16xf32>
    %124 = arith.addf %123, %122 : vector<8x16xf32>
    %125 = vector.extract_strided_slice %39 {offsets = [0, 16], sizes = [8, 16], strides = [1, 1]} : vector<8x48xf32> to vector<8x16xf32>
    %126 = vector.broadcast %11 : vector<8x1xf32> to vector<8x16xf32>
    %127 = arith.mulf %125, %126 : vector<8x16xf32>
    %128 = arith.addf %124, %127 : vector<8x16xf32>
    %129 = vector.extract_strided_slice %39 {offsets = [0, 32], sizes = [8, 16], strides = [1, 1]} : vector<8x48xf32> to vector<8x16xf32>
    %130 = vector.broadcast %14 : vector<8x1xf32> to vector<8x16xf32>
    %131 = arith.mulf %129, %130 : vector<8x16xf32>
    %132 = arith.addf %128, %131 : vector<8x16xf32>
    %133 = vector.extract_strided_slice %39 {offsets = [0, 0], sizes = [8, 16], strides = [1, 1]} : vector<8x48xf32> to vector<8x16xf32>
    %134 = vector.broadcast %9 : vector<8x1xf32> to vector<8x16xf32>
    %135 = arith.mulf %133, %134 : vector<8x16xf32>
    %136 = vector.broadcast %18 : vector<8x1xf32> to vector<8x16xf32>
    %137 = arith.addf %136, %135 : vector<8x16xf32>
    %138 = vector.extract_strided_slice %39 {offsets = [0, 16], sizes = [8, 16], strides = [1, 1]} : vector<8x48xf32> to vector<8x16xf32>
    %139 = vector.broadcast %12 : vector<8x1xf32> to vector<8x16xf32>
    %140 = arith.mulf %138, %139 : vector<8x16xf32>
    %141 = arith.addf %137, %140 : vector<8x16xf32>
    %142 = vector.extract_strided_slice %39 {offsets = [0, 32], sizes = [8, 16], strides = [1, 1]} : vector<8x48xf32> to vector<8x16xf32>
    %143 = vector.broadcast %15 : vector<8x1xf32> to vector<8x16xf32>
    %144 = arith.mulf %142, %143 : vector<8x16xf32>
    %145 = arith.addf %141, %144 : vector<8x16xf32>
    %146 = vector.extract_strided_slice %39 {offsets = [0, 0], sizes = [8, 16], strides = [1, 1]} : vector<8x48xf32> to vector<8x16xf32>
    %147 = vector.broadcast %10 : vector<8x1xf32> to vector<8x16xf32>
    %148 = arith.mulf %146, %147 : vector<8x16xf32>
    %149 = vector.broadcast %19 : vector<8x1xf32> to vector<8x16xf32>
    %150 = arith.addf %149, %148 : vector<8x16xf32>
    %151 = vector.extract_strided_slice %39 {offsets = [0, 16], sizes = [8, 16], strides = [1, 1]} : vector<8x48xf32> to vector<8x16xf32>
    %152 = vector.broadcast %13 : vector<8x1xf32> to vector<8x16xf32>
    %153 = arith.mulf %151, %152 : vector<8x16xf32>
    %154 = arith.addf %150, %153 : vector<8x16xf32>
    %155 = vector.extract_strided_slice %39 {offsets = [0, 32], sizes = [8, 16], strides = [1, 1]} : vector<8x48xf32> to vector<8x16xf32>
    %156 = vector.broadcast %16 : vector<8x1xf32> to vector<8x16xf32>
    %157 = arith.mulf %155, %156 : vector<8x16xf32>
    %158 = arith.addf %154, %157 : vector<8x16xf32>
    %cst_31 = arith.constant 1.000000e+00 : f32
    %159 = vector.broadcast %cst_31 : f32 to vector<1x4xf32>
    %160 = vector.extract_strided_slice %29 {offsets = [0, 0], sizes = [8, 8], strides = [1, 1]} : vector<8x32xf32> to vector<8x8xf32>
    %161 = vector.extract_strided_slice %31 {offsets = [0, 0], sizes = [8, 8], strides = [1, 1]} : vector<8x32xf32> to vector<8x8xf32>
    %162 = vector.extract_strided_slice %33 {offsets = [0, 0], sizes = [8, 8], strides = [1, 1]} : vector<8x32xf32> to vector<8x8xf32>
    %cst_32 = arith.constant dense<0.000000e+00> : vector<8x8xf32>
    %163 = tpu.matmul %160, %161, %cst_32 {dimension_numbers = #tpu.dot_dimension_numbers<[1], [1], [0], [0], [0, 0, 1, 0], [], []>} : vector<8x8xf32>, vector<8x8xf32>, vector<8x8xf32> -> vector<8x8xf32>
    %cst_33 = arith.constant 0.204124153 : f32
    %164 = vector.broadcast %cst_33 : f32 to vector<8x8xf32>
    %165 = arith.mulf %163, %164 : vector<8x8xf32>
    %cst_34 = arith.constant 0.000000e+00 : f32
    %166 = vector.broadcast %cst_34 : f32 to vector<8x8xf32>
    %167 = vector.extract_strided_slice %54 {offsets = [0, 0], sizes = [8, 4], strides = [1, 1]} : vector<8x16xf32> to vector<8x4xf32>
    %168 = vector.extract_strided_slice %93 {offsets = [0, 0], sizes = [8, 4], strides = [1, 1]} : vector<8x16xf32> to vector<8x4xf32>
    %cst_35 = arith.constant dense<0.000000e+00> : vector<8x8xf32>
    %169 = tpu.matmul %167, %168, %cst_35 {dimension_numbers = #tpu.dot_dimension_numbers<[1], [1], [0], [0], [0, 0, 1, 0], [], []>} : vector<8x4xf32>, vector<8x4xf32>, vector<8x8xf32> -> vector<8x8xf32>
    %170 = arith.mulf %167, %167 : vector<8x4xf32>
    %cst_36 = arith.constant dense<0.000000e+00> : vector<8xf32>
    %171 = vector.multi_reduction <add>, %170, %cst_36 [1] : vector<8x4xf32> to vector<8xf32>
    %172 = vector.shape_cast %171 : vector<8xf32> to vector<8x1xf32>
    %173 = arith.mulf %168, %168 : vector<8x4xf32>
    %cst_37 = arith.constant dense<0.000000e+00> : vector<1x8xf32>
    %174 = tpu.matmul %159, %173, %cst_37 {dimension_numbers = #tpu.dot_dimension_numbers<[1], [1], [0], [0], [0, 0, 1, 0], [], []>} : vector<1x4xf32>, vector<8x4xf32>, vector<1x8xf32> -> vector<1x8xf32>
    %175 = vector.broadcast %172 : vector<8x1xf32> to vector<8x8xf32>
    %176 = arith.addf %166, %175 : vector<8x8xf32>
    %177 = vector.broadcast %174 : vector<1x8xf32> to vector<8x8xf32>
    %178 = arith.addf %176, %177 : vector<8x8xf32>
    %cst_38 = arith.constant 2.000000e+00 : f32
    %179 = vector.broadcast %cst_38 : f32 to vector<8x8xf32>
    %180 = arith.mulf %179, %169 : vector<8x8xf32>
    %181 = arith.subf %178, %180 : vector<8x8xf32>
    %182 = vector.extract_strided_slice %67 {offsets = [0, 0], sizes = [8, 4], strides = [1, 1]} : vector<8x16xf32> to vector<8x4xf32>
    %183 = vector.extract_strided_slice %106 {offsets = [0, 0], sizes = [8, 4], strides = [1, 1]} : vector<8x16xf32> to vector<8x4xf32>
    %cst_39 = arith.constant dense<0.000000e+00> : vector<8x8xf32>
    %184 = tpu.matmul %182, %183, %cst_39 {dimension_numbers = #tpu.dot_dimension_numbers<[1], [1], [0], [0], [0, 0, 1, 0], [], []>} : vector<8x4xf32>, vector<8x4xf32>, vector<8x8xf32> -> vector<8x8xf32>
    %185 = arith.mulf %182, %182 : vector<8x4xf32>
    %cst_40 = arith.constant dense<0.000000e+00> : vector<8xf32>
    %186 = vector.multi_reduction <add>, %185, %cst_40 [1] : vector<8x4xf32> to vector<8xf32>
    %187 = vector.shape_cast %186 : vector<8xf32> to vector<8x1xf32>
    %188 = arith.mulf %183, %183 : vector<8x4xf32>
    %cst_41 = arith.constant dense<0.000000e+00> : vector<1x8xf32>
    %189 = tpu.matmul %159, %188, %cst_41 {dimension_numbers = #tpu.dot_dimension_numbers<[1], [1], [0], [0], [0, 0, 1, 0], [], []>} : vector<1x4xf32>, vector<8x4xf32>, vector<1x8xf32> -> vector<1x8xf32>
    %190 = vector.broadcast %187 : vector<8x1xf32> to vector<8x8xf32>
    %191 = arith.addf %181, %190 : vector<8x8xf32>
    %192 = vector.broadcast %189 : vector<1x8xf32> to vector<8x8xf32>
    %193 = arith.addf %191, %192 : vector<8x8xf32>
    %cst_42 = arith.constant 2.000000e+00 : f32
    %194 = vector.broadcast %cst_42 : f32 to vector<8x8xf32>
    %195 = arith.mulf %194, %184 : vector<8x8xf32>
    %196 = arith.subf %193, %195 : vector<8x8xf32>
    %197 = vector.extract_strided_slice %80 {offsets = [0, 0], sizes = [8, 4], strides = [1, 1]} : vector<8x16xf32> to vector<8x4xf32>
    %198 = vector.extract_strided_slice %119 {offsets = [0, 0], sizes = [8, 4], strides = [1, 1]} : vector<8x16xf32> to vector<8x4xf32>
    %cst_43 = arith.constant dense<0.000000e+00> : vector<8x8xf32>
    %199 = tpu.matmul %197, %198, %cst_43 {dimension_numbers = #tpu.dot_dimension_numbers<[1], [1], [0], [0], [0, 0, 1, 0], [], []>} : vector<8x4xf32>, vector<8x4xf32>, vector<8x8xf32> -> vector<8x8xf32>
    %200 = arith.mulf %197, %197 : vector<8x4xf32>
    %cst_44 = arith.constant dense<0.000000e+00> : vector<8xf32>
    %201 = vector.multi_reduction <add>, %200, %cst_44 [1] : vector<8x4xf32> to vector<8xf32>
    %202 = vector.shape_cast %201 : vector<8xf32> to vector<8x1xf32>
    %203 = arith.mulf %198, %198 : vector<8x4xf32>
    %cst_45 = arith.constant dense<0.000000e+00> : vector<1x8xf32>
    %204 = tpu.matmul %159, %203, %cst_45 {dimension_numbers = #tpu.dot_dimension_numbers<[1], [1], [0], [0], [0, 0, 1, 0], [], []>} : vector<1x4xf32>, vector<8x4xf32>, vector<1x8xf32> -> vector<1x8xf32>
    %205 = vector.broadcast %202 : vector<8x1xf32> to vector<8x8xf32>
    %206 = arith.addf %196, %205 : vector<8x8xf32>
    %207 = vector.broadcast %204 : vector<1x8xf32> to vector<8x8xf32>
    %208 = arith.addf %206, %207 : vector<8x8xf32>
    %cst_46 = arith.constant 2.000000e+00 : f32
    %209 = vector.broadcast %cst_46 : f32 to vector<8x8xf32>
    %210 = arith.mulf %209, %199 : vector<8x8xf32>
    %211 = arith.subf %208, %210 : vector<8x8xf32>
    %c0_47 = arith.constant 0 : index
    %c0_48 = arith.constant 0 : index
    %212 = memref.load %arg24[%c0_47, %c0_48] : memref<1x4xf32, #tpu.memory_space<smem>>
    %c0_49 = arith.constant 0 : index
    %c0_50 = arith.constant 0 : index
    %213 = memref.load %arg25[%c0_49, %c0_50] : memref<1x4xf32, #tpu.memory_space<smem>>
    %214 = vector.broadcast %212 : f32 to vector<8x8xf32>
    %215 = arith.mulf %214, %211 : vector<8x8xf32>
    %216 = arith.addf %165, %215 : vector<8x8xf32>
    %217 = vector.extract_strided_slice %41 {offsets = [0, 0], sizes = [8, 8], strides = [1, 1]} : vector<8x32xf32> to vector<8x8xf32>
    %218 = arith.addf %216, %217 : vector<8x8xf32>
    %219 = vector.broadcast %213 : f32 to vector<8x8xf32>
    %220 = arith.addf %218, %219 : vector<8x8xf32>
    %cst_51 = arith.constant dense<0xFF800000> : vector<8xf32>
    %221 = vector.multi_reduction <maximumf>, %220, %cst_51 [1] : vector<8x8xf32> to vector<8xf32>
    %222 = vector.shape_cast %221 : vector<8xf32> to vector<8x1xf32>
    %223 = vector.broadcast %222 : vector<8x1xf32> to vector<8x8xf32>
    %224 = arith.subf %220, %223 : vector<8x8xf32>
    %225 = math.exp %224 : vector<8x8xf32>
    %cst_52 = arith.constant dense<0.000000e+00> : vector<8xf32>
    %226 = vector.multi_reduction <add>, %225, %cst_52 [1] : vector<8x8xf32> to vector<8xf32>
    %227 = vector.shape_cast %226 : vector<8xf32> to vector<8x1xf32>
    %228 = tpu.reciprocal %227 {approx = true} : vector<8x1xf32> -> vector<8x1xf32>
    %229 = vector.broadcast %228 : vector<8x1xf32> to vector<8x8xf32>
    %230 = arith.mulf %225, %229 : vector<8x8xf32>
    %cst_53 = arith.constant dense<0.000000e+00> : vector<8x8xf32>
    %231 = tpu.matmul %230, %162, %cst_53 {dimension_numbers = #tpu.dot_dimension_numbers<[1], [0], [0], [1], [0, 0, 1, 1], [], []>} : vector<8x8xf32>, vector<8x8xf32>, vector<8x8xf32> -> vector<8x8xf32>
    %c0_54 = arith.constant 0 : index
    %c0_55 = arith.constant 0 : index
    %232 = vector.load %arg27[%c0_54, %c0_55] : memref<8x160xf32, #tpu.memory_space<vmem>>, vector<8x8xf32>
    tpu.vector_store %arg27[%c0_54, %c0_55], %231 {strides = array<i32>} : memref<8x160xf32, #tpu.memory_space<vmem>>, vector<8x8xf32>,
    %233 = vector.extract_strided_slice %132 {offsets = [0, 0], sizes = [8, 4], strides = [1, 1]} : vector<8x16xf32> to vector<8x4xf32>
    %cst_56 = arith.constant dense<0.000000e+00> : vector<8x4xf32>
    %234 = tpu.matmul %230, %233, %cst_56 {dimension_numbers = #tpu.dot_dimension_numbers<[1], [0], [0], [1], [0, 0, 1, 1], [], []>} : vector<8x8xf32>, vector<8x4xf32>, vector<8x4xf32> -> vector<8x4xf32>
    %235 = vector.extract_strided_slice %145 {offsets = [0, 0], sizes = [8, 4], strides = [1, 1]} : vector<8x16xf32> to vector<8x4xf32>
    %cst_57 = arith.constant dense<0.000000e+00> : vector<8x4xf32>
    %236 = tpu.matmul %230, %235, %cst_57 {dimension_numbers = #tpu.dot_dimension_numbers<[1], [0], [0], [1], [0, 0, 1, 1], [], []>} : vector<8x8xf32>, vector<8x4xf32>, vector<8x4xf32> -> vector<8x4xf32>
    %237 = vector.extract_strided_slice %158 {offsets = [0, 0], sizes = [8, 4], strides = [1, 1]} : vector<8x16xf32> to vector<8x4xf32>
    %cst_58 = arith.constant dense<0.000000e+00> : vector<8x4xf32>
    %238 = tpu.matmul %230, %237, %cst_58 {dimension_numbers = #tpu.dot_dimension_numbers<[1], [0], [0], [1], [0, 0, 1, 1], [], []>} : vector<8x8xf32>, vector<8x4xf32>, vector<8x4xf32> -> vector<8x4xf32>
    %cst_59 = arith.constant 9.99999993E-9 : f32
    %239 = vector.broadcast %cst_59 : f32 to vector<8x4xf32>
    %cst_60 = arith.constant 0.000000e+00 : f32
    %240 = vector.broadcast %cst_60 : f32 to vector<8x4xf32>
    %241 = vector.broadcast %17 : vector<8x1xf32> to vector<8x4xf32>
    %242 = arith.subf %234, %241 : vector<8x4xf32>
    %243 = vector.broadcast %8 : vector<8x1xf32> to vector<8x4xf32>
    %244 = arith.mulf %242, %243 : vector<8x4xf32>
    %245 = arith.addf %240, %244 : vector<8x4xf32>
    %246 = vector.broadcast %18 : vector<8x1xf32> to vector<8x4xf32>
    %247 = arith.subf %236, %246 : vector<8x4xf32>
    %248 = vector.broadcast %9 : vector<8x1xf32> to vector<8x4xf32>
    %249 = arith.mulf %247, %248 : vector<8x4xf32>
    %250 = arith.addf %245, %249 : vector<8x4xf32>
    %251 = vector.broadcast %19 : vector<8x1xf32> to vector<8x4xf32>
    %252 = arith.subf %238, %251 : vector<8x4xf32>
    %253 = vector.broadcast %10 : vector<8x1xf32> to vector<8x4xf32>
    %254 = arith.mulf %252, %253 : vector<8x4xf32>
    %255 = arith.addf %250, %254 : vector<8x4xf32>
    %c0_61 = arith.constant 0 : index
    %c32 = arith.constant 32 : index
    %256 = vector.load %arg27[%c0_61, %c32] : memref<8x160xf32, #tpu.memory_space<vmem>>, vector<8x4xf32>
    tpu.vector_store %arg27[%c0_61, %c32], %255 {strides = array<i32>} : memref<8x160xf32, #tpu.memory_space<vmem>>, vector<8x4xf32>,
    %257 = arith.mulf %255, %255 : vector<8x4xf32>
    %258 = arith.addf %239, %257 : vector<8x4xf32>
    %cst_62 = arith.constant 0.000000e+00 : f32
    %259 = vector.broadcast %cst_62 : f32 to vector<8x4xf32>
    %260 = vector.broadcast %17 : vector<8x1xf32> to vector<8x4xf32>
    %261 = arith.subf %234, %260 : vector<8x4xf32>
    %262 = vector.broadcast %11 : vector<8x1xf32> to vector<8x4xf32>
    %263 = arith.mulf %261, %262 : vector<8x4xf32>
    %264 = arith.addf %259, %263 : vector<8x4xf32>
    %265 = vector.broadcast %18 : vector<8x1xf32> to vector<8x4xf32>
    %266 = arith.subf %236, %265 : vector<8x4xf32>
    %267 = vector.broadcast %12 : vector<8x1xf32> to vector<8x4xf32>
    %268 = arith.mulf %266, %267 : vector<8x4xf32>
    %269 = arith.addf %264, %268 : vector<8x4xf32>
    %270 = vector.broadcast %19 : vector<8x1xf32> to vector<8x4xf32>
    %271 = arith.subf %238, %270 : vector<8x4xf32>
    %272 = vector.broadcast %13 : vector<8x1xf32> to vector<8x4xf32>
    %273 = arith.mulf %271, %272 : vector<8x4xf32>
    %274 = arith.addf %269, %273 : vector<8x4xf32>
    %c0_63 = arith.constant 0 : index
    %c36 = arith.constant 36 : index
    %275 = vector.load %arg27[%c0_63, %c36] : memref<8x160xf32, #tpu.memory_space<vmem>>, vector<8x4xf32>
    tpu.vector_store %arg27[%c0_63, %c36], %274 {strides = array<i32>} : memref<8x160xf32, #tpu.memory_space<vmem>>, vector<8x4xf32>,
    %276 = arith.mulf %274, %274 : vector<8x4xf32>
    %277 = arith.addf %258, %276 : vector<8x4xf32>
    %cst_64 = arith.constant 0.000000e+00 : f32
    %278 = vector.broadcast %cst_64 : f32 to vector<8x4xf32>
    %279 = vector.broadcast %17 : vector<8x1xf32> to vector<8x4xf32>
    %280 = arith.subf %234, %279 : vector<8x4xf32>
    %281 = vector.broadcast %14 : vector<8x1xf32> to vector<8x4xf32>
    %282 = arith.mulf %280, %281 : vector<8x4xf32>
    %283 = arith.addf %278, %282 : vector<8x4xf32>
    %284 = vector.broadcast %18 : vector<8x1xf32> to vector<8x4xf32>
    %285 = arith.subf %236, %284 : vector<8x4xf32>
    %286 = vector.broadcast %15 : vector<8x1xf32> to vector<8x4xf32>
    %287 = arith.mulf %285, %286 : vector<8x4xf32>
    %288 = arith.addf %283, %287 : vector<8x4xf32>
    %289 = vector.broadcast %19 : vector<8x1xf32> to vector<8x4xf32>
    %290 = arith.subf %238, %289 : vector<8x4xf32>
    %291 = vector.broadcast %16 : vector<8x1xf32> to vector<8x4xf32>
    %292 = arith.mulf %290, %291 : vector<8x4xf32>
    %293 = arith.addf %288, %292 : vector<8x4xf32>
    %c0_65 = arith.constant 0 : index
    %c40 = arith.constant 40 : index
    %294 = vector.load %arg27[%c0_65, %c40] : memref<8x160xf32, #tpu.memory_space<vmem>>, vector<8x4xf32>
    tpu.vector_store %arg27[%c0_65, %c40], %293 {strides = array<i32>} : memref<8x160xf32, #tpu.memory_space<vmem>>, vector<8x4xf32>,
    %295 = arith.mulf %293, %293 : vector<8x4xf32>
    %296 = arith.addf %277, %295 : vector<8x4xf32>
    %297 = math.sqrt %296 : vector<8x4xf32>
    %c0_66 = arith.constant 0 : index
    %c80 = arith.constant 80 : index
    %298 = vector.load %arg27[%c0_66, %c80] : memref<8x160xf32, #tpu.memory_space<vmem>>, vector<8x4xf32>
    tpu.vector_store %arg27[%c0_66, %c80], %297 {strides = array<i32>} : memref<8x160xf32, #tpu.memory_space<vmem>>, vector<8x4xf32>,
    %299 = vector.extract_strided_slice %230 {offsets = [0, 0], sizes = [8, 1], strides = [1, 1]} : vector<8x8xf32> to vector<8x1xf32>
    %300 = vector.broadcast %299 : vector<8x1xf32> to vector<8x16xf32>
    %301 = arith.mulf %300, %20 : vector<8x16xf32>
    %302 = vector.extract_strided_slice %230 {offsets = [0, 1], sizes = [8, 1], strides = [1, 1]} : vector<8x8xf32> to vector<8x1xf32>
    %303 = vector.broadcast %302 : vector<8x1xf32> to vector<8x16xf32>
    %304 = arith.mulf %303, %21 : vector<8x16xf32>
    %305 = arith.addf %301, %304 : vector<8x16xf32>
    %306 = vector.extract_strided_slice %230 {offsets = [0, 2], sizes = [8, 1], strides = [1, 1]} : vector<8x8xf32> to vector<8x1xf32>
    %307 = vector.broadcast %306 : vector<8x1xf32> to vector<8x16xf32>
    %308 = arith.mulf %307, %22 : vector<8x16xf32>
    %309 = arith.addf %305, %308 : vector<8x16xf32>
    %310 = vector.extract_strided_slice %230 {offsets = [0, 3], sizes = [8, 1], strides = [1, 1]} : vector<8x8xf32> to vector<8x1xf32>
    %311 = vector.broadcast %310 : vector<8x1xf32> to vector<8x16xf32>
    %312 = arith.mulf %311, %23 : vector<8x16xf32>
    %313 = arith.addf %309, %312 : vector<8x16xf32>
    %314 = vector.extract_strided_slice %230 {offsets = [0, 4], sizes = [8, 1], strides = [1, 1]} : vector<8x8xf32> to vector<8x1xf32>
    %315 = vector.broadcast %314 : vector<8x1xf32> to vector<8x16xf32>
    %316 = arith.mulf %315, %24 : vector<8x16xf32>
    %317 = arith.addf %313, %316 : vector<8x16xf32>
    %318 = vector.extract_strided_slice %230 {offsets = [0, 5], sizes = [8, 1], strides = [1, 1]} : vector<8x8xf32> to vector<8x1xf32>
    %319 = vector.broadcast %318 : vector<8x1xf32> to vector<8x16xf32>
    %320 = arith.mulf %319, %25 : vector<8x16xf32>
    %321 = arith.addf %317, %320 : vector<8x16xf32>
    %322 = vector.extract_strided_slice %230 {offsets = [0, 6], sizes = [8, 1], strides = [1, 1]} : vector<8x8xf32> to vector<8x1xf32>
    %323 = vector.broadcast %322 : vector<8x1xf32> to vector<8x16xf32>
    %324 = arith.mulf %323, %26 : vector<8x16xf32>
    %325 = arith.addf %321, %324 : vector<8x16xf32>
    %326 = vector.extract_strided_slice %230 {offsets = [0, 7], sizes = [8, 1], strides = [1, 1]} : vector<8x8xf32> to vector<8x1xf32>
    %327 = vector.broadcast %326 : vector<8x1xf32> to vector<8x16xf32>
    %328 = arith.mulf %327, %27 : vector<8x16xf32>
    %329 = arith.addf %325, %328 : vector<8x16xf32>
    %c0_67 = arith.constant 0 : index
    %c96 = arith.constant 96 : index
    %330 = vector.load %arg27[%c0_67, %c96] : memref<8x160xf32, #tpu.memory_space<vmem>>, vector<8x16xf32>
    tpu.vector_store %arg27[%c0_67, %c96], %329 {strides = array<i32>} : memref<8x160xf32, #tpu.memory_space<vmem>>, vector<8x16xf32>,
    %331 = vector.extract_strided_slice %29 {offsets = [0, 8], sizes = [8, 8], strides = [1, 1]} : vector<8x32xf32> to vector<8x8xf32>
    %332 = vector.extract_strided_slice %31 {offsets = [0, 8], sizes = [8, 8], strides = [1, 1]} : vector<8x32xf32> to vector<8x8xf32>
    %333 = vector.extract_strided_slice %33 {offsets = [0, 8], sizes = [8, 8], strides = [1, 1]} : vector<8x32xf32> to vector<8x8xf32>
    %cst_68 = arith.constant dense<0.000000e+00> : vector<8x8xf32>
    %334 = tpu.matmul %331, %332, %cst_68 {dimension_numbers = #tpu.dot_dimension_numbers<[1], [1], [0], [0], [0, 0, 1, 0], [], []>} : vector<8x8xf32>, vector<8x8xf32>, vector<8x8xf32> -> vector<8x8xf32>
    %cst_69 = arith.constant 0.204124153 : f32
    %335 = vector.broadcast %cst_69 : f32 to vector<8x8xf32>
    %336 = arith.mulf %334, %335 : vector<8x8xf32>
    %cst_70 = arith.constant 0.000000e+00 : f32
    %337 = vector.broadcast %cst_70 : f32 to vector<8x8xf32>
    %338 = vector.extract_strided_slice %54 {offsets = [0, 4], sizes = [8, 4], strides = [1, 1]} : vector<8x16xf32> to vector<8x4xf32>
    %339 = vector.extract_strided_slice %93 {offsets = [0, 4], sizes = [8, 4], strides = [1, 1]} : vector<8x16xf32> to vector<8x4xf32>
    %cst_71 = arith.constant dense<0.000000e+00> : vector<8x8xf32>
    %340 = tpu.matmul %338, %339, %cst_71 {dimension_numbers = #tpu.dot_dimension_numbers<[1], [1], [0], [0], [0, 0, 1, 0], [], []>} : vector<8x4xf32>, vector<8x4xf32>, vector<8x8xf32> -> vector<8x8xf32>
    %341 = arith.mulf %338, %338 : vector<8x4xf32>
    %cst_72 = arith.constant dense<0.000000e+00> : vector<8xf32>
    %342 = vector.multi_reduction <add>, %341, %cst_72 [1] : vector<8x4xf32> to vector<8xf32>
    %343 = vector.shape_cast %342 : vector<8xf32> to vector<8x1xf32>
    %344 = arith.mulf %339, %339 : vector<8x4xf32>
    %cst_73 = arith.constant dense<0.000000e+00> : vector<1x8xf32>
    %345 = tpu.matmul %159, %344, %cst_73 {dimension_numbers = #tpu.dot_dimension_numbers<[1], [1], [0], [0], [0, 0, 1, 0], [], []>} : vector<1x4xf32>, vector<8x4xf32>, vector<1x8xf32> -> vector<1x8xf32>
    %346 = vector.broadcast %343 : vector<8x1xf32> to vector<8x8xf32>
    %347 = arith.addf %337, %346 : vector<8x8xf32>
    %348 = vector.broadcast %345 : vector<1x8xf32> to vector<8x8xf32>
    %349 = arith.addf %347, %348 : vector<8x8xf32>
    %cst_74 = arith.constant 2.000000e+00 : f32
    %350 = vector.broadcast %cst_74 : f32 to vector<8x8xf32>
    %351 = arith.mulf %350, %340 : vector<8x8xf32>
    %352 = arith.subf %349, %351 : vector<8x8xf32>
    %353 = vector.extract_strided_slice %67 {offsets = [0, 4], sizes = [8, 4], strides = [1, 1]} : vector<8x16xf32> to vector<8x4xf32>
    %354 = vector.extract_strided_slice %106 {offsets = [0, 4], sizes = [8, 4], strides = [1, 1]} : vector<8x16xf32> to vector<8x4xf32>
    %cst_75 = arith.constant dense<0.000000e+00> : vector<8x8xf32>
    %355 = tpu.matmul %353, %354, %cst_75 {dimension_numbers = #tpu.dot_dimension_numbers<[1], [1], [0], [0], [0, 0, 1, 0], [], []>} : vector<8x4xf32>, vector<8x4xf32>, vector<8x8xf32> -> vector<8x8xf32>
    %356 = arith.mulf %353, %353 : vector<8x4xf32>
    %cst_76 = arith.constant dense<0.000000e+00> : vector<8xf32>
    %357 = vector.multi_reduction <add>, %356, %cst_76 [1] : vector<8x4xf32> to vector<8xf32>
    %358 = vector.shape_cast %357 : vector<8xf32> to vector<8x1xf32>
    %359 = arith.mulf %354, %354 : vector<8x4xf32>
    %cst_77 = arith.constant dense<0.000000e+00> : vector<1x8xf32>
    %360 = tpu.matmul %159, %359, %cst_77 {dimension_numbers = #tpu.dot_dimension_numbers<[1], [1], [0], [0], [0, 0, 1, 0], [], []>} : vector<1x4xf32>, vector<8x4xf32>, vector<1x8xf32> -> vector<1x8xf32>
    %361 = vector.broadcast %358 : vector<8x1xf32> to vector<8x8xf32>
    %362 = arith.addf %352, %361 : vector<8x8xf32>
    %363 = vector.broadcast %360 : vector<1x8xf32> to vector<8x8xf32>
    %364 = arith.addf %362, %363 : vector<8x8xf32>
    %cst_78 = arith.constant 2.000000e+00 : f32
    %365 = vector.broadcast %cst_78 : f32 to vector<8x8xf32>
    %366 = arith.mulf %365, %355 : vector<8x8xf32>
    %367 = arith.subf %364, %366 : vector<8x8xf32>
    %368 = vector.extract_strided_slice %80 {offsets = [0, 4], sizes = [8, 4], strides = [1, 1]} : vector<8x16xf32> to vector<8x4xf32>
    %369 = vector.extract_strided_slice %119 {offsets = [0, 4], sizes = [8, 4], strides = [1, 1]} : vector<8x16xf32> to vector<8x4xf32>
    %cst_79 = arith.constant dense<0.000000e+00> : vector<8x8xf32>
    %370 = tpu.matmul %368, %369, %cst_79 {dimension_numbers = #tpu.dot_dimension_numbers<[1], [1], [0], [0], [0, 0, 1, 0], [], []>} : vector<8x4xf32>, vector<8x4xf32>, vector<8x8xf32> -> vector<8x8xf32>
    %371 = arith.mulf %368, %368 : vector<8x4xf32>
    %cst_80 = arith.constant dense<0.000000e+00> : vector<8xf32>
    %372 = vector.multi_reduction <add>, %371, %cst_80 [1] : vector<8x4xf32> to vector<8xf32>
    %373 = vector.shape_cast %372 : vector<8xf32> to vector<8x1xf32>
    %374 = arith.mulf %369, %369 : vector<8x4xf32>
    %cst_81 = arith.constant dense<0.000000e+00> : vector<1x8xf32>
    %375 = tpu.matmul %159, %374, %cst_81 {dimension_numbers = #tpu.dot_dimension_numbers<[1], [1], [0], [0], [0, 0, 1, 0], [], []>} : vector<1x4xf32>, vector<8x4xf32>, vector<1x8xf32> -> vector<1x8xf32>
    %376 = vector.broadcast %373 : vector<8x1xf32> to vector<8x8xf32>
    %377 = arith.addf %367, %376 : vector<8x8xf32>
    %378 = vector.broadcast %375 : vector<1x8xf32> to vector<8x8xf32>
    %379 = arith.addf %377, %378 : vector<8x8xf32>
    %cst_82 = arith.constant 2.000000e+00 : f32
    %380 = vector.broadcast %cst_82 : f32 to vector<8x8xf32>
    %381 = arith.mulf %380, %370 : vector<8x8xf32>
    %382 = arith.subf %379, %381 : vector<8x8xf32>
    %c0_83 = arith.constant 0 : index
    %c1 = arith.constant 1 : index
    %383 = memref.load %arg24[%c0_83, %c1] : memref<1x4xf32, #tpu.memory_space<smem>>
    %c0_84 = arith.constant 0 : index
    %c1_85 = arith.constant 1 : index
    %384 = memref.load %arg25[%c0_84, %c1_85] : memref<1x4xf32, #tpu.memory_space<smem>>
    %385 = vector.broadcast %383 : f32 to vector<8x8xf32>
    %386 = arith.mulf %385, %382 : vector<8x8xf32>
    %387 = arith.addf %336, %386 : vector<8x8xf32>
    %388 = vector.extract_strided_slice %41 {offsets = [0, 8], sizes = [8, 8], strides = [1, 1]} : vector<8x32xf32> to vector<8x8xf32>
    %389 = arith.addf %387, %388 : vector<8x8xf32>
    %390 = vector.broadcast %384 : f32 to vector<8x8xf32>
    %391 = arith.addf %389, %390 : vector<8x8xf32>
    %cst_86 = arith.constant dense<0xFF800000> : vector<8xf32>
    %392 = vector.multi_reduction <maximumf>, %391, %cst_86 [1] : vector<8x8xf32> to vector<8xf32>
    %393 = vector.shape_cast %392 : vector<8xf32> to vector<8x1xf32>
    %394 = vector.broadcast %393 : vector<8x1xf32> to vector<8x8xf32>
    %395 = arith.subf %391, %394 : vector<8x8xf32>
    %396 = math.exp %395 : vector<8x8xf32>
    %cst_87 = arith.constant dense<0.000000e+00> : vector<8xf32>
    %397 = vector.multi_reduction <add>, %396, %cst_87 [1] : vector<8x8xf32> to vector<8xf32>
    %398 = vector.shape_cast %397 : vector<8xf32> to vector<8x1xf32>
    %399 = tpu.reciprocal %398 {approx = true} : vector<8x1xf32> -> vector<8x1xf32>
    %400 = vector.broadcast %399 : vector<8x1xf32> to vector<8x8xf32>
    %401 = arith.mulf %396, %400 : vector<8x8xf32>
    %cst_88 = arith.constant dense<0.000000e+00> : vector<8x8xf32>
    %402 = tpu.matmul %401, %333, %cst_88 {dimension_numbers = #tpu.dot_dimension_numbers<[1], [0], [0], [1], [0, 0, 1, 1], [], []>} : vector<8x8xf32>, vector<8x8xf32>, vector<8x8xf32> -> vector<8x8xf32>
    %c0_89 = arith.constant 0 : index
    %c8 = arith.constant 8 : index
    %403 = vector.load %arg27[%c0_89, %c8] : memref<8x160xf32, #tpu.memory_space<vmem>>, vector<8x8xf32>
    tpu.vector_store %arg27[%c0_89, %c8], %402 {strides = array<i32>} : memref<8x160xf32, #tpu.memory_space<vmem>>, vector<8x8xf32>,
    %404 = vector.extract_strided_slice %132 {offsets = [0, 4], sizes = [8, 4], strides = [1, 1]} : vector<8x16xf32> to vector<8x4xf32>
    %cst_90 = arith.constant dense<0.000000e+00> : vector<8x4xf32>
    %405 = tpu.matmul %401, %404, %cst_90 {dimension_numbers = #tpu.dot_dimension_numbers<[1], [0], [0], [1], [0, 0, 1, 1], [], []>} : vector<8x8xf32>, vector<8x4xf32>, vector<8x4xf32> -> vector<8x4xf32>
    %406 = vector.extract_strided_slice %145 {offsets = [0, 4], sizes = [8, 4], strides = [1, 1]} : vector<8x16xf32> to vector<8x4xf32>
    %cst_91 = arith.constant dense<0.000000e+00> : vector<8x4xf32>
    %407 = tpu.matmul %401, %406, %cst_91 {dimension_numbers = #tpu.dot_dimension_numbers<[1], [0], [0], [1], [0, 0, 1, 1], [], []>} : vector<8x8xf32>, vector<8x4xf32>, vector<8x4xf32> -> vector<8x4xf32>
    %408 = vector.extract_strided_slice %158 {offsets = [0, 4], sizes = [8, 4], strides = [1, 1]} : vector<8x16xf32> to vector<8x4xf32>
    %cst_92 = arith.constant dense<0.000000e+00> : vector<8x4xf32>
    %409 = tpu.matmul %401, %408, %cst_92 {dimension_numbers = #tpu.dot_dimension_numbers<[1], [0], [0], [1], [0, 0, 1, 1], [], []>} : vector<8x8xf32>, vector<8x4xf32>, vector<8x4xf32> -> vector<8x4xf32>
    %cst_93 = arith.constant 9.99999993E-9 : f32
    %410 = vector.broadcast %cst_93 : f32 to vector<8x4xf32>
    %cst_94 = arith.constant 0.000000e+00 : f32
    %411 = vector.broadcast %cst_94 : f32 to vector<8x4xf32>
    %412 = vector.broadcast %17 : vector<8x1xf32> to vector<8x4xf32>
    %413 = arith.subf %405, %412 : vector<8x4xf32>
    %414 = vector.broadcast %8 : vector<8x1xf32> to vector<8x4xf32>
    %415 = arith.mulf %413, %414 : vector<8x4xf32>
    %416 = arith.addf %411, %415 : vector<8x4xf32>
    %417 = vector.broadcast %18 : vector<8x1xf32> to vector<8x4xf32>
    %418 = arith.subf %407, %417 : vector<8x4xf32>
    %419 = vector.broadcast %9 : vector<8x1xf32> to vector<8x4xf32>
    %420 = arith.mulf %418, %419 : vector<8x4xf32>
    %421 = arith.addf %416, %420 : vector<8x4xf32>
    %422 = vector.broadcast %19 : vector<8x1xf32> to vector<8x4xf32>
    %423 = arith.subf %409, %422 : vector<8x4xf32>
    %424 = vector.broadcast %10 : vector<8x1xf32> to vector<8x4xf32>
    %425 = arith.mulf %423, %424 : vector<8x4xf32>
    %426 = arith.addf %421, %425 : vector<8x4xf32>
    %c0_95 = arith.constant 0 : index
    %c44 = arith.constant 44 : index
    %427 = vector.load %arg27[%c0_95, %c44] : memref<8x160xf32, #tpu.memory_space<vmem>>, vector<8x4xf32>
    tpu.vector_store %arg27[%c0_95, %c44], %426 {strides = array<i32>} : memref<8x160xf32, #tpu.memory_space<vmem>>, vector<8x4xf32>,
    %428 = arith.mulf %426, %426 : vector<8x4xf32>
    %429 = arith.addf %410, %428 : vector<8x4xf32>
    %cst_96 = arith.constant 0.000000e+00 : f32
    %430 = vector.broadcast %cst_96 : f32 to vector<8x4xf32>
    %431 = vector.broadcast %17 : vector<8x1xf32> to vector<8x4xf32>
    %432 = arith.subf %405, %431 : vector<8x4xf32>
    %433 = vector.broadcast %11 : vector<8x1xf32> to vector<8x4xf32>
    %434 = arith.mulf %432, %433 : vector<8x4xf32>
    %435 = arith.addf %430, %434 : vector<8x4xf32>
    %436 = vector.broadcast %18 : vector<8x1xf32> to vector<8x4xf32>
    %437 = arith.subf %407, %436 : vector<8x4xf32>
    %438 = vector.broadcast %12 : vector<8x1xf32> to vector<8x4xf32>
    %439 = arith.mulf %437, %438 : vector<8x4xf32>
    %440 = arith.addf %435, %439 : vector<8x4xf32>
    %441 = vector.broadcast %19 : vector<8x1xf32> to vector<8x4xf32>
    %442 = arith.subf %409, %441 : vector<8x4xf32>
    %443 = vector.broadcast %13 : vector<8x1xf32> to vector<8x4xf32>
    %444 = arith.mulf %442, %443 : vector<8x4xf32>
    %445 = arith.addf %440, %444 : vector<8x4xf32>
    %c0_97 = arith.constant 0 : index
    %c48 = arith.constant 48 : index
    %446 = vector.load %arg27[%c0_97, %c48] : memref<8x160xf32, #tpu.memory_space<vmem>>, vector<8x4xf32>
    tpu.vector_store %arg27[%c0_97, %c48], %445 {strides = array<i32>} : memref<8x160xf32, #tpu.memory_space<vmem>>, vector<8x4xf32>,
    %447 = arith.mulf %445, %445 : vector<8x4xf32>
    %448 = arith.addf %429, %447 : vector<8x4xf32>
    %cst_98 = arith.constant 0.000000e+00 : f32
    %449 = vector.broadcast %cst_98 : f32 to vector<8x4xf32>
    %450 = vector.broadcast %17 : vector<8x1xf32> to vector<8x4xf32>
    %451 = arith.subf %405, %450 : vector<8x4xf32>
    %452 = vector.broadcast %14 : vector<8x1xf32> to vector<8x4xf32>
    %453 = arith.mulf %451, %452 : vector<8x4xf32>
    %454 = arith.addf %449, %453 : vector<8x4xf32>
    %455 = vector.broadcast %18 : vector<8x1xf32> to vector<8x4xf32>
    %456 = arith.subf %407, %455 : vector<8x4xf32>
    %457 = vector.broadcast %15 : vector<8x1xf32> to vector<8x4xf32>
    %458 = arith.mulf %456, %457 : vector<8x4xf32>
    %459 = arith.addf %454, %458 : vector<8x4xf32>
    %460 = vector.broadcast %19 : vector<8x1xf32> to vector<8x4xf32>
    %461 = arith.subf %409, %460 : vector<8x4xf32>
    %462 = vector.broadcast %16 : vector<8x1xf32> to vector<8x4xf32>
    %463 = arith.mulf %461, %462 : vector<8x4xf32>
    %464 = arith.addf %459, %463 : vector<8x4xf32>
    %c0_99 = arith.constant 0 : index
    %c52 = arith.constant 52 : index
    %465 = vector.load %arg27[%c0_99, %c52] : memref<8x160xf32, #tpu.memory_space<vmem>>, vector<8x4xf32>
    tpu.vector_store %arg27[%c0_99, %c52], %464 {strides = array<i32>} : memref<8x160xf32, #tpu.memory_space<vmem>>, vector<8x4xf32>,
    %466 = arith.mulf %464, %464 : vector<8x4xf32>
    %467 = arith.addf %448, %466 : vector<8x4xf32>
    %468 = math.sqrt %467 : vector<8x4xf32>
    %c0_100 = arith.constant 0 : index
    %c84 = arith.constant 84 : index
    %469 = vector.load %arg27[%c0_100, %c84] : memref<8x160xf32, #tpu.memory_space<vmem>>, vector<8x4xf32>
    tpu.vector_store %arg27[%c0_100, %c84], %468 {strides = array<i32>} : memref<8x160xf32, #tpu.memory_space<vmem>>, vector<8x4xf32>,
    %470 = vector.extract_strided_slice %401 {offsets = [0, 0], sizes = [8, 1], strides = [1, 1]} : vector<8x8xf32> to vector<8x1xf32>
    %471 = vector.broadcast %470 : vector<8x1xf32> to vector<8x16xf32>
    %472 = arith.mulf %471, %20 : vector<8x16xf32>
    %473 = vector.extract_strided_slice %401 {offsets = [0, 1], sizes = [8, 1], strides = [1, 1]} : vector<8x8xf32> to vector<8x1xf32>
    %474 = vector.broadcast %473 : vector<8x1xf32> to vector<8x16xf32>
    %475 = arith.mulf %474, %21 : vector<8x16xf32>
    %476 = arith.addf %472, %475 : vector<8x16xf32>
    %477 = vector.extract_strided_slice %401 {offsets = [0, 2], sizes = [8, 1], strides = [1, 1]} : vector<8x8xf32> to vector<8x1xf32>
    %478 = vector.broadcast %477 : vector<8x1xf32> to vector<8x16xf32>
    %479 = arith.mulf %478, %22 : vector<8x16xf32>
    %480 = arith.addf %476, %479 : vector<8x16xf32>
    %481 = vector.extract_strided_slice %401 {offsets = [0, 3], sizes = [8, 1], strides = [1, 1]} : vector<8x8xf32> to vector<8x1xf32>
    %482 = vector.broadcast %481 : vector<8x1xf32> to vector<8x16xf32>
    %483 = arith.mulf %482, %23 : vector<8x16xf32>
    %484 = arith.addf %480, %483 : vector<8x16xf32>
    %485 = vector.extract_strided_slice %401 {offsets = [0, 4], sizes = [8, 1], strides = [1, 1]} : vector<8x8xf32> to vector<8x1xf32>
    %486 = vector.broadcast %485 : vector<8x1xf32> to vector<8x16xf32>
    %487 = arith.mulf %486, %24 : vector<8x16xf32>
    %488 = arith.addf %484, %487 : vector<8x16xf32>
    %489 = vector.extract_strided_slice %401 {offsets = [0, 5], sizes = [8, 1], strides = [1, 1]} : vector<8x8xf32> to vector<8x1xf32>
    %490 = vector.broadcast %489 : vector<8x1xf32> to vector<8x16xf32>
    %491 = arith.mulf %490, %25 : vector<8x16xf32>
    %492 = arith.addf %488, %491 : vector<8x16xf32>
    %493 = vector.extract_strided_slice %401 {offsets = [0, 6], sizes = [8, 1], strides = [1, 1]} : vector<8x8xf32> to vector<8x1xf32>
    %494 = vector.broadcast %493 : vector<8x1xf32> to vector<8x16xf32>
    %495 = arith.mulf %494, %26 : vector<8x16xf32>
    %496 = arith.addf %492, %495 : vector<8x16xf32>
    %497 = vector.extract_strided_slice %401 {offsets = [0, 7], sizes = [8, 1], strides = [1, 1]} : vector<8x8xf32> to vector<8x1xf32>
    %498 = vector.broadcast %497 : vector<8x1xf32> to vector<8x16xf32>
    %499 = arith.mulf %498, %27 : vector<8x16xf32>
    %500 = arith.addf %496, %499 : vector<8x16xf32>
    %c0_101 = arith.constant 0 : index
    %c112 = arith.constant 112 : index
    %501 = vector.load %arg27[%c0_101, %c112] : memref<8x160xf32, #tpu.memory_space<vmem>>, vector<8x16xf32>
    tpu.vector_store %arg27[%c0_101, %c112], %500 {strides = array<i32>} : memref<8x160xf32, #tpu.memory_space<vmem>>, vector<8x16xf32>,
    %502 = vector.extract_strided_slice %29 {offsets = [0, 16], sizes = [8, 8], strides = [1, 1]} : vector<8x32xf32> to vector<8x8xf32>
    %503 = vector.extract_strided_slice %31 {offsets = [0, 16], sizes = [8, 8], strides = [1, 1]} : vector<8x32xf32> to vector<8x8xf32>
    %504 = vector.extract_strided_slice %33 {offsets = [0, 16], sizes = [8, 8], strides = [1, 1]} : vector<8x32xf32> to vector<8x8xf32>
    %cst_102 = arith.constant dense<0.000000e+00> : vector<8x8xf32>
    %505 = tpu.matmul %502, %503, %cst_102 {dimension_numbers = #tpu.dot_dimension_numbers<[1], [1], [0], [0], [0, 0, 1, 0], [], []>} : vector<8x8xf32>, vector<8x8xf32>, vector<8x8xf32> -> vector<8x8xf32>
    %cst_103 = arith.constant 0.204124153 : f32
    %506 = vector.broadcast %cst_103 : f32 to vector<8x8xf32>
    %507 = arith.mulf %505, %506 : vector<8x8xf32>
    %cst_104 = arith.constant 0.000000e+00 : f32
    %508 = vector.broadcast %cst_104 : f32 to vector<8x8xf32>
    %509 = vector.extract_strided_slice %54 {offsets = [0, 8], sizes = [8, 4], strides = [1, 1]} : vector<8x16xf32> to vector<8x4xf32>
    %510 = vector.extract_strided_slice %93 {offsets = [0, 8], sizes = [8, 4], strides = [1, 1]} : vector<8x16xf32> to vector<8x4xf32>
    %cst_105 = arith.constant dense<0.000000e+00> : vector<8x8xf32>
    %511 = tpu.matmul %509, %510, %cst_105 {dimension_numbers = #tpu.dot_dimension_numbers<[1], [1], [0], [0], [0, 0, 1, 0], [], []>} : vector<8x4xf32>, vector<8x4xf32>, vector<8x8xf32> -> vector<8x8xf32>
    %512 = arith.mulf %509, %509 : vector<8x4xf32>
    %cst_106 = arith.constant dense<0.000000e+00> : vector<8xf32>
    %513 = vector.multi_reduction <add>, %512, %cst_106 [1] : vector<8x4xf32> to vector<8xf32>
    %514 = vector.shape_cast %513 : vector<8xf32> to vector<8x1xf32>
    %515 = arith.mulf %510, %510 : vector<8x4xf32>
    %cst_107 = arith.constant dense<0.000000e+00> : vector<1x8xf32>
    %516 = tpu.matmul %159, %515, %cst_107 {dimension_numbers = #tpu.dot_dimension_numbers<[1], [1], [0], [0], [0, 0, 1, 0], [], []>} : vector<1x4xf32>, vector<8x4xf32>, vector<1x8xf32> -> vector<1x8xf32>
    %517 = vector.broadcast %514 : vector<8x1xf32> to vector<8x8xf32>
    %518 = arith.addf %508, %517 : vector<8x8xf32>
    %519 = vector.broadcast %516 : vector<1x8xf32> to vector<8x8xf32>
    %520 = arith.addf %518, %519 : vector<8x8xf32>
    %cst_108 = arith.constant 2.000000e+00 : f32
    %521 = vector.broadcast %cst_108 : f32 to vector<8x8xf32>
    %522 = arith.mulf %521, %511 : vector<8x8xf32>
    %523 = arith.subf %520, %522 : vector<8x8xf32>
    %524 = vector.extract_strided_slice %67 {offsets = [0, 8], sizes = [8, 4], strides = [1, 1]} : vector<8x16xf32> to vector<8x4xf32>
    %525 = vector.extract_strided_slice %106 {offsets = [0, 8], sizes = [8, 4], strides = [1, 1]} : vector<8x16xf32> to vector<8x4xf32>
    %cst_109 = arith.constant dense<0.000000e+00> : vector<8x8xf32>
    %526 = tpu.matmul %524, %525, %cst_109 {dimension_numbers = #tpu.dot_dimension_numbers<[1], [1], [0], [0], [0, 0, 1, 0], [], []>} : vector<8x4xf32>, vector<8x4xf32>, vector<8x8xf32> -> vector<8x8xf32>
    %527 = arith.mulf %524, %524 : vector<8x4xf32>
    %cst_110 = arith.constant dense<0.000000e+00> : vector<8xf32>
    %528 = vector.multi_reduction <add>, %527, %cst_110 [1] : vector<8x4xf32> to vector<8xf32>
    %529 = vector.shape_cast %528 : vector<8xf32> to vector<8x1xf32>
    %530 = arith.mulf %525, %525 : vector<8x4xf32>
    %cst_111 = arith.constant dense<0.000000e+00> : vector<1x8xf32>
    %531 = tpu.matmul %159, %530, %cst_111 {dimension_numbers = #tpu.dot_dimension_numbers<[1], [1], [0], [0], [0, 0, 1, 0], [], []>} : vector<1x4xf32>, vector<8x4xf32>, vector<1x8xf32> -> vector<1x8xf32>
    %532 = vector.broadcast %529 : vector<8x1xf32> to vector<8x8xf32>
    %533 = arith.addf %523, %532 : vector<8x8xf32>
    %534 = vector.broadcast %531 : vector<1x8xf32> to vector<8x8xf32>
    %535 = arith.addf %533, %534 : vector<8x8xf32>
    %cst_112 = arith.constant 2.000000e+00 : f32
    %536 = vector.broadcast %cst_112 : f32 to vector<8x8xf32>
    %537 = arith.mulf %536, %526 : vector<8x8xf32>
    %538 = arith.subf %535, %537 : vector<8x8xf32>
    %539 = vector.extract_strided_slice %80 {offsets = [0, 8], sizes = [8, 4], strides = [1, 1]} : vector<8x16xf32> to vector<8x4xf32>
    %540 = vector.extract_strided_slice %119 {offsets = [0, 8], sizes = [8, 4], strides = [1, 1]} : vector<8x16xf32> to vector<8x4xf32>
    %cst_113 = arith.constant dense<0.000000e+00> : vector<8x8xf32>
    %541 = tpu.matmul %539, %540, %cst_113 {dimension_numbers = #tpu.dot_dimension_numbers<[1], [1], [0], [0], [0, 0, 1, 0], [], []>} : vector<8x4xf32>, vector<8x4xf32>, vector<8x8xf32> -> vector<8x8xf32>
    %542 = arith.mulf %539, %539 : vector<8x4xf32>
    %cst_114 = arith.constant dense<0.000000e+00> : vector<8xf32>
    %543 = vector.multi_reduction <add>, %542, %cst_114 [1] : vector<8x4xf32> to vector<8xf32>
    %544 = vector.shape_cast %543 : vector<8xf32> to vector<8x1xf32>
    %545 = arith.mulf %540, %540 : vector<8x4xf32>
    %cst_115 = arith.constant dense<0.000000e+00> : vector<1x8xf32>
    %546 = tpu.matmul %159, %545, %cst_115 {dimension_numbers = #tpu.dot_dimension_numbers<[1], [1], [0], [0], [0, 0, 1, 0], [], []>} : vector<1x4xf32>, vector<8x4xf32>, vector<1x8xf32> -> vector<1x8xf32>
    %547 = vector.broadcast %544 : vector<8x1xf32> to vector<8x8xf32>
    %548 = arith.addf %538, %547 : vector<8x8xf32>
    %549 = vector.broadcast %546 : vector<1x8xf32> to vector<8x8xf32>
    %550 = arith.addf %548, %549 : vector<8x8xf32>
    %cst_116 = arith.constant 2.000000e+00 : f32
    %551 = vector.broadcast %cst_116 : f32 to vector<8x8xf32>
    %552 = arith.mulf %551, %541 : vector<8x8xf32>
    %553 = arith.subf %550, %552 : vector<8x8xf32>
    %c0_117 = arith.constant 0 : index
    %c2 = arith.constant 2 : index
    %554 = memref.load %arg24[%c0_117, %c2] : memref<1x4xf32, #tpu.memory_space<smem>>
    %c0_118 = arith.constant 0 : index
    %c2_119 = arith.constant 2 : index
    %555 = memref.load %arg25[%c0_118, %c2_119] : memref<1x4xf32, #tpu.memory_space<smem>>
    %556 = vector.broadcast %554 : f32 to vector<8x8xf32>
    %557 = arith.mulf %556, %553 : vector<8x8xf32>
    %558 = arith.addf %507, %557 : vector<8x8xf32>
    %559 = vector.extract_strided_slice %41 {offsets = [0, 16], sizes = [8, 8], strides = [1, 1]} : vector<8x32xf32> to vector<8x8xf32>
    %560 = arith.addf %558, %559 : vector<8x8xf32>
    %561 = vector.broadcast %555 : f32 to vector<8x8xf32>
    %562 = arith.addf %560, %561 : vector<8x8xf32>
    %cst_120 = arith.constant dense<0xFF800000> : vector<8xf32>
    %563 = vector.multi_reduction <maximumf>, %562, %cst_120 [1] : vector<8x8xf32> to vector<8xf32>
    %564 = vector.shape_cast %563 : vector<8xf32> to vector<8x1xf32>
    %565 = vector.broadcast %564 : vector<8x1xf32> to vector<8x8xf32>
    %566 = arith.subf %562, %565 : vector<8x8xf32>
    %567 = math.exp %566 : vector<8x8xf32>
    %cst_121 = arith.constant dense<0.000000e+00> : vector<8xf32>
    %568 = vector.multi_reduction <add>, %567, %cst_121 [1] : vector<8x8xf32> to vector<8xf32>
    %569 = vector.shape_cast %568 : vector<8xf32> to vector<8x1xf32>
    %570 = tpu.reciprocal %569 {approx = true} : vector<8x1xf32> -> vector<8x1xf32>
    %571 = vector.broadcast %570 : vector<8x1xf32> to vector<8x8xf32>
    %572 = arith.mulf %567, %571 : vector<8x8xf32>
    %cst_122 = arith.constant dense<0.000000e+00> : vector<8x8xf32>
    %573 = tpu.matmul %572, %504, %cst_122 {dimension_numbers = #tpu.dot_dimension_numbers<[1], [0], [0], [1], [0, 0, 1, 1], [], []>} : vector<8x8xf32>, vector<8x8xf32>, vector<8x8xf32> -> vector<8x8xf32>
    %c0_123 = arith.constant 0 : index
    %c16 = arith.constant 16 : index
    %574 = vector.load %arg27[%c0_123, %c16] : memref<8x160xf32, #tpu.memory_space<vmem>>, vector<8x8xf32>
    tpu.vector_store %arg27[%c0_123, %c16], %573 {strides = array<i32>} : memref<8x160xf32, #tpu.memory_space<vmem>>, vector<8x8xf32>,
    %575 = vector.extract_strided_slice %132 {offsets = [0, 8], sizes = [8, 4], strides = [1, 1]} : vector<8x16xf32> to vector<8x4xf32>
    %cst_124 = arith.constant dense<0.000000e+00> : vector<8x4xf32>
    %576 = tpu.matmul %572, %575, %cst_124 {dimension_numbers = #tpu.dot_dimension_numbers<[1], [0], [0], [1], [0, 0, 1, 1], [], []>} : vector<8x8xf32>, vector<8x4xf32>, vector<8x4xf32> -> vector<8x4xf32>
    %577 = vector.extract_strided_slice %145 {offsets = [0, 8], sizes = [8, 4], strides = [1, 1]} : vector<8x16xf32> to vector<8x4xf32>
    %cst_125 = arith.constant dense<0.000000e+00> : vector<8x4xf32>
    %578 = tpu.matmul %572, %577, %cst_125 {dimension_numbers = #tpu.dot_dimension_numbers<[1], [0], [0], [1], [0, 0, 1, 1], [], []>} : vector<8x8xf32>, vector<8x4xf32>, vector<8x4xf32> -> vector<8x4xf32>
    %579 = vector.extract_strided_slice %158 {offsets = [0, 8], sizes = [8, 4], strides = [1, 1]} : vector<8x16xf32> to vector<8x4xf32>
    %cst_126 = arith.constant dense<0.000000e+00> : vector<8x4xf32>
    %580 = tpu.matmul %572, %579, %cst_126 {dimension_numbers = #tpu.dot_dimension_numbers<[1], [0], [0], [1], [0, 0, 1, 1], [], []>} : vector<8x8xf32>, vector<8x4xf32>, vector<8x4xf32> -> vector<8x4xf32>
    %cst_127 = arith.constant 9.99999993E-9 : f32
    %581 = vector.broadcast %cst_127 : f32 to vector<8x4xf32>
    %cst_128 = arith.constant 0.000000e+00 : f32
    %582 = vector.broadcast %cst_128 : f32 to vector<8x4xf32>
    %583 = vector.broadcast %17 : vector<8x1xf32> to vector<8x4xf32>
    %584 = arith.subf %576, %583 : vector<8x4xf32>
    %585 = vector.broadcast %8 : vector<8x1xf32> to vector<8x4xf32>
    %586 = arith.mulf %584, %585 : vector<8x4xf32>
    %587 = arith.addf %582, %586 : vector<8x4xf32>
    %588 = vector.broadcast %18 : vector<8x1xf32> to vector<8x4xf32>
    %589 = arith.subf %578, %588 : vector<8x4xf32>
    %590 = vector.broadcast %9 : vector<8x1xf32> to vector<8x4xf32>
    %591 = arith.mulf %589, %590 : vector<8x4xf32>
    %592 = arith.addf %587, %591 : vector<8x4xf32>
    %593 = vector.broadcast %19 : vector<8x1xf32> to vector<8x4xf32>
    %594 = arith.subf %580, %593 : vector<8x4xf32>
    %595 = vector.broadcast %10 : vector<8x1xf32> to vector<8x4xf32>
    %596 = arith.mulf %594, %595 : vector<8x4xf32>
    %597 = arith.addf %592, %596 : vector<8x4xf32>
    %c0_129 = arith.constant 0 : index
    %c56 = arith.constant 56 : index
    %598 = vector.load %arg27[%c0_129, %c56] : memref<8x160xf32, #tpu.memory_space<vmem>>, vector<8x4xf32>
    tpu.vector_store %arg27[%c0_129, %c56], %597 {strides = array<i32>} : memref<8x160xf32, #tpu.memory_space<vmem>>, vector<8x4xf32>,
    %599 = arith.mulf %597, %597 : vector<8x4xf32>
    %600 = arith.addf %581, %599 : vector<8x4xf32>
    %cst_130 = arith.constant 0.000000e+00 : f32
    %601 = vector.broadcast %cst_130 : f32 to vector<8x4xf32>
    %602 = vector.broadcast %17 : vector<8x1xf32> to vector<8x4xf32>
    %603 = arith.subf %576, %602 : vector<8x4xf32>
    %604 = vector.broadcast %11 : vector<8x1xf32> to vector<8x4xf32>
    %605 = arith.mulf %603, %604 : vector<8x4xf32>
    %606 = arith.addf %601, %605 : vector<8x4xf32>
    %607 = vector.broadcast %18 : vector<8x1xf32> to vector<8x4xf32>
    %608 = arith.subf %578, %607 : vector<8x4xf32>
    %609 = vector.broadcast %12 : vector<8x1xf32> to vector<8x4xf32>
    %610 = arith.mulf %608, %609 : vector<8x4xf32>
    %611 = arith.addf %606, %610 : vector<8x4xf32>
    %612 = vector.broadcast %19 : vector<8x1xf32> to vector<8x4xf32>
    %613 = arith.subf %580, %612 : vector<8x4xf32>
    %614 = vector.broadcast %13 : vector<8x1xf32> to vector<8x4xf32>
    %615 = arith.mulf %613, %614 : vector<8x4xf32>
    %616 = arith.addf %611, %615 : vector<8x4xf32>
    %c0_131 = arith.constant 0 : index
    %c60 = arith.constant 60 : index
    %617 = vector.load %arg27[%c0_131, %c60] : memref<8x160xf32, #tpu.memory_space<vmem>>, vector<8x4xf32>
    tpu.vector_store %arg27[%c0_131, %c60], %616 {strides = array<i32>} : memref<8x160xf32, #tpu.memory_space<vmem>>, vector<8x4xf32>,
    %618 = arith.mulf %616, %616 : vector<8x4xf32>
    %619 = arith.addf %600, %618 : vector<8x4xf32>
    %cst_132 = arith.constant 0.000000e+00 : f32
    %620 = vector.broadcast %cst_132 : f32 to vector<8x4xf32>
    %621 = vector.broadcast %17 : vector<8x1xf32> to vector<8x4xf32>
    %622 = arith.subf %576, %621 : vector<8x4xf32>
    %623 = vector.broadcast %14 : vector<8x1xf32> to vector<8x4xf32>
    %624 = arith.mulf %622, %623 : vector<8x4xf32>
    %625 = arith.addf %620, %624 : vector<8x4xf32>
    %626 = vector.broadcast %18 : vector<8x1xf32> to vector<8x4xf32>
    %627 = arith.subf %578, %626 : vector<8x4xf32>
    %628 = vector.broadcast %15 : vector<8x1xf32> to vector<8x4xf32>
    %629 = arith.mulf %627, %628 : vector<8x4xf32>
    %630 = arith.addf %625, %629 : vector<8x4xf32>
    %631 = vector.broadcast %19 : vector<8x1xf32> to vector<8x4xf32>
    %632 = arith.subf %580, %631 : vector<8x4xf32>
    %633 = vector.broadcast %16 : vector<8x1xf32> to vector<8x4xf32>
    %634 = arith.mulf %632, %633 : vector<8x4xf32>
    %635 = arith.addf %630, %634 : vector<8x4xf32>
    %c0_133 = arith.constant 0 : index
    %c64 = arith.constant 64 : index
    %636 = vector.load %arg27[%c0_133, %c64] : memref<8x160xf32, #tpu.memory_space<vmem>>, vector<8x4xf32>
    tpu.vector_store %arg27[%c0_133, %c64], %635 {strides = array<i32>} : memref<8x160xf32, #tpu.memory_space<vmem>>, vector<8x4xf32>,
    %637 = arith.mulf %635, %635 : vector<8x4xf32>
    %638 = arith.addf %619, %637 : vector<8x4xf32>
    %639 = math.sqrt %638 : vector<8x4xf32>
    %c0_134 = arith.constant 0 : index
    %c88 = arith.constant 88 : index
    %640 = vector.load %arg27[%c0_134, %c88] : memref<8x160xf32, #tpu.memory_space<vmem>>, vector<8x4xf32>
    tpu.vector_store %arg27[%c0_134, %c88], %639 {strides = array<i32>} : memref<8x160xf32, #tpu.memory_space<vmem>>, vector<8x4xf32>,
    %641 = vector.extract_strided_slice %572 {offsets = [0, 0], sizes = [8, 1], strides = [1, 1]} : vector<8x8xf32> to vector<8x1xf32>
    %642 = vector.broadcast %641 : vector<8x1xf32> to vector<8x16xf32>
    %643 = arith.mulf %642, %20 : vector<8x16xf32>
    %644 = vector.extract_strided_slice %572 {offsets = [0, 1], sizes = [8, 1], strides = [1, 1]} : vector<8x8xf32> to vector<8x1xf32>
    %645 = vector.broadcast %644 : vector<8x1xf32> to vector<8x16xf32>
    %646 = arith.mulf %645, %21 : vector<8x16xf32>
    %647 = arith.addf %643, %646 : vector<8x16xf32>
    %648 = vector.extract_strided_slice %572 {offsets = [0, 2], sizes = [8, 1], strides = [1, 1]} : vector<8x8xf32> to vector<8x1xf32>
    %649 = vector.broadcast %648 : vector<8x1xf32> to vector<8x16xf32>
    %650 = arith.mulf %649, %22 : vector<8x16xf32>
    %651 = arith.addf %647, %650 : vector<8x16xf32>
    %652 = vector.extract_strided_slice %572 {offsets = [0, 3], sizes = [8, 1], strides = [1, 1]} : vector<8x8xf32> to vector<8x1xf32>
    %653 = vector.broadcast %652 : vector<8x1xf32> to vector<8x16xf32>
    %654 = arith.mulf %653, %23 : vector<8x16xf32>
    %655 = arith.addf %651, %654 : vector<8x16xf32>
    %656 = vector.extract_strided_slice %572 {offsets = [0, 4], sizes = [8, 1], strides = [1, 1]} : vector<8x8xf32> to vector<8x1xf32>
    %657 = vector.broadcast %656 : vector<8x1xf32> to vector<8x16xf32>
    %658 = arith.mulf %657, %24 : vector<8x16xf32>
    %659 = arith.addf %655, %658 : vector<8x16xf32>
    %660 = vector.extract_strided_slice %572 {offsets = [0, 5], sizes = [8, 1], strides = [1, 1]} : vector<8x8xf32> to vector<8x1xf32>
    %661 = vector.broadcast %660 : vector<8x1xf32> to vector<8x16xf32>
    %662 = arith.mulf %661, %25 : vector<8x16xf32>
    %663 = arith.addf %659, %662 : vector<8x16xf32>
    %664 = vector.extract_strided_slice %572 {offsets = [0, 6], sizes = [8, 1], strides = [1, 1]} : vector<8x8xf32> to vector<8x1xf32>
    %665 = vector.broadcast %664 : vector<8x1xf32> to vector<8x16xf32>
    %666 = arith.mulf %665, %26 : vector<8x16xf32>
    %667 = arith.addf %663, %666 : vector<8x16xf32>
    %668 = vector.extract_strided_slice %572 {offsets = [0, 7], sizes = [8, 1], strides = [1, 1]} : vector<8x8xf32> to vector<8x1xf32>
    %669 = vector.broadcast %668 : vector<8x1xf32> to vector<8x16xf32>
    %670 = arith.mulf %669, %27 : vector<8x16xf32>
    %671 = arith.addf %667, %670 : vector<8x16xf32>
    %c0_135 = arith.constant 0 : index
    %c128 = arith.constant 128 : index
    %672 = vector.load %arg27[%c0_135, %c128] : memref<8x160xf32, #tpu.memory_space<vmem>>, vector<8x16xf32>
    tpu.vector_store %arg27[%c0_135, %c128], %671 {strides = array<i32>} : memref<8x160xf32, #tpu.memory_space<vmem>>, vector<8x16xf32>,
    %673 = vector.extract_strided_slice %29 {offsets = [0, 24], sizes = [8, 8], strides = [1, 1]} : vector<8x32xf32> to vector<8x8xf32>
    %674 = vector.extract_strided_slice %31 {offsets = [0, 24], sizes = [8, 8], strides = [1, 1]} : vector<8x32xf32> to vector<8x8xf32>
    %675 = vector.extract_strided_slice %33 {offsets = [0, 24], sizes = [8, 8], strides = [1, 1]} : vector<8x32xf32> to vector<8x8xf32>
    %cst_136 = arith.constant dense<0.000000e+00> : vector<8x8xf32>
    %676 = tpu.matmul %673, %674, %cst_136 {dimension_numbers = #tpu.dot_dimension_numbers<[1], [1], [0], [0], [0, 0, 1, 0], [], []>} : vector<8x8xf32>, vector<8x8xf32>, vector<8x8xf32> -> vector<8x8xf32>
    %cst_137 = arith.constant 0.204124153 : f32
    %677 = vector.broadcast %cst_137 : f32 to vector<8x8xf32>
    %678 = arith.mulf %676, %677 : vector<8x8xf32>
    %cst_138 = arith.constant 0.000000e+00 : f32
    %679 = vector.broadcast %cst_138 : f32 to vector<8x8xf32>
    %680 = vector.extract_strided_slice %54 {offsets = [0, 12], sizes = [8, 4], strides = [1, 1]} : vector<8x16xf32> to vector<8x4xf32>
    %681 = vector.extract_strided_slice %93 {offsets = [0, 12], sizes = [8, 4], strides = [1, 1]} : vector<8x16xf32> to vector<8x4xf32>
    %cst_139 = arith.constant dense<0.000000e+00> : vector<8x8xf32>
    %682 = tpu.matmul %680, %681, %cst_139 {dimension_numbers = #tpu.dot_dimension_numbers<[1], [1], [0], [0], [0, 0, 1, 0], [], []>} : vector<8x4xf32>, vector<8x4xf32>, vector<8x8xf32> -> vector<8x8xf32>
    %683 = arith.mulf %680, %680 : vector<8x4xf32>
    %cst_140 = arith.constant dense<0.000000e+00> : vector<8xf32>
    %684 = vector.multi_reduction <add>, %683, %cst_140 [1] : vector<8x4xf32> to vector<8xf32>
    %685 = vector.shape_cast %684 : vector<8xf32> to vector<8x1xf32>
    %686 = arith.mulf %681, %681 : vector<8x4xf32>
    %cst_141 = arith.constant dense<0.000000e+00> : vector<1x8xf32>
    %687 = tpu.matmul %159, %686, %cst_141 {dimension_numbers = #tpu.dot_dimension_numbers<[1], [1], [0], [0], [0, 0, 1, 0], [], []>} : vector<1x4xf32>, vector<8x4xf32>, vector<1x8xf32> -> vector<1x8xf32>
    %688 = vector.broadcast %685 : vector<8x1xf32> to vector<8x8xf32>
    %689 = arith.addf %679, %688 : vector<8x8xf32>
    %690 = vector.broadcast %687 : vector<1x8xf32> to vector<8x8xf32>
    %691 = arith.addf %689, %690 : vector<8x8xf32>
    %cst_142 = arith.constant 2.000000e+00 : f32
    %692 = vector.broadcast %cst_142 : f32 to vector<8x8xf32>
    %693 = arith.mulf %692, %682 : vector<8x8xf32>
    %694 = arith.subf %691, %693 : vector<8x8xf32>
    %695 = vector.extract_strided_slice %67 {offsets = [0, 12], sizes = [8, 4], strides = [1, 1]} : vector<8x16xf32> to vector<8x4xf32>
    %696 = vector.extract_strided_slice %106 {offsets = [0, 12], sizes = [8, 4], strides = [1, 1]} : vector<8x16xf32> to vector<8x4xf32>
    %cst_143 = arith.constant dense<0.000000e+00> : vector<8x8xf32>
    %697 = tpu.matmul %695, %696, %cst_143 {dimension_numbers = #tpu.dot_dimension_numbers<[1], [1], [0], [0], [0, 0, 1, 0], [], []>} : vector<8x4xf32>, vector<8x4xf32>, vector<8x8xf32> -> vector<8x8xf32>
    %698 = arith.mulf %695, %695 : vector<8x4xf32>
    %cst_144 = arith.constant dense<0.000000e+00> : vector<8xf32>
    %699 = vector.multi_reduction <add>, %698, %cst_144 [1] : vector<8x4xf32> to vector<8xf32>
    %700 = vector.shape_cast %699 : vector<8xf32> to vector<8x1xf32>
    %701 = arith.mulf %696, %696 : vector<8x4xf32>
    %cst_145 = arith.constant dense<0.000000e+00> : vector<1x8xf32>
    %702 = tpu.matmul %159, %701, %cst_145 {dimension_numbers = #tpu.dot_dimension_numbers<[1], [1], [0], [0], [0, 0, 1, 0], [], []>} : vector<1x4xf32>, vector<8x4xf32>, vector<1x8xf32> -> vector<1x8xf32>
    %703 = vector.broadcast %700 : vector<8x1xf32> to vector<8x8xf32>
    %704 = arith.addf %694, %703 : vector<8x8xf32>
    %705 = vector.broadcast %702 : vector<1x8xf32> to vector<8x8xf32>
    %706 = arith.addf %704, %705 : vector<8x8xf32>
    %cst_146 = arith.constant 2.000000e+00 : f32
    %707 = vector.broadcast %cst_146 : f32 to vector<8x8xf32>
    %708 = arith.mulf %707, %697 : vector<8x8xf32>
    %709 = arith.subf %706, %708 : vector<8x8xf32>
    %710 = vector.extract_strided_slice %80 {offsets = [0, 12], sizes = [8, 4], strides = [1, 1]} : vector<8x16xf32> to vector<8x4xf32>
    %711 = vector.extract_strided_slice %119 {offsets = [0, 12], sizes = [8, 4], strides = [1, 1]} : vector<8x16xf32> to vector<8x4xf32>
    %cst_147 = arith.constant dense<0.000000e+00> : vector<8x8xf32>
    %712 = tpu.matmul %710, %711, %cst_147 {dimension_numbers = #tpu.dot_dimension_numbers<[1], [1], [0], [0], [0, 0, 1, 0], [], []>} : vector<8x4xf32>, vector<8x4xf32>, vector<8x8xf32> -> vector<8x8xf32>
    %713 = arith.mulf %710, %710 : vector<8x4xf32>
    %cst_148 = arith.constant dense<0.000000e+00> : vector<8xf32>
    %714 = vector.multi_reduction <add>, %713, %cst_148 [1] : vector<8x4xf32> to vector<8xf32>
    %715 = vector.shape_cast %714 : vector<8xf32> to vector<8x1xf32>
    %716 = arith.mulf %711, %711 : vector<8x4xf32>
    %cst_149 = arith.constant dense<0.000000e+00> : vector<1x8xf32>
    %717 = tpu.matmul %159, %716, %cst_149 {dimension_numbers = #tpu.dot_dimension_numbers<[1], [1], [0], [0], [0, 0, 1, 0], [], []>} : vector<1x4xf32>, vector<8x4xf32>, vector<1x8xf32> -> vector<1x8xf32>
    %718 = vector.broadcast %715 : vector<8x1xf32> to vector<8x8xf32>
    %719 = arith.addf %709, %718 : vector<8x8xf32>
    %720 = vector.broadcast %717 : vector<1x8xf32> to vector<8x8xf32>
    %721 = arith.addf %719, %720 : vector<8x8xf32>
    %cst_150 = arith.constant 2.000000e+00 : f32
    %722 = vector.broadcast %cst_150 : f32 to vector<8x8xf32>
    %723 = arith.mulf %722, %712 : vector<8x8xf32>
    %724 = arith.subf %721, %723 : vector<8x8xf32>
    %c0_151 = arith.constant 0 : index
    %c3 = arith.constant 3 : index
    %725 = memref.load %arg24[%c0_151, %c3] : memref<1x4xf32, #tpu.memory_space<smem>>
    %c0_152 = arith.constant 0 : index
    %c3_153 = arith.constant 3 : index
    %726 = memref.load %arg25[%c0_152, %c3_153] : memref<1x4xf32, #tpu.memory_space<smem>>
    %727 = vector.broadcast %725 : f32 to vector<8x8xf32>
    %728 = arith.mulf %727, %724 : vector<8x8xf32>
    %729 = arith.addf %678, %728 : vector<8x8xf32>
    %730 = vector.extract_strided_slice %41 {offsets = [0, 24], sizes = [8, 8], strides = [1, 1]} : vector<8x32xf32> to vector<8x8xf32>
    %731 = arith.addf %729, %730 : vector<8x8xf32>
    %732 = vector.broadcast %726 : f32 to vector<8x8xf32>
    %733 = arith.addf %731, %732 : vector<8x8xf32>
    %cst_154 = arith.constant dense<0xFF800000> : vector<8xf32>
    %734 = vector.multi_reduction <maximumf>, %733, %cst_154 [1] : vector<8x8xf32> to vector<8xf32>
    %735 = vector.shape_cast %734 : vector<8xf32> to vector<8x1xf32>
    %736 = vector.broadcast %735 : vector<8x1xf32> to vector<8x8xf32>
    %737 = arith.subf %733, %736 : vector<8x8xf32>
    %738 = math.exp %737 : vector<8x8xf32>
    %cst_155 = arith.constant dense<0.000000e+00> : vector<8xf32>
    %739 = vector.multi_reduction <add>, %738, %cst_155 [1] : vector<8x8xf32> to vector<8xf32>
    %740 = vector.shape_cast %739 : vector<8xf32> to vector<8x1xf32>
    %741 = tpu.reciprocal %740 {approx = true} : vector<8x1xf32> -> vector<8x1xf32>
    %742 = vector.broadcast %741 : vector<8x1xf32> to vector<8x8xf32>
    %743 = arith.mulf %738, %742 : vector<8x8xf32>
    %cst_156 = arith.constant dense<0.000000e+00> : vector<8x8xf32>
    %744 = tpu.matmul %743, %675, %cst_156 {dimension_numbers = #tpu.dot_dimension_numbers<[1], [0], [0], [1], [0, 0, 1, 1], [], []>} : vector<8x8xf32>, vector<8x8xf32>, vector<8x8xf32> -> vector<8x8xf32>
    %c0_157 = arith.constant 0 : index
    %c24 = arith.constant 24 : index
    %745 = vector.load %arg27[%c0_157, %c24] : memref<8x160xf32, #tpu.memory_space<vmem>>, vector<8x8xf32>
    tpu.vector_store %arg27[%c0_157, %c24], %744 {strides = array<i32>} : memref<8x160xf32, #tpu.memory_space<vmem>>, vector<8x8xf32>,
    %746 = vector.extract_strided_slice %132 {offsets = [0, 12], sizes = [8, 4], strides = [1, 1]} : vector<8x16xf32> to vector<8x4xf32>
    %cst_158 = arith.constant dense<0.000000e+00> : vector<8x4xf32>
    %747 = tpu.matmul %743, %746, %cst_158 {dimension_numbers = #tpu.dot_dimension_numbers<[1], [0], [0], [1], [0, 0, 1, 1], [], []>} : vector<8x8xf32>, vector<8x4xf32>, vector<8x4xf32> -> vector<8x4xf32>
    %748 = vector.extract_strided_slice %145 {offsets = [0, 12], sizes = [8, 4], strides = [1, 1]} : vector<8x16xf32> to vector<8x4xf32>
    %cst_159 = arith.constant dense<0.000000e+00> : vector<8x4xf32>
    %749 = tpu.matmul %743, %748, %cst_159 {dimension_numbers = #tpu.dot_dimension_numbers<[1], [0], [0], [1], [0, 0, 1, 1], [], []>} : vector<8x8xf32>, vector<8x4xf32>, vector<8x4xf32> -> vector<8x4xf32>
    %750 = vector.extract_strided_slice %158 {offsets = [0, 12], sizes = [8, 4], strides = [1, 1]} : vector<8x16xf32> to vector<8x4xf32>
    %cst_160 = arith.constant dense<0.000000e+00> : vector<8x4xf32>
    %751 = tpu.matmul %743, %750, %cst_160 {dimension_numbers = #tpu.dot_dimension_numbers<[1], [0], [0], [1], [0, 0, 1, 1], [], []>} : vector<8x8xf32>, vector<8x4xf32>, vector<8x4xf32> -> vector<8x4xf32>
    %cst_161 = arith.constant 9.99999993E-9 : f32
    %752 = vector.broadcast %cst_161 : f32 to vector<8x4xf32>
    %cst_162 = arith.constant 0.000000e+00 : f32
    %753 = vector.broadcast %cst_162 : f32 to vector<8x4xf32>
    %754 = vector.broadcast %17 : vector<8x1xf32> to vector<8x4xf32>
    %755 = arith.subf %747, %754 : vector<8x4xf32>
    %756 = vector.broadcast %8 : vector<8x1xf32> to vector<8x4xf32>
    %757 = arith.mulf %755, %756 : vector<8x4xf32>
    %758 = arith.addf %753, %757 : vector<8x4xf32>
    %759 = vector.broadcast %18 : vector<8x1xf32> to vector<8x4xf32>
    %760 = arith.subf %749, %759 : vector<8x4xf32>
    %761 = vector.broadcast %9 : vector<8x1xf32> to vector<8x4xf32>
    %762 = arith.mulf %760, %761 : vector<8x4xf32>
    %763 = arith.addf %758, %762 : vector<8x4xf32>
    %764 = vector.broadcast %19 : vector<8x1xf32> to vector<8x4xf32>
    %765 = arith.subf %751, %764 : vector<8x4xf32>
    %766 = vector.broadcast %10 : vector<8x1xf32> to vector<8x4xf32>
    %767 = arith.mulf %765, %766 : vector<8x4xf32>
    %768 = arith.addf %763, %767 : vector<8x4xf32>
    %c0_163 = arith.constant 0 : index
    %c68 = arith.constant 68 : index
    %769 = vector.load %arg27[%c0_163, %c68] : memref<8x160xf32, #tpu.memory_space<vmem>>, vector<8x4xf32>
    tpu.vector_store %arg27[%c0_163, %c68], %768 {strides = array<i32>} : memref<8x160xf32, #tpu.memory_space<vmem>>, vector<8x4xf32>,
    %770 = arith.mulf %768, %768 : vector<8x4xf32>
    %771 = arith.addf %752, %770 : vector<8x4xf32>
    %cst_164 = arith.constant 0.000000e+00 : f32
    %772 = vector.broadcast %cst_164 : f32 to vector<8x4xf32>
    %773 = vector.broadcast %17 : vector<8x1xf32> to vector<8x4xf32>
    %774 = arith.subf %747, %773 : vector<8x4xf32>
    %775 = vector.broadcast %11 : vector<8x1xf32> to vector<8x4xf32>
    %776 = arith.mulf %774, %775 : vector<8x4xf32>
    %777 = arith.addf %772, %776 : vector<8x4xf32>
    %778 = vector.broadcast %18 : vector<8x1xf32> to vector<8x4xf32>
    %779 = arith.subf %749, %778 : vector<8x4xf32>
    %780 = vector.broadcast %12 : vector<8x1xf32> to vector<8x4xf32>
    %781 = arith.mulf %779, %780 : vector<8x4xf32>
    %782 = arith.addf %777, %781 : vector<8x4xf32>
    %783 = vector.broadcast %19 : vector<8x1xf32> to vector<8x4xf32>
    %784 = arith.subf %751, %783 : vector<8x4xf32>
    %785 = vector.broadcast %13 : vector<8x1xf32> to vector<8x4xf32>
    %786 = arith.mulf %784, %785 : vector<8x4xf32>
    %787 = arith.addf %782, %786 : vector<8x4xf32>
    %c0_165 = arith.constant 0 : index
    %c72 = arith.constant 72 : index
    %788 = vector.load %arg27[%c0_165, %c72] : memref<8x160xf32, #tpu.memory_space<vmem>>, vector<8x4xf32>
    tpu.vector_store %arg27[%c0_165, %c72], %787 {strides = array<i32>} : memref<8x160xf32, #tpu.memory_space<vmem>>, vector<8x4xf32>,
    %789 = arith.mulf %787, %787 : vector<8x4xf32>
    %790 = arith.addf %771, %789 : vector<8x4xf32>
    %cst_166 = arith.constant 0.000000e+00 : f32
    %791 = vector.broadcast %cst_166 : f32 to vector<8x4xf32>
    %792 = vector.broadcast %17 : vector<8x1xf32> to vector<8x4xf32>
    %793 = arith.subf %747, %792 : vector<8x4xf32>
    %794 = vector.broadcast %14 : vector<8x1xf32> to vector<8x4xf32>
    %795 = arith.mulf %793, %794 : vector<8x4xf32>
    %796 = arith.addf %791, %795 : vector<8x4xf32>
    %797 = vector.broadcast %18 : vector<8x1xf32> to vector<8x4xf32>
    %798 = arith.subf %749, %797 : vector<8x4xf32>
    %799 = vector.broadcast %15 : vector<8x1xf32> to vector<8x4xf32>
    %800 = arith.mulf %798, %799 : vector<8x4xf32>
    %801 = arith.addf %796, %800 : vector<8x4xf32>
    %802 = vector.broadcast %19 : vector<8x1xf32> to vector<8x4xf32>
    %803 = arith.subf %751, %802 : vector<8x4xf32>
    %804 = vector.broadcast %16 : vector<8x1xf32> to vector<8x4xf32>
    %805 = arith.mulf %803, %804 : vector<8x4xf32>
    %806 = arith.addf %801, %805 : vector<8x4xf32>
    %c0_167 = arith.constant 0 : index
    %c76 = arith.constant 76 : index
    %807 = vector.load %arg27[%c0_167, %c76] : memref<8x160xf32, #tpu.memory_space<vmem>>, vector<8x4xf32>
    tpu.vector_store %arg27[%c0_167, %c76], %806 {strides = array<i32>} : memref<8x160xf32, #tpu.memory_space<vmem>>, vector<8x4xf32>,
    %808 = arith.mulf %806, %806 : vector<8x4xf32>
    %809 = arith.addf %790, %808 : vector<8x4xf32>
    %810 = math.sqrt %809 : vector<8x4xf32>
    %c0_168 = arith.constant 0 : index
    %c92 = arith.constant 92 : index
    %811 = vector.load %arg27[%c0_168, %c92] : memref<8x160xf32, #tpu.memory_space<vmem>>, vector<8x4xf32>
    tpu.vector_store %arg27[%c0_168, %c92], %810 {strides = array<i32>} : memref<8x160xf32, #tpu.memory_space<vmem>>, vector<8x4xf32>,
    %812 = vector.extract_strided_slice %743 {offsets = [0, 0], sizes = [8, 1], strides = [1, 1]} : vector<8x8xf32> to vector<8x1xf32>
    %813 = vector.broadcast %812 : vector<8x1xf32> to vector<8x16xf32>
    %814 = arith.mulf %813, %20 : vector<8x16xf32>
    %815 = vector.extract_strided_slice %743 {offsets = [0, 1], sizes = [8, 1], strides = [1, 1]} : vector<8x8xf32> to vector<8x1xf32>
    %816 = vector.broadcast %815 : vector<8x1xf32> to vector<8x16xf32>
    %817 = arith.mulf %816, %21 : vector<8x16xf32>
    %818 = arith.addf %814, %817 : vector<8x16xf32>
    %819 = vector.extract_strided_slice %743 {offsets = [0, 2], sizes = [8, 1], strides = [1, 1]} : vector<8x8xf32> to vector<8x1xf32>
    %820 = vector.broadcast %819 : vector<8x1xf32> to vector<8x16xf32>
    %821 = arith.mulf %820, %22 : vector<8x16xf32>
    %822 = arith.addf %818, %821 : vector<8x16xf32>
    %823 = vector.extract_strided_slice %743 {offsets = [0, 3], sizes = [8, 1], strides = [1, 1]} : vector<8x8xf32> to vector<8x1xf32>
    %824 = vector.broadcast %823 : vector<8x1xf32> to vector<8x16xf32>
    %825 = arith.mulf %824, %23 : vector<8x16xf32>
    %826 = arith.addf %822, %825 : vector<8x16xf32>
    %827 = vector.extract_strided_slice %743 {offsets = [0, 4], sizes = [8, 1], strides = [1, 1]} : vector<8x8xf32> to vector<8x1xf32>
    %828 = vector.broadcast %827 : vector<8x1xf32> to vector<8x16xf32>
    %829 = arith.mulf %828, %24 : vector<8x16xf32>
    %830 = arith.addf %826, %829 : vector<8x16xf32>
    %831 = vector.extract_strided_slice %743 {offsets = [0, 5], sizes = [8, 1], strides = [1, 1]} : vector<8x8xf32> to vector<8x1xf32>
    %832 = vector.broadcast %831 : vector<8x1xf32> to vector<8x16xf32>
    %833 = arith.mulf %832, %25 : vector<8x16xf32>
    %834 = arith.addf %830, %833 : vector<8x16xf32>
    %835 = vector.extract_strided_slice %743 {offsets = [0, 6], sizes = [8, 1], strides = [1, 1]} : vector<8x8xf32> to vector<8x1xf32>
    %836 = vector.broadcast %835 : vector<8x1xf32> to vector<8x16xf32>
    %837 = arith.mulf %836, %26 : vector<8x16xf32>
    %838 = arith.addf %834, %837 : vector<8x16xf32>
    %839 = vector.extract_strided_slice %743 {offsets = [0, 7], sizes = [8, 1], strides = [1, 1]} : vector<8x8xf32> to vector<8x1xf32>
    %840 = vector.broadcast %839 : vector<8x1xf32> to vector<8x16xf32>
    %841 = arith.mulf %840, %27 : vector<8x16xf32>
    %842 = arith.addf %838, %841 : vector<8x16xf32>
    %c0_169 = arith.constant 0 : index
    %c144 = arith.constant 144 : index
    %843 = vector.load %arg27[%c0_169, %c144] : memref<8x160xf32, #tpu.memory_space<vmem>>, vector<8x16xf32>
    tpu.vector_store %arg27[%c0_169, %c144], %842 {strides = array<i32>} : memref<8x160xf32, #tpu.memory_space<vmem>>, vector<8x16xf32>,
    %c0_170 = arith.constant 0 : index
    %c0_171 = arith.constant 0 : index
    %844 = vector.load %arg27[%c0_170, %c0_171] : memref<8x160xf32, #tpu.memory_space<vmem>>, vector<8x160xf32>
    %c0_172 = arith.constant 0 : index
    %c0_173 = arith.constant 0 : index
    %845 = vector.load %arg12[%c0_172, %c0_173] : memref<160x32xf32, #tpu.memory_space<vmem>>, vector<160x32xf32>
    %cst_174 = arith.constant dense<0.000000e+00> : vector<8x32xf32>
    %846 = tpu.matmul %844, %845, %cst_174 {dimension_numbers = #tpu.dot_dimension_numbers<[1], [0], [0], [1], [0, 0, 1, 1], [], []>} : vector<8x160xf32>, vector<160x32xf32>, vector<8x32xf32> -> vector<8x32xf32>
    %c0_175 = arith.constant 0 : index
    %c0_176 = arith.constant 0 : index
    %847 = vector.load %arg13[%c0_175, %c0_176] : memref<1x32xf32, #tpu.memory_space<vmem>>, vector<1x32xf32>
    %848 = vector.broadcast %847 : vector<1x32xf32> to vector<8x32xf32>
    %849 = arith.addf %846, %848 : vector<8x32xf32>
    %850 = arith.addf %849, %1 : vector<8x32xf32>
    %c0_177 = arith.constant 0 : index
    %c0_178 = arith.constant 0 : index
    %851 = vector.load %arg14[%c0_177, %c0_178] : memref<1x32xf32, #tpu.memory_space<vmem>>, vector<1x32xf32>
    %c0_179 = arith.constant 0 : index
    %c0_180 = arith.constant 0 : index
    %852 = vector.load %arg15[%c0_179, %c0_180] : memref<1x32xf32, #tpu.memory_space<vmem>>, vector<1x32xf32>
    %cst_181 = arith.constant dense<0.000000e+00> : vector<8xf32>
    %853 = vector.multi_reduction <add>, %850, %cst_181 [1] : vector<8x32xf32> to vector<8xf32>
    %854 = vector.shape_cast %853 : vector<8xf32> to vector<8x1xf32>
    %cst_182 = arith.constant 3.200000e+01 : f32
    %855 = vector.broadcast %cst_182 : f32 to vector<8x1xf32>
    %856 = arith.divf %854, %855 : vector<8x1xf32>
    %857 = vector.broadcast %856 : vector<8x1xf32> to vector<8x32xf32>
    %858 = arith.subf %850, %857 : vector<8x32xf32>
    %859 = arith.mulf %858, %858 : vector<8x32xf32>
    %cst_183 = arith.constant dense<0.000000e+00> : vector<8xf32>
    %860 = vector.multi_reduction <add>, %859, %cst_183 [1] : vector<8x32xf32> to vector<8xf32>
    %861 = vector.shape_cast %860 : vector<8xf32> to vector<8x1xf32>
    %cst_184 = arith.constant 3.200000e+01 : f32
    %862 = vector.broadcast %cst_184 : f32 to vector<8x1xf32>
    %863 = arith.divf %861, %862 : vector<8x1xf32>
    %864 = vector.broadcast %856 : vector<8x1xf32> to vector<8x32xf32>
    %865 = arith.subf %850, %864 : vector<8x32xf32>
    %cst_185 = arith.constant 9.99999974E-6 : f32
    %866 = vector.broadcast %cst_185 : f32 to vector<8x1xf32>
    %867 = arith.addf %863, %866 : vector<8x1xf32>
    %868 = math.rsqrt %867 : vector<8x1xf32>
    %869 = vector.broadcast %868 : vector<8x1xf32> to vector<8x32xf32>
    %870 = arith.mulf %865, %869 : vector<8x32xf32>
    %871 = vector.broadcast %851 : vector<1x32xf32> to vector<8x32xf32>
    %872 = arith.mulf %870, %871 : vector<8x32xf32>
    %873 = vector.broadcast %852 : vector<1x32xf32> to vector<8x32xf32>
    %874 = arith.addf %872, %873 : vector<8x32xf32>
    %c0_186 = arith.constant 0 : index
    %c0_187 = arith.constant 0 : index
    %875 = vector.load %arg16[%c0_186, %c0_187] : memref<32x32xf32, #tpu.memory_space<vmem>>, vector<32x32xf32>
    %cst_188 = arith.constant dense<0.000000e+00> : vector<8x32xf32>
    %876 = tpu.matmul %874, %875, %cst_188 {dimension_numbers = #tpu.dot_dimension_numbers<[1], [0], [0], [1], [0, 0, 1, 1], [], []>} : vector<8x32xf32>, vector<32x32xf32>, vector<8x32xf32> -> vector<8x32xf32>
    %c0_189 = arith.constant 0 : index
    %c0_190 = arith.constant 0 : index
    %877 = vector.load %arg17[%c0_189, %c0_190] : memref<1x32xf32, #tpu.memory_space<vmem>>, vector<1x32xf32>
    %878 = vector.broadcast %877 : vector<1x32xf32> to vector<8x32xf32>
    %879 = arith.addf %876, %878 : vector<8x32xf32>
    %cst_191 = arith.constant 0.000000e+00 : f32
    %880 = vector.broadcast %cst_191 : f32 to vector<8x32xf32>
    %881 = arith.maximumf %879, %880 : vector<8x32xf32>
    %c0_192 = arith.constant 0 : index
    %c0_193 = arith.constant 0 : index
    %882 = vector.load %arg18[%c0_192, %c0_193] : memref<32x32xf32, #tpu.memory_space<vmem>>, vector<32x32xf32>
    %cst_194 = arith.constant dense<0.000000e+00> : vector<8x32xf32>
    %883 = tpu.matmul %881, %882, %cst_194 {dimension_numbers = #tpu.dot_dimension_numbers<[1], [0], [0], [1], [0, 0, 1, 1], [], []>} : vector<8x32xf32>, vector<32x32xf32>, vector<8x32xf32> -> vector<8x32xf32>
    %c0_195 = arith.constant 0 : index
    %c0_196 = arith.constant 0 : index
    %884 = vector.load %arg19[%c0_195, %c0_196] : memref<1x32xf32, #tpu.memory_space<vmem>>, vector<1x32xf32>
    %885 = vector.broadcast %884 : vector<1x32xf32> to vector<8x32xf32>
    %886 = arith.addf %883, %885 : vector<8x32xf32>
    %cst_197 = arith.constant 0.000000e+00 : f32
    %887 = vector.broadcast %cst_197 : f32 to vector<8x32xf32>
    %888 = arith.maximumf %886, %887 : vector<8x32xf32>
    %c0_198 = arith.constant 0 : index
    %c0_199 = arith.constant 0 : index
    %889 = vector.load %arg20[%c0_198, %c0_199] : memref<32x32xf32, #tpu.memory_space<vmem>>, vector<32x32xf32>
    %cst_200 = arith.constant dense<0.000000e+00> : vector<8x32xf32>
    %890 = tpu.matmul %888, %889, %cst_200 {dimension_numbers = #tpu.dot_dimension_numbers<[1], [0], [0], [1], [0, 0, 1, 1], [], []>} : vector<8x32xf32>, vector<32x32xf32>, vector<8x32xf32> -> vector<8x32xf32>
    %c0_201 = arith.constant 0 : index
    %c0_202 = arith.constant 0 : index
    %891 = vector.load %arg21[%c0_201, %c0_202] : memref<1x32xf32, #tpu.memory_space<vmem>>, vector<1x32xf32>
    %892 = vector.broadcast %891 : vector<1x32xf32> to vector<8x32xf32>
    %893 = arith.addf %890, %892 : vector<8x32xf32>
    %894 = arith.addf %893, %874 : vector<8x32xf32>
    %c0_203 = arith.constant 0 : index
    %c0_204 = arith.constant 0 : index
    %895 = vector.load %arg22[%c0_203, %c0_204] : memref<1x32xf32, #tpu.memory_space<vmem>>, vector<1x32xf32>
    %c0_205 = arith.constant 0 : index
    %c0_206 = arith.constant 0 : index
    %896 = vector.load %arg23[%c0_205, %c0_206] : memref<1x32xf32, #tpu.memory_space<vmem>>, vector<1x32xf32>
    %cst_207 = arith.constant dense<0.000000e+00> : vector<8xf32>
    %897 = vector.multi_reduction <add>, %894, %cst_207 [1] : vector<8x32xf32> to vector<8xf32>
    %898 = vector.shape_cast %897 : vector<8xf32> to vector<8x1xf32>
    %cst_208 = arith.constant 3.200000e+01 : f32
    %899 = vector.broadcast %cst_208 : f32 to vector<8x1xf32>
    %900 = arith.divf %898, %899 : vector<8x1xf32>
    %901 = vector.broadcast %900 : vector<8x1xf32> to vector<8x32xf32>
    %902 = arith.subf %894, %901 : vector<8x32xf32>
    %903 = arith.mulf %902, %902 : vector<8x32xf32>
    %cst_209 = arith.constant dense<0.000000e+00> : vector<8xf32>
    %904 = vector.multi_reduction <add>, %903, %cst_209 [1] : vector<8x32xf32> to vector<8xf32>
    %905 = vector.shape_cast %904 : vector<8xf32> to vector<8x1xf32>
    %cst_210 = arith.constant 3.200000e+01 : f32
    %906 = vector.broadcast %cst_210 : f32 to vector<8x1xf32>
    %907 = arith.divf %905, %906 : vector<8x1xf32>
    %908 = vector.broadcast %900 : vector<8x1xf32> to vector<8x32xf32>
    %909 = arith.subf %894, %908 : vector<8x32xf32>
    %cst_211 = arith.constant 9.99999974E-6 : f32
    %910 = vector.broadcast %cst_211 : f32 to vector<8x1xf32>
    %911 = arith.addf %907, %910 : vector<8x1xf32>
    %912 = math.rsqrt %911 : vector<8x1xf32>
    %913 = vector.broadcast %912 : vector<8x1xf32> to vector<8x32xf32>
    %914 = arith.mulf %909, %913 : vector<8x32xf32>
    %915 = vector.broadcast %895 : vector<1x32xf32> to vector<8x32xf32>
    %916 = arith.mulf %914, %915 : vector<8x32xf32>
    %917 = vector.broadcast %896 : vector<1x32xf32> to vector<8x32xf32>
    %918 = arith.addf %916, %917 : vector<8x32xf32>
    %c0_212 = arith.constant 0 : index
    %c0_213 = arith.constant 0 : index
    %c0_214 = arith.constant 0 : index
    %919 = vector.load %arg26[%c0_212, %c0_213, %c0_214] : memref<1x8x32xf32, #tpu.memory_space<vmem>>, vector<1x8x32xf32>
    %920 = vector.shape_cast %919 : vector<1x8x32xf32> to vector<8x32xf32>
    %921 = vector.shape_cast %918 : vector<8x32xf32> to vector<1x8x32xf32>
    tpu.vector_store %arg26[%c0_212, %c0_213, %c0_214], %921 {strides = array<i32>} : memref<1x8x32xf32, #tpu.memory_space<vmem>>, vector<1x8x32xf32>,
    return
  }
  func.func @transform_0(%arg0: i32) -> (i32, i32, i32) {
    %c0_i32 = arith.constant 0 : i32
    %c0_i32_0 = arith.constant 0 : i32
    %c0_i32_1 = arith.constant 0 : i32
    return %arg0, %c0_i32, %c0_i32_0 : i32, i32, i32
  }
  func.func @transform_1(%arg0: i32) -> (i32, i32, i32) {
    %c0_i32 = arith.constant 0 : i32
    %c0_i32_0 = arith.constant 0 : i32
    %c0_i32_1 = arith.constant 0 : i32
    return %arg0, %c0_i32, %c0_i32_0 : i32, i32, i32
  }
  func.func @transform_2(%arg0: i32) -> (i32, i32, i32) {
    %c0_i32 = arith.constant 0 : i32
    %c0_i32_0 = arith.constant 0 : i32
    %c0_i32_1 = arith.constant 0 : i32
    return %arg0, %c0_i32, %c0_i32_0 : i32, i32, i32
  }
  func.func @transform_3(%arg0: i32) -> (i32, i32, i32) {
    %c0_i32 = arith.constant 0 : i32
    %c0_i32_0 = arith.constant 0 : i32
    %c0_i32_1 = arith.constant 0 : i32
    return %arg0, %c0_i32, %c0_i32_0 : i32, i32, i32
  }
  func.func @transform_4(%arg0: i32) -> (i32, i32) {
    %c0_i32 = arith.constant 0 : i32
    %c0_i32_0 = arith.constant 0 : i32
    %c0_i32_1 = arith.constant 0 : i32
    return %c0_i32, %c0_i32_0 : i32, i32
  }
  func.func @transform_5(%arg0: i32) -> (i32, i32) {
    %c0_i32 = arith.constant 0 : i32
    %c0_i32_0 = arith.constant 0 : i32
    %c0_i32_1 = arith.constant 0 : i32
    return %c0_i32, %c0_i32_0 : i32, i32
  }
  func.func @transform_6(%arg0: i32) -> (i32, i32) {
    %c0_i32 = arith.constant 0 : i32
    %c0_i32_0 = arith.constant 0 : i32
    %c0_i32_1 = arith.constant 0 : i32
    return %c0_i32, %c0_i32_0 : i32, i32
  }
  func.func @transform_7(%arg0: i32) -> (i32, i32) {
    %c0_i32 = arith.constant 0 : i32
    %c0_i32_0 = arith.constant 0 : i32
    %c0_i32_1 = arith.constant 0 : i32
    return %c0_i32, %c0_i32_0 : i32, i32
  }
  func.func @transform_8(%arg0: i32) -> (i32, i32) {
    %c0_i32 = arith.constant 0 : i32
    %c0_i32_0 = arith.constant 0 : i32
    %c0_i32_1 = arith.constant 0 : i32
    return %c0_i32, %c0_i32_0 : i32, i32
  }
  func.func @transform_9(%arg0: i32) -> (i32, i32) {
    %c0_i32 = arith.constant 0 : i32
    %c0_i32_0 = arith.constant 0 : i32
    %c0_i32_1 = arith.constant 0 : i32
    return %c0_i32, %c0_i32_0 : i32, i32
  }
  func.func @transform_10(%arg0: i32) -> (i32, i32) {
    %c0_i32 = arith.constant 0 : i32
    %c0_i32_0 = arith.constant 0 : i32
    %c0_i32_1 = arith.constant 0 : i32
    return %c0_i32, %c0_i32_0 : i32, i32
  }
  func.func @transform_11(%arg0: i32) -> (i32, i32) {
    %c0_i32 = arith.constant 0 : i32
    %c0_i32_0 = arith.constant 0 : i32
    %c0_i32_1 = arith.constant 0 : i32
    return %c0_i32, %c0_i32_0 : i32, i32
  }
  func.func @transform_12(%arg0: i32) -> (i32, i32) {
    %c0_i32 = arith.constant 0 : i32
    %c0_i32_0 = arith.constant 0 : i32
    %c0_i32_1 = arith.constant 0 : i32
    return %c0_i32, %c0_i32_0 : i32, i32
  }
  func.func @transform_13(%arg0: i32) -> (i32, i32) {
    %c0_i32 = arith.constant 0 : i32
    %c0_i32_0 = arith.constant 0 : i32
    %c0_i32_1 = arith.constant 0 : i32
    return %c0_i32, %c0_i32_0 : i32, i32
  }
  func.func @transform_14(%arg0: i32) -> (i32, i32) {
    %c0_i32 = arith.constant 0 : i32
    %c0_i32_0 = arith.constant 0 : i32
    %c0_i32_1 = arith.constant 0 : i32
    return %c0_i32, %c0_i32_0 : i32, i32
  }
  func.func @transform_15(%arg0: i32) -> (i32, i32) {
    %c0_i32 = arith.constant 0 : i32
    %c0_i32_0 = arith.constant 0 : i32
    %c0_i32_1 = arith.constant 0 : i32
    return %c0_i32, %c0_i32_0 : i32, i32
  }
  func.func @transform_16(%arg0: i32) -> (i32, i32) {
    %c0_i32 = arith.constant 0 : i32
    %c0_i32_0 = arith.constant 0 : i32
    %c0_i32_1 = arith.constant 0 : i32
    return %c0_i32, %c0_i32_0 : i32, i32
  }
  func.func @transform_17(%arg0: i32) -> (i32, i32) {
    %c0_i32 = arith.constant 0 : i32
    %c0_i32_0 = arith.constant 0 : i32
    %c0_i32_1 = arith.constant 0 : i32
    return %c0_i32, %c0_i32_0 : i32, i32
  }
  func.func @transform_18(%arg0: i32) -> (i32, i32) {
    %c0_i32 = arith.constant 0 : i32
    %c0_i32_0 = arith.constant 0 : i32
    %c0_i32_1 = arith.constant 0 : i32
    return %c0_i32, %c0_i32_0 : i32, i32
  }
  func.func @transform_19(%arg0: i32) -> (i32, i32) {
    %c0_i32 = arith.constant 0 : i32
    %c0_i32_0 = arith.constant 0 : i32
    %c0_i32_1 = arith.constant 0 : i32
    return %c0_i32, %c0_i32_0 : i32, i32
  }
  func.func @transform_20(%arg0: i32) -> (i32, i32) {
    %c0_i32 = arith.constant 0 : i32
    %c0_i32_0 = arith.constant 0 : i32
    %c0_i32_1 = arith.constant 0 : i32
    return %c0_i32, %c0_i32_0 : i32, i32
  }
  func.func @transform_21(%arg0: i32) -> (i32, i32) {
    %c0_i32 = arith.constant 0 : i32
    %c0_i32_0 = arith.constant 0 : i32
    %c0_i32_1 = arith.constant 0 : i32
    return %c0_i32, %c0_i32_0 : i32, i32
  }
  func.func @transform_22(%arg0: i32) -> (i32, i32) {
    %c0_i32 = arith.constant 0 : i32
    %c0_i32_0 = arith.constant 0 : i32
    %c0_i32_1 = arith.constant 0 : i32
    return %c0_i32, %c0_i32_0 : i32, i32
  }
  func.func @transform_23(%arg0: i32) -> (i32, i32) {
    %c0_i32 = arith.constant 0 : i32
    %c0_i32_0 = arith.constant 0 : i32
    %c0_i32_1 = arith.constant 0 : i32
    return %c0_i32, %c0_i32_0 : i32, i32
  }
  func.func @transform_24(%arg0: i32) -> (i32, i32) {
    %c0_i32 = arith.constant 0 : i32
    %c0_i32_0 = arith.constant 0 : i32
    %c0_i32_1 = arith.constant 0 : i32
    return %c0_i32, %c0_i32_0 : i32, i32
  }
  func.func @transform_25(%arg0: i32) -> (i32, i32, i32) {
    %c0_i32 = arith.constant 0 : i32
    %c0_i32_0 = arith.constant 0 : i32
    %c0_i32_1 = arith.constant 0 : i32
    return %arg0, %c0_i32, %c0_i32_0 : i32, i32, i32
  }
}

</mosaic_0001>

<bundles_post_ra>
// kernel: ipa_block_pallas.1
= control target key start
LH: loop header
LB: loop body
LE: loop exit
PB: predicated region body
PF: predicated region fallthrough
CT: control target
= control target key end

     0   :  { %s8736_s0 = inlined_call_operand.vmem [shape: f32[2,8,32], index: 0, kind: input, shape index: {}]   ;;  %s8737_s1 = inlined_call_operand.vmem [shape: f32[2,8,128], index: 1, kind: input, shape index: {}]   ;;  %s8738_s2 = inlined_call_operand.vmem [shape: f32[2,8,9], index: 2, kind: input, shape index: {}]   ;;  %s8739_s3 = inlined_call_operand.vmem [shape: f32[2,8,3], index: 3, kind: input, shape index: {}]   ;;  %s8740_s4 = inlined_call_operand.vmem [shape: f32[32,32], index: 4, kind: input, shape index: {}]   ;;  %s8741_s5 = inlined_call_operand.vmem [shape: f32[32,32], index: 5, kind: input, shape index: {}]   ;;  %s8742_s6 = inlined_call_operand.vmem [shape: f32[32,32], index: 6, kind: input, shape index: {}]   ;;  %s8743_s7 = inlined_call_operand.vmem [shape: f32[32,48], index: 7, kind: input, shape index: {}]   ;;  %s8744_s8 = inlined_call_operand.vmem [shape: f32[32,48], index: 8, kind: input, shape index: {}]   ;;  %s8745_s9 = inlined_call_operand.vmem [shape: f32[32,48], index: 9, kind: input, shape index: {}]   ;;  %s8746_s10 = inlined_call_operand.vmem [shape: f32[128,32], index: 10, kind: input, shape index: {}]   ;;  %s8747_s11 = inlined_call_operand.vmem [shape: f32[160,32], index: 11, kind: input, shape index: {}]   ;;  %s8748_s12 = inlined_call_operand.vmem [shape: f32[1,32], index: 12, kind: input, shape index: {}]   ;;  %s8749_s13 = inlined_call_operand.vmem [shape: f32[1,32], index: 13, kind: input, shape index: {}]   ;;  %s8750_s14 = inlined_call_operand.vmem [shape: f32[1,32], index: 14, kind: input, shape index: {}]   ;;  %s8751_s15 = inlined_call_operand.vmem [shape: f32[32,32], index: 15, kind: input, shape index: {}]   ;;  %s8752_s16 = inlined_call_operand.vmem [shape: f32[1,32], index: 16, kind: input, shape index: {}]   ;;  %s8753_s17 = inlined_call_operand.vmem [shape: f32[32,32], index: 17, kind: input, shape index: {}]   ;;  %s8754_s18 = inlined_call_operand.vmem [shape: f32[1,32], index: 18, kind: input, shape index: {}]   ;;  %s8755_s19 = inlined_call_operand.vmem [shape: f32[32,32], index: 19, kind: input, shape index: {}]   ;;  %s8756_s20 = inlined_call_operand.vmem [shape: f32[1,32], index: 20, kind: input, shape index: {}]   ;;  %s8757_s21 = inlined_call_operand.vmem [shape: f32[1,32], index: 21, kind: input, shape index: {}]   ;;  %s8758_s22 = inlined_call_operand.vmem [shape: f32[1,32], index: 22, kind: input, shape index: {}]   ;;  %s8759_s23 = inlined_call_operand.vmem [shape: f32[1,4], index: 23, kind: input, shape index: {}]   ;;  %s8760_s24 = inlined_call_operand.vmem [shape: f32[1,4], index: 24, kind: input, shape index: {}]   ;;  %s8761_s25 = inlined_call_operand.hbm [shape: f32[2,8,32], index: 25, kind: output, shape index: {}]  }
   0x1   :  { %8803 = sst [smem:[#allocation18_spill]] %s8736_s0 }
   0x2   :  { %8804 = sst [smem:[#allocation19_spill]] %s8737_s1 }
   0x3   :  { %8805 = sst [smem:[#allocation20_spill]] %s8738_s2 }
   0x4   :  { %8806 = sst [smem:[#allocation21_spill]] %s8739_s3 }
   0x5   :  { %8807 = sst [smem:[#allocation22_spill]] %s8740_s4 }
   0x6   :  { %8808 = sst [smem:[#allocation23_spill]] %s8741_s5 }
   0x7   :  { %8809 = sst [smem:[#allocation24_spill]] %s8742_s6 }
   0x8   :  { %8810 = sst [smem:[#allocation25_spill]] %s8743_s7 }
   0x9   :  { %8811 = sst [smem:[#allocation26_spill]] %s8744_s8 }
   0xa   :  { %8812 = sst [smem:[#allocation27_spill]] %s8745_s9 }
   0xb   :  { %8813 = sst [smem:[#allocation28_spill]] %s8759_s23 }
   0xc   :  { %8814 = sst [smem:[#allocation29_spill]] %s8760_s24 }
   0xd   :  { %30 = vsyncpa [#allocation5], 0 }
   0xe   :  { %31 = vsyncpa [#allocation7], 0 }
   0xf   :  { %32 = vsyncpa [#allocation4], 0 }
  0x10   :  { %34 = vsyncpa [#allocation4 + $0x1], 0  ;;  %s7399_s29 = smov 0   ;;  %s7401_s2 = smov 0  }
  0x11   :  { %s7403_s6 = smov 0   ;;  %s7405_s30 = smov 0  }
  0x12 LB: > { %8815 = sst [smem:[#allocation12_spill]] %s7214_s29  ;;  %s7420_s7 = sadd.s32 4294967295, %s7226_s30   ;;  %s7226_s30 = sphi %s7405_s30, %s8860_s30   ;;  %s7222_s6 = sphi %s7403_s6, %s8862_s6   ;;  %s7218_s2 = sphi %s7401_s2, %s8864_s2   ;;  %s7214_s29 = sphi %s7399_s29, %s8863_s29  }
  0x13   : > { %8816 = sst [smem:[#allocation13_spill]] %s7222_s6  ;;  %s6232_s3 = sadd.s32 4294967294, %s7226_s30  }
  0x14   : > { %8817 = sst [smem:[#allocation14_spill]] %s7226_s30  ;;  %s7424_s26 = sadd.s32 1, %s7226_s30  }
  0x15   : > { %8818 = sst [smem:[#allocation15_spill]] %s7424_s26  ;;  %s592_s1 = sadd.s32 1, %s7222_s6 }
  0x16   : > { %s589_s8 = ssub.s32 %s7226_s30, %s7424_s26  ;;  %p602_p0 = scmp.ne.s32.totalorder %s7222_s6, %s7218_s2 }
  0x17   : > { %p590_p1 = scmp.eq.s32.totalorder %s589_s8, 0  ;;  %p603_p2 = scmp.eq.s32.totalorder %s7420_s7, 1 }
  0x18   : > { %p608_p3 = scmp.ne.s32.totalorder %s7218_s2, %s7214_s29  ;;  %p609_p4 = scmp.eq.s32.totalorder %s6232_s3, 1 }
  0x19   : > { %s7435_s27 = scalar_select %p590_p1, %s7222_s6, %s592_s1  }
  0x1a   : > { %p7437_p5 = por %p603_p2, %p602_p0  ;;  %p7441_p6 = por %p609_p4, %p608_p3 }
  0x1b   : > { %8819 = sst [smem:[#allocation16_spill]] %s7435_s27  ;;  %p6233_p7 = scmp.ge.s32.totalorder %s7226_s30, 1 }
  0x1c   : > { %s8820_s4 = scalar_select %p7437_p5, 1, 0 }
  0x1d   : > { %s8821_s28 = scalar_select %p7441_p6, 1, 0 }
  0x1e   : > { %p616_p8 = scmp.lt.s32.totalorder %s7226_s30, 3  ;;  %p8771_p9 = scmp.eq.s32.totalorder %s7420_s7, 0 }
  0x1f   : > { %8822 = sst [smem:[#allocation17_spill]] %s8821_s28  ;;  %s8824_s23 = sld [smem:[#allocation28_spill]] }
  0x20   : > { %p7448_p10 = pnand %p6233_p7, %p616_p8  ;;  %s8825_s24 = sld [smem:[#allocation29_spill]] }
  0x22   : > { %s8823_s9 = scalar_select %p7448_p10, 1, 0 }
  0x23   : > { %p6967_p11 = pneg %p7448_p10 }
  0x25   : > { %s686_s3 = sshll.u32 %s8824_s23, 4  ;;  %p7462_p12 = pnand %p8771_p9, %p6967_p11  ;;  %s687_s3 = int_to_ptr.vmem [resolvable:$true] %s686_s3 }
  0x26   : > { %s697_s27 = sshll.u32 %s8825_s24, 4  ;;  %s7126_s26 = scalar_lea.vmem %s687_s3, 16  ;;  %s698_s27 = int_to_ptr.vmem [resolvable:$true] %s697_s27 }
  0x27   : > { %p7127_p13 = scmp.ne.s32.totalorder %s687_s3, %s7126_s26  ;;  %p7128_p0 = pneg %p7462_p12 }
  0x28   : > { %p7134_p3 = scmp.lt.s32.totalorder %s687_s3, %s687_s3  ;;  %p7135_p4 = scmp.lt.s32.totalorder %s7126_s26, %s7126_s26 }
  0x29   : > { %p7129_p1 = pnand %p7128_p0, %p7127_p13 }
  0x2a   : > { %p7136_p7 = por %p7135_p4, %p7134_p3 }
  0x2b   : > { %p7130_p2 = pneg %p7129_p1 }
  0x2d   : > { %p7137_p8 = pnand %p7136_p7, %p7130_p2 }
  0x2f   : > { %7140 = shalt.err (!%p7137_p8)
}
  0x30   : > { %s7228_s5 = smov [#allocation3]   ;;  %s7141_s0 = scalar_lea.vmem %s698_s27, 16 }
  0x31   : > { %6970 = dma.vmem_to_smem (!%p7462_p12), %s687_s3, 16, %s7228_s5, [#allocation5]  }
  0x32   : > { %p7142_p11 = scmp.ne.s32.totalorder %s698_s27, %s7141_s0  ;;  %p7149_p5 = scmp.lt.s32.totalorder %s698_s27, %s698_s27 }
  0x33   : > { %p7150_p10 = scmp.lt.s32.totalorder %s7141_s0, %s7141_s0 }
  0x34   : > { %p7144_p9 = pnand %p7142_p11, %p7128_p0 }
  0x35   : > { %p7151_p13 = por %p7150_p10, %p7149_p5 }
  0x36   : > { %p7145_p6 = pneg %p7144_p9 }
  0x38   : > { %p7152_p1 = pnand %p7151_p13, %p7145_p6 }
  0x3a   : > { %7155 = shalt.err (!%p7152_p1)
}
  0x3b   : > { %s7229_s1 = smov [#allocation6]   ;;  %p8827_p2 = scmp.ne.s32.totalorder %s8823_s9, 0 }
  0x3c   : > { %6973 = dma.vmem_to_smem (!%p7462_p12), %s698_s27, 16, %s7229_s1, [#allocation7]  }
  0x3d   : > { %738 = sbr.rel (%p8827_p2) target bundleno = 4611 (0x1203), region = 120  ;;  %p8828_p3 = scmp.eq.s32.totalorder (!%p8827_p2), %s7420_s7, 0 }
  0x44   : > { %7201 = dma.done.wait (%p8828_p3), [#allocation5], 16   ;;  %p8829_p4 = pmov %p8828_p3 }
  0x45   : > { %p8830_p9 = pmov %p8828_p3 }
  0x46   : > { %7203 = vsyncadd (%p8829_p4), [#allocation5], 4294967280 }
  0x47   : > { %7205 = dma.done.wait (%p8830_p9), [#allocation7], 16   ;;  %p8831_p5 = pmov %p8828_p3 }
  0x49   : > { %7207 = vsyncadd (%p8831_p5), [#allocation7], 4294967280 }
  0x4a   : > { %748 = sfence }
  0x4b   : > { %s8832_s6 = sld [smem:[#allocation22_spill]]  ;;  %s8834_s1 = sld [smem:[#allocation24_spill]]  ;;  %v8785_v3 = vmov 0.0|0.0   ;;  %vm7231_vm0 = vmmov 0   ;;  %v7232_v11 = vmov 0.0   ;;  %v8793_v13 = vmov 4  }
  0x4c   : > { %6849 = vmatprep.subr.bf16.mxu1 %v8785_v3  ;;  %6861 = vmatprep.subr.bf16.mxu0 %v8785_v3  ;;  %p822_p6 = scmp.lt.s32.totalorder %s7420_s7, 1  ;;  %s8835_s26 = sld [smem:[#allocation23_spill]]  ;;  %v8801_v19 = vmov 3   ;;  %vm846_vm1 = vcmask 261120   ;;  %v8787_v32 = vmov 7   ;;  %v8795_v36 = vmov 6  }
  0x4d   : > { %6503 = vmatprep.mubr.msk.f32.mxu1 %vm7231_vm0, %v7232_v11  ;;  %6525 = vmatprep.mubr.msk.f32.mxu0 %vm7231_vm0, %v7232_v11  ;;  %s8836_s0 = sld [smem:[#allocation26_spill]]  ;;  %s8838_s5 = sld [smem:[#allocation20_spill]]  ;;  %v8797_v40 = vmov 5   ;;  %v7238_v41 = vmov 8   ;;  %v8791_v45 = vmov 0   ;;  %v8799_v48 = vmov 1  }
  0x4e   : > { %s823_s23 = scalar_select %p822_p6, %s7420_s7, 1  ;;  %7057 = vset.pattern.permute.xlu1 %v8793_v13  ;;  %7055 = vset.pattern.permute.xlu0 %v8801_v19  ;;  %v8789_v49 = vmov 2   ;;  %vm1552_vm2 = vcmask 64512   ;;  %vm1630_vm3 = vcmask 31744   ;;  %vm2436_vm12 = vcmask 294144  }
  0x4f   : > { %s8837_s3 = sld [smem:[#allocation18_spill]]  ;;  %s8840_s30 = sld [smem:[#allocation27_spill]]  ;;  %vm2450_vm13 = vcmask 326944   ;;  %vm2464_vm14 = vcmask 359744   ;;  %vm2479_vm15 = vcmask 687744  }
  0x50   : > { %s7523_s27 = sshll.u32 %s823_s23, 3  ;;  %s8779_s28 = smov 112  }
  0x51   : > { %s8833_s8 = smov %s8832_s6  ;;  %v842_v0 = vld [vmem:[%s8832_s6] sm:$0xff]  ;;  %v995_v5 = vld [vmem:[%s8834_s1 + $0x8] sm:$0xff]  ;;  %v996_v9 = vld [vmem:[%s8834_s1 + $0x10] sm:$0xff]  ;;  %s8843_s9 = sld [smem:[#allocation19_spill]] }
  0x52   : > { %v843_v1 = vld [vmem:[%s8833_s8 + $0x8] sm:$0xff]  ;;  %v994_v2 = vld [vmem:[%s8834_s1] sm:$0xff]  ;;  %v844_v6 = vld [vmem:[%s8833_s8 + $0x10] sm:$0xff]  ;;  %s7247_s23 = smov 104   ;;  %p8855_p12 = scmp.ne.s32.totalorder %s8820_s4, 0 }
  0x53   : > { %v6850_v4 = vpack.c.bf16 %v843_v1, %v842_v0  ;;  %v845_v7 = vld [vmem:[%s8833_s8 + $0x18] sm:$0xff]  ;;  %v6862_v8 = vpack.c.bf16 %v995_v5, %v994_v2  ;;  %v920_v15 = vld [vmem:[%s8835_s26] sm:$0xff]  ;;  %v921_v16 = vld [vmem:[%s8835_s26 + $0x8] sm:$0xff]  ;;  %s833_s29 = scalar_lea.vmem %s8838_s5, %s7523_s27  ;;  %s8839_s5 = sld [smem:[#allocation25_spill]] }
  0x54   : > { %v997_v10 = vld [vmem:[%s8834_s1 + $0x18] sm:$0xff]  ;;  %v6853_v12 = vpack.c.bf16 %v845_v7, %v844_v6  ;;  %v1142_v17 = vld [vmem:[%s8836_s0] sm:$0xff]  ;;  %v1143_v18 = vld [vmem:[%s8836_s0 + $0x8] sm:$0xff]  ;;  %v6856_v21 = vpack.c.bf16 %v921_v16, %v920_v15  ;;  %s8842_s1 = sld [smem:[#allocation21_spill]] }
  0x55   : > { %6851 = vmatpush3.bf16.msra.mxu1 %v6850_v4  ;;  %6863 = vmatpush3.bf16.msra.mxu0 %v6862_v8  ;;  %v6865_v14 = vpack.c.bf16 %v997_v10, %v996_v9  ;;  %s7536_s6 = scalar_lea.vmem %s8837_s3, %s7523_s27  ;;  %v6874_v22 = vpack.c.bf16 %v1143_v18, %v1142_v17  ;;  %v922_v23 = vld [vmem:[%s8835_s26 + $0x10] sm:$0xff]  ;;  %v923_v24 = vld [vmem:[%s8835_s26 + $0x18] sm:$0xff]  ;;  %v7552_v25 = vld [vmem:[%s833_s29] sm:$0xff]  ;;  %s8841_s8 = smov %s8840_s30 }
  0x56   : > { %6852 = vmatprep.subr.bf16.mxu1 %v8785_v3  ;;  %6864 = vmatprep.subr.bf16.mxu0 %v8785_v3  ;;  %v7539_v20 = vld [vmem:[%s7536_s6] sm:$0xff]  ;;  %v1144_v26 = vld [vmem:[%s8836_s0 + $0x10] sm:$0xff]  ;;  %v1145_v27 = vld [vmem:[%s8836_s0 + $0x18] sm:$0xff]  ;;  %v6859_v28 = vpack.c.bf16 %v923_v24, %v922_v23  ;;  %s8782_s3 = smov 96   ;;  %s8845_s0 = smov 112  }
  0x57   : > { %1419 = vperm.xlu1 %7057, %v7552_v25   ;;  %1389 = vperm.xlu0 %7055, %v7552_v25   ;;  %v6877_v29 = vpack.c.bf16 %v1145_v27, %v1144_v26  ;;  %v1216_v38 = vld [vmem:[%s8840_s30] sm:$0xff]  ;;  %v1217_v39 = vld [vmem:[%s8841_s8 + $0x8] sm:$0xff]  ;;  %v1218_v43 = vld [vmem:[%s8841_s8 + $0x10] sm:$0xff]  ;;  %s7245_s29 = smov 120   ;;  %s7246_s30 = smov 124  }
  0x58   : > { %v6880_v42 = vpack.c.bf16 %v1217_v39, %v1216_v38  ;;  %v1219_v44 = vld [vmem:[%s8841_s8 + $0x18] sm:$0xff]  ;;  %v1290_v4 = vld [vmem:[%s8746_s10] sm:$0xff]  ;;  %v1291_v5 = vld [vmem:[%s8746_s10 + $0x8] sm:$0xff] }
  0x59   : > { %6854 = vmatpush3.bf16.msra.mxu1 %v6853_v12  ;;  %6866 = vmatpush3.bf16.msra.mxu0 %v6865_v14  ;;  %v1068_v30 = vld [vmem:[%s8839_s5] sm:$0xff]  ;;  %v1069_v31 = vld [vmem:[%s8839_s5 + $0x8] sm:$0xff]  ;;  %v1070_v34 = vld [vmem:[%s8839_s5 + $0x10] sm:$0xff]  ;;  %v6883_v46 = vpack.c.bf16 %v1219_v44, %v1218_v43  ;;  %v6886_v6 = vpack.c.bf16 %v1291_v5, %v1290_v4 }
  0x5a   : > { %6855 = vmatprep.subr.bf16.mxu1 %v8785_v3  ;;  %6873 = vmatprep.subr.bf16.mxu0 %v8785_v3  ;;  %v6868_v33 = vpack.c.bf16 %v1069_v31, %v1068_v30  ;;  %v1071_v35 = vld [vmem:[%s8839_s5 + $0x18] sm:$0xff]  ;;  %s837_s24 = scalar_lea.vmem %s8842_s1, %s7523_s27  ;;  %v1292_v9 = vld [vmem:[%s8746_s10 + $0x10] sm:$0xff]  ;;  %v1298_v31 = vld [vmem:[%s8746_s10 + $0x40] sm:$0xff]  ;;  %s7765_s5 = scalar_lea.vmem %s8843_s9, %s7523_s27 }
  0x5b   : > { %7058 = vset.pattern.permute.xlu1 %v8787_v32  ;;  %7056 = vset.pattern.permute.xlu0 %v8795_v36  ;;  %v6871_v37 = vpack.c.bf16 %v1071_v35, %v1070_v34  ;;  %v841_v47 = vld [vmem:[%s837_s24] sm:$0xff]  ;;  %v1293_v10 = vld [vmem:[%s8746_s10 + $0x18] sm:$0xff]  ;;  %v1296_v26 = vld [vmem:[%s8746_s10 + $0x30] sm:$0xff]  ;;  %s8844_s27 = smov 96   ;;  %s6283_s1 = sld [smem:[#allocation3 + $0x1]] }
  0x5c   : > { %6504 = vmatmul.mubr.msk.f32.vlgmr.msra.gmra.mrb[0].mxu1 %vm846_vm1, %v7539_v20  ;;  %6526 = vmatmul.mubr.msk.f32.vlgmr.msra.gmra.mrb[0].mxu0 %vm846_vm1, %v7539_v20  ;;  %v6889_v12 = vpack.c.bf16 %v1293_v10, %v1292_v9  ;;  %v1297_v27 = vld [vmem:[%s8746_s10 + $0x38] sm:$0xff]  ;;  %v1304_v44 = vld [vmem:[%s8746_s10 + $0x70] sm:$0xff]  ;;  %s6284_s24 = sld [smem:[#allocation6 + $0x1]]  ;;  %s7248_s9 = smov 116  }
  0x5d   : > { %6857 = vmatpush3.bf16.msra.mxu1 %v6856_v21  ;;  %6875 = vmatpush3.bf16.msra.mxu0 %v6874_v22  ;;  %v1295_v21 = vld [vmem:[%s8746_s10 + $0x28] sm:$0xff]  ;;  %v6895_v30 = vpack.c.bf16 %v1297_v27, %v1296_v26  ;;  %v1301_v38 = vld [vmem:[%s8746_s10 + $0x58] sm:$0xff] }
  0x5e   : > { %6858 = vmatprep.subr.bf16.mxu1 %v8785_v3  ;;  %6876 = vmatprep.subr.bf16.mxu0 %v8785_v3 }
  0x5f   : > { %6514 = vmatprep.mubr.msk.f32.mxu1 %vm7231_vm0, %v7232_v11  ;;  %6547 = vmatprep.mubr.msk.f32.mxu0 %vm7231_vm0, %v7232_v11 }
  0x60   : > { %1429 = vperm.xlu1 %7058, %v7552_v25   ;;  %1399 = vperm.xlu0 %7056, %v7552_v25  }
  0x61   : > { %6860 = vmatpush3.bf16.msra.mxu1 %v6859_v28  ;;  %6878 = vmatpush3.bf16.msra.mxu0 %v6877_v29 }
  0x62   : > { %6867 = vmatprep.subr.bf16.mxu1 %v8785_v3  ;;  %6885 = vmatprep.subr.bf16.mxu0 %v8785_v3  ;;  %v3152_v19 = vstv %s6284_s24  ;;  %s7251_s24 = smov 64  }
  0x64   : > { %6515 = vmatmul.mubr.msk.f32.vlgmr.msra.gmra.mrb[2].mxu1 %vm846_vm1, %v7539_v20  ;;  %6548 = vmatmul.mubr.msk.f32.vlgmr.msra.gmra.mrb[2].mxu0 %vm846_vm1, %v7539_v20 }
  0x65   : > { %6869 = vmatpush3.bf16.msra.mxu1 %v6868_v33  ;;  %6536 = vmatprep.mubr.msk.f32.mxu1 %vm7231_vm0, %v7232_v11  ;;  %v1299_v33 = vld [vmem:[%s8746_s10 + $0x48] sm:$0xff] }
  0x66   : > { %6870 = vmatprep.subr.bf16.mxu1 %v8785_v3  ;;  %7059 = vset.pattern.permute.xlu1 %v8797_v40  ;;  %v6898_v35 = vpack.c.bf16 %v1299_v33, %v1298_v31 }
  0x67   : > { %6593 = vmatprep.mubr.msk.f32.mxu0 %vm7231_vm0, %v7232_v11  ;;  %1449 = vperm.xlu1 %7059, %v7552_v25  }
  0x68   : > { %7060 = vset.pattern.permute.xlu0 %v7238_v41  ;;  %6887 = vmatpush3.bf16.msra.mxu0 %v6886_v6  ;;  %v1302_v41 = vld [vmem:[%s8746_s10 + $0x60] sm:$0xff] }
  0x69   : > { %6872 = vmatpush3.bf16.msra.mxu1 %v6871_v37  ;;  %1459 = vperm.xlu0 %7060, %v7552_v25   ;;  %v1300_v37 = vld [vmem:[%s8746_s10 + $0x50] sm:$0xff] }
  0x6a   : > { %6879 = vmatprep.subr.bf16.mxu1 %v8785_v3  ;;  %6888 = vmatprep.subr.bf16.mxu0 %v8785_v3  ;;  %v6901_v39 = vpack.c.bf16 %v1301_v38, %v1300_v37 }
  0x6b   : > { %7061 = vset.pattern.permute.xlu1 %v8791_v45 }
  0x6c   : > { %6537 = vmatmul.mubr.msk.f32.vlgmr.msra.gmra.mrb[4].mxu1 %vm846_vm1, %v7539_v20  ;;  %1378 = vperm.xlu1 %7061, %v7552_v25  }
  0x6d   : > { %6881 = vmatpush3.bf16.msra.mxu1 %v6880_v42  ;;  %6558 = vmatprep.mubr.msk.f32.mxu1 %vm7231_vm0, %v7232_v11  ;;  %v1303_v42 = vld [vmem:[%s8746_s10 + $0x68] sm:$0xff] }
  0x6e   : > { %6882 = vmatprep.subr.bf16.mxu1 %v8785_v3  ;;  %7062 = vset.pattern.permute.xlu0 %v8799_v48  ;;  %v6904_v43 = vpack.c.bf16 %v1303_v42, %v1302_v41 }
  0x6f   : > { %1409 = vperm.xlu0 %7062, %v7552_v25   ;;  %6890 = vmatpush3.bf16.msra.mxu0 %v6889_v12 }
  0x70   : > { %1384 = vperm.xlu1 %7061, %v841_v47   ;;  %6891 = vmatprep.subr.bf16.mxu0 %v8785_v3 }
  0x71   : > { %6884 = vmatpush3.bf16.msra.mxu1 %v6883_v46  ;;  %v1305_v46 = vld [vmem:[%s8746_s10 + $0x78] sm:$0xff] }
  0x72   : > { %6596 = vmatprep.subr.mxu1 %v7232_v11 }
  0x73   : > { %7065 = vset.pattern.permute.xlu0 %v8789_v49 }
  0x74   : > { %6559 = vmatmul.mubr.msk.f32.vlgmr.msra.gmra.mrb[6].mxu1 %vm846_vm1, %v7539_v20  ;;  %7063 = vset.pattern.permute.xlu1 %v8799_v48  ;;  %v1294_v20 = vld [vmem:[%s8746_s10 + $0x20] sm:$0xff] }
  0x75   : > { %6598 = vmatprep.mubr.msk.f32.mxu1 %vm7231_vm0, %v7232_v11  ;;  %1414 = vperm.xlu1 %7063, %v841_v47   ;;  %v6892_v24 = vpack.c.bf16 %v1295_v21, %v1294_v20 }
  0x77   : > { %6893 = vmatpush3.bf16.msra.mxu0 %v6892_v24 }
  0x78   : > { %6894 = vmatprep.subr.bf16.mxu0 %v8785_v3 }
  0x79   : > { %7064 = vset.pattern.permute.xlu1 %v8789_v49 }
  0x7a   : > { %1439 = vperm.xlu1 %7064, %v7552_v25  }
  0x7b   : > { %6896 = vmatpush3.bf16.msra.mxu0 %v6895_v30 }
  0x7c   : > { %6897 = vmatprep.subr.bf16.mxu0 %v8785_v3 }
  0x7e   : > { %7066 = vset.pattern.permute.xlu1 %v8799_v48 }
  0x7f   : > { %6899 = vmatpush3.bf16.msra.mxu0 %v6898_v35 }
  0x80   : > { %6900 = vmatprep.subr.bf16.mxu0 %v8785_v3 }
  0x83   : > { %6902 = vmatpush3.bf16.msra.mxu0 %v6901_v39 }
  0x84   : > { %6903 = vmatprep.subr.bf16.mxu0 %v8785_v3 }
  0x87   : > { %6905 = vmatpush3.bf16.msra.mxu0 %v6904_v43 }
  0x88   : > { %6906 = vmatprep.subr.bf16.mxu0 %v8785_v3 }
  0xd6   : > { %v7643_v53 = vpop.permute.xlu0 %1389  ;;  %v7664_v62 = vpop.permute.xlu1 %1419 }
  0xdf   : > { %v7645_v55 = vpop.permute.xlu0 %1399  ;;  %v7683_v8 = vpop.permute.xlu1 %1429 }
  0xe6   : > { %v7701_v18 = vpop.permute.xlu1 %1449 }
  0xe8   : > { %v7716_v25 = vpop.permute.xlu0 %1459 }
 0x12f   : > { %v7639_v50 = vpop.f32.mrb[0].mxu1  ;;  %v7641_v52 = vpop.f32.mrb[0].mxu0 }
 0x130   : > { %v6505_v51 = vpop.f32.mrb[1].mxu1  ;;  %v6527_v54 = vpop.f32.mrb[1].mxu0 }
 0x131   : > { %v839_v51 = vld [vmem:[%s7765_s5] sm:$0xff]  ;;  %v7772_v54 = vpop.permute.xlu1 %1378 }
 0x137   : > { %v7647_v56 = vpop.f32.mrb[2].mxu1  ;;  %v7649_v57 = vpop.f32.mrb[2].mxu0 }
 0x138   : > { %v6516_v58 = vpop.f32.mrb[3].mxu1  ;;  %6597 = vmatpush3.xpose.msk.msra.mxu1 %vm1552_vm2, %v7647_v56  ;;  %v1470_v59 = vmul.f32 %v7643_v53, %v7649_v57  ;;  %v6549_v60 = vpop.f32.mrb[3].mxu0  ;;  %v1476_v61 = vmul.f32 %v7645_v55, %v7649_v57  ;;  %v1484_v7 = vmul.f32 %v7664_v62, %v7649_v57  ;;  %v1490_v16 = vmul.f32 %v7683_v8, %v7649_v57 }
 0x139   : > { %6601 = vmatprep.subr.mxu1 %v7232_v11  ;;  %v1498_v22 = vmul.f32 %v7701_v18, %v7649_v57  ;;  %v1504_v29 = vmul.f32 %v7716_v25, %v7649_v57  ;;  %v7774_v58 = vpop.permute.xlu1 %1384  ;;  %v1468_v60 = vmul.f32 %v7772_v54, %v7649_v57 }
 0x13a   : > { %1472 = vrot.lane.b32.xlu1 %v1470_v59, %s8779_s28  ;;  %1478 = vrot.lane.b32.xlu0 %v1476_v61, %s8782_s3 }
 0x13b   : > { %6599 = vmatmul.mubr.msk.f32.vlgmr.msra.gmra.mrb[8].mxu1 %vm1552_vm2, %v7639_v50 }
 0x13c   : > { %6603 = vmatprep.mubr.msk.f32.mxu1 %vm7231_vm0, %v7232_v11 }
 0x13d   : > { %v7776_v59 = vpop.permute.xlu1 %1414 }
 0x13f   : > { %v7666_v63 = vpop.f32.mrb[4].mxu1 }
 0x140   : > { %v6538_v0 = vpop.f32.mrb[5].mxu1  ;;  %v1402_v1 = vmul.f32 %v7645_v55, %v7666_v63  ;;  %v1392_v2 = vmul.f32 %v7643_v53, %v7666_v63  ;;  %v1422_v15 = vmul.f32 %v7664_v62, %v7666_v63  ;;  %v1432_v23 = vmul.f32 %v7683_v8, %v7666_v63 }
 0x141   : > { %v1452_v28 = vmul.f32 %v7701_v18, %v7666_v63  ;;  %v1462_v34 = vmul.f32 %v7716_v25, %v7666_v63  ;;  %v7780_v61 = vpop.permute.xlu1 %1439  ;;  %v7782_v0 = vpop.permute.xlu0 %1409  ;;  %v1381_v6 = vmul.f32 %v7772_v54, %v7666_v63 }
 0x142   : > { %1404 = vrot.lane.b32.xlu0 %v1402_v1, %s8782_s3  ;;  %1394 = vrot.lane.b32.xlu1 %v1392_v2, %s8779_s28  ;;  %v1469_v1 = vadd.f32 %v1468_v60, %v7774_v58  ;;  %v1412_v30 = vmul.f32 %v7782_v0, %v7666_v63  ;;  %v1496_v38 = vmul.f32 %v7780_v61, %v7649_v57 }
 0x143   : > { %v1387_v9 = vadd.f32 %v7774_v58, %v1381_v6 }
 0x146   : > { %1444 = vperm.xlu0 %7065, %v841_v47   ;;  %1486 = vrot.lane.b32.xlu1 %v1484_v7, %s8779_s28  ;;  %v6907_v47 = vpack.c.bf16 %v1305_v46, %v1304_v44 }
 0x147   : > { %v7692_v14 = vpop.f32.mrb[6].mxu1 }
 0x148   : > { %v6560_v17 = vpop.f32.mrb[7].mxu1  ;;  %6908 = vmatpush3.bf16.msra.mxu0 %v6907_v47  ;;  %v1442_v47 = vmul.f32 %v7780_v61, %v7666_v63 }
 0x149   : > { %6636 = vmatprep.subr.mxu0 %v7232_v11 }
 0x14a   : > { %1424 = vrot.lane.b32.xlu0 %v1422_v15, %s8779_s28  ;;  %1492 = vrot.lane.b32.xlu1 %v1490_v16, %s8782_s3  ;;  %v1482_v15 = vmul.f32 %v7782_v0, %v7649_v57 }
 0x14b   : > { %7068 = vset.pattern.permute.xlu0 %v8793_v13  ;;  %6594 = vmatmul.mubr.f32.vlgmr.msra.gmra.mrb[4].mxu0 %v839_v51 }
 0x14c   : > { %6638 = vmatprep.mubr.msk.f32.mxu0 %vm7231_vm0, %v7232_v11 }
 0x14e   : > { %1500 = vrot.lane.b32.xlu0 %v1498_v22, %s8779_s28  ;;  %1434 = vrot.lane.b32.xlu1 %v1432_v23, %s8782_s3  ;;  %v1483_v22 = vadd.f32 %v1482_v15, %v7776_v59  ;;  %v1512_v15 = vmul.f32 %v7643_v53, %v7692_v14 }
 0x152   : > { %1454 = vrot.lane.b32.xlu0 %v1452_v28, %s8779_s28  ;;  %1506 = vrot.lane.b32.xlu1 %v1504_v29, %s8782_s3  ;;  %v7244_v29 = vmov 1.0   ;;  %s2120_s28 = sld [smem:[#allocation3]] }
 0x156   : > { %1464 = vrot.lane.b32.xlu1 %v1462_v34, %s8782_s3  ;;  %v1417_v34 = vadd.f32 %v7776_v59, %v1412_v30  ;;  %s2121_s3 = sld [smem:[#allocation6]] }
 0x1ac   : > { %v1473_v2 = vpop.permute.xlu1 %1472  ;;  %v1479_v5 = vpop.permute.xlu0 %1478 }
 0x1ad   : > { %v1475_v4 = vadd.f32 %v1473_v2, %v1469_v1 }
 0x1af   : > { %v7787_v7 = vadd.f32 %v1479_v5, %v1475_v4 }
 0x1b1   : > { %6602 = vmatpush3.xpose.msk.msra.mxu1 %vm1630_vm3, %v7787_v7  ;;  %v7799_v21 = vmul.f32 %v7787_v7, %v7787_v7 }
 0x1b2   : > { %6606 = vmatprep.subr.mxu1 %v7232_v11 }
 0x1b4   : > { %v1395_v10 = vpop.permute.xlu1 %1394  ;;  %v1405_v16 = vpop.permute.xlu0 %1404 }
 0x1b5   : > { %v1397_v12 = vadd.f32 %v1395_v10, %v1387_v9 }
 0x1b7   : > { %v7795_v17 = vadd.f32 %v1405_v16, %v1397_v12  ;;  %v1532_v12 = vmul.f32 %v7683_v8, %v7692_v14  ;;  %v1540_v16 = vmul.f32 %v7701_v18, %v7692_v14 }
 0x1b8   : > { %v1487_v20 = vpop.permute.xlu1 %1486 }
 0x1b9   : > { %6604 = vmatmul.mubr.msk.f32.vlgmr.msra.gmra.mrb[10].mxu1 %vm1630_vm3, %v7795_v17  ;;  %v7806_v23 = vmul.f32 %v7795_v17, %v7795_v17  ;;  %v1489_v24 = vadd.f32 %v1487_v20, %v1483_v22 }
 0x1ba   : > { %6607 = vmatpush3.xpose.msk.msra.mxu1 %vm1630_vm3, %v7799_v21  ;;  %6608 = vmatprep.mubr.msk.f32.mxu1 %vm7231_vm0, %v7232_v11 }
 0x1bb   : > { %v1708_v26 = vsel %vm1630_vm3, %v7806_v23, 0.0  ;;  %6611 = vmatprep.subr.mxu1 %v7232_v11 }
 0x1bc   : > { %v1493_v27 = vpop.permute.xlu1 %1492  ;;  %1709 = vadd.xlane.f32.xlu0 %v1708_v26 }
 0x1bd   : > { %v7815_v28 = vadd.f32 %v1493_v27, %v1489_v24  ;;  %6609 = vmatmul.mubr.msk.f32.vlgmr.msra.gmra.mrb[12].mxu1 %vm1630_vm3, %v7244_v29  ;;  %v1789_v27 = vlaneseq }
 0x1be   : > { %6613 = vmatprep.mubr.msk.f32.mxu1 %vm7231_vm0, %v7232_v11 }
 0x1bf   : > { %6612 = vmatpush3.xpose.msk.msra.mxu1 %vm1630_vm3, %v7815_v28  ;;  %v7836_v44 = vmul.f32 %v7815_v28, %v7815_v28  ;;  %v1790_v30 = vshrl.u32 %v1789_v27, 7 }
 0x1c0   : > { %6616 = vmatprep.subr.mxu1 %v7232_v11  ;;  %v1435_v33 = vpop.permute.xlu1 %1434 }
 0x1c4   : > { %v1507_v42 = vpop.permute.xlu1 %1506 }
 0x1c5   : > { %v7826_v31 = vpop.permute.xlu0 %1444 }
 0x1c6   : > { %v1497_v41 = vadd.f32 %v1496_v38, %v7826_v31  ;;  %v1447_v60 = vadd.f32 %v7826_v31, %v1442_v47 }
 0x1c8   : > { %v1465_v4 = vpop.permute.xlu1 %1464 }
 0x1c9   : > { %v1425_v35 = vpop.permute.xlu0 %1424 }
 0x1ca   : > { %v1427_v37 = vadd.f32 %v1425_v35, %v1417_v34  ;;  %v7899_v35 = vsub.s32 0, %v1790_v30 }
 0x1cc   : > { %v7831_v39 = vadd.f32 %v1435_v33, %v1427_v37 }
 0x1cd   : > { %v1501_v43 = vpop.permute.xlu0 %1500 }
 0x1ce   : > { %v1503_v46 = vadd.f32 %v1501_v43, %v1497_v41  ;;  %6614 = vmatmul.mubr.msk.f32.vlgmr.msra.gmra.mrb[14].mxu1 %vm1630_vm3, %v7831_v39  ;;  %v7844_v57 = vmul.f32 %v7831_v39, %v7831_v39 }
 0x1cf   : > { %6617 = vmatpush3.xpose.msk.msra.mxu1 %vm1630_vm3, %v7836_v44  ;;  %6618 = vmatprep.mubr.msk.f32.mxu1 %vm7231_vm0, %v7232_v11 }
 0x1d0   : > { %v7850_v51 = vadd.f32 %v1507_v42, %v1503_v46  ;;  %v1873_v1 = vsel %vm1630_vm3, %v7844_v57, 0.0  ;;  %6621 = vmatprep.subr.mxu1 %v7232_v11 }
 0x1d1   : > { %v1455_v63 = vpop.permute.xlu0 %1454  ;;  %1874 = vadd.xlane.f32.xlu1 %v1873_v1 }
 0x1d2   : > { %v1457_v2 = vadd.f32 %v1455_v63, %v1447_v60  ;;  %6619 = vmatmul.mubr.msk.f32.vlgmr.msra.gmra.mrb[16].mxu1 %vm1630_vm3, %v7244_v29  ;;  %v7867_v6 = vmul.f32 %v7850_v51, %v7850_v51 }
 0x1d3   : > { %6622 = vmatpush3.xpose.msk.msra.mxu1 %vm1630_vm3, %v7850_v51  ;;  %6623 = vmatprep.mubr.msk.f32.mxu1 %vm7231_vm0, %v7232_v11 }
 0x1d4   : > { %v7862_v5 = vadd.f32 %v1465_v4, %v1457_v2  ;;  %6626 = vmatprep.subr.mxu1 %v7232_v11 }
 0x1d6   : > { %6624 = vmatmul.mubr.msk.f32.vlgmr.msra.gmra.mrb[18].mxu1 %vm1630_vm3, %v7862_v5  ;;  %v7873_v9 = vmul.f32 %v7862_v5, %v7862_v5 }
 0x1d7   : > { %6627 = vmatpush3.xpose.msk.msra.mxu1 %vm1630_vm3, %v7867_v6  ;;  %6628 = vmatprep.mubr.msk.f32.mxu1 %vm7231_vm0, %v7232_v11 }
 0x1d8   : > { %v2035_v10 = vsel %vm1630_vm3, %v7873_v9, 0.0  ;;  %6631 = vmatprep.subr.mxu1 %v7232_v11 }
 0x1d9   : > { %2036 = vadd.xlane.f32.xlu0 %v2035_v10 }
 0x1da   : > { %6629 = vmatmul.mubr.msk.f32.vlgmr.msra.gmra.mrb[20].mxu1 %vm1630_vm3, %v7244_v29 }
 0x1db   : > { %6632 = vmatpush3.msra.mxu1 %v7641_v52  ;;  %6633 = vmatprep.mubr.msk.f32.mxu1 %vm7231_vm0, %v7232_v11 }
 0x1dc   : > { %6641 = vmatprep.subr.mxu1 %v7232_v11 }
 0x1e2   : > { %1534 = vrot.lane.b32.xlu1 %v1532_v12, %s8844_s27 }
 0x1e6   : > { %1514 = vrot.lane.b32.xlu1 %v1512_v15, %s8845_s0 }
 0x1ea   : > { %1542 = vrot.lane.b32.xlu1 %v1540_v16, %s8845_s0 }
 0x20e   : > { %v1625_v20 = vpop.f32.mrb[8].mxu1 }
 0x20f   : > { %v6600_v22 = vpop.f32.mrb[9].mxu1 }
 0x21e   : > { %v7897_v24 = vpop.f32.mrb[4].mxu0 }
 0x21f   : > { %v6595_v26 = vpop.f32.mrb[5].mxu0 }
 0x249   : > { %v1710_v42 = vpop.xlane.xlu0 %1709 }
 0x25e   : > { %v1875_v63 = vpop.xlane.xlu1 %1874 }
 0x266   : > { %v2037_v30 = vpop.xlane.xlu0 %2036 }
 0x28c   : > { %v1703_v33 = vpop.f32.mrb[10].mxu1 }
 0x28d   : > { %v6605_v34 = vpop.f32.mrb[11].mxu1  ;;  %v1794_v43 = vmul.f32 2.0, %v1703_v33 }
 0x290   : > { %v1784_v37 = vpop.f32.mrb[12].mxu1 }
 0x291   : > { %v1792_v38 = vrot.slane %v1784_v37, %v7899_v35  ;;  %v6610_v41 = vpop.f32.mrb[13].mxu1 }
 0x293   : > { %v1793_v46 = vadd.f32 %v1792_v38, %v1710_v42 }
 0x295   : > { %v1795_v47 = vsub.f32 %v1793_v46, %v1794_v43  ;;  %v2122_v43 = vstv %s2120_s28  ;;  %s6303_s28 = sld [smem:[#allocation3 + $0x2]] }
 0x297   : > { %v1950_v4 = vadd.f32 %v1875_v63, %v1795_v47  ;;  %v1629_v47 = vmul.f32 0.20412415, %v1625_v20  ;;  %v1546_v20 = vmul.f32 %v7716_v25, %v7692_v14 }
 0x2a1   : > { %v1868_v60 = vpop.f32.mrb[14].mxu1 }
 0x2a2   : > { %v6615_v1 = vpop.f32.mrb[15].mxu1  ;;  %v1956_v15 = vmul.f32 2.0, %v1868_v60  ;;  %v2126_v60 = vstv %s2121_s3  ;;  %s6304_s3 = sld [smem:[#allocation6 + $0x2]] }
 0x2a5   : > { %v1946_v2 = vpop.f32.mrb[16].mxu1 }
 0x2a6   : > { %v1954_v10 = vrot.slane %v1946_v2, %v7899_v35  ;;  %v6620_v12 = vpop.f32.mrb[17].mxu1 }
 0x2a7   : > { %v1526_v12 = vmul.f32 %v7664_v62, %v7692_v14 }
 0x2a8   : > { %v1955_v16 = vadd.f32 %v1954_v10, %v1950_v4 }
 0x2a9   : > { %v2030_v22 = vpop.f32.mrb[18].mxu1 }
 0x2aa   : > { %v1957_v26 = vsub.f32 %v1955_v16, %v1956_v15  ;;  %v6625_v27 = vpop.f32.mrb[19].mxu1  ;;  %v2118_v41 = vmul.f32 2.0, %v2030_v22  ;;  %v1518_v15 = vmul.f32 %v7645_v55, %v7692_v14  ;;  %v1535_v16 = vpop.permute.xlu1 %1534 }
 0x2ac   : > { %v2112_v37 = vadd.f32 %v2037_v30, %v1957_v26  ;;  %v1510_v26 = vmul.f32 %v7772_v54, %v7692_v14 }
 0x2ad   : > { %v2108_v34 = vpop.f32.mrb[20].mxu1 }
 0x2ae   : > { %v2116_v33 = vrot.slane %v2108_v34, %v7899_v35  ;;  %v6630_v38 = vpop.f32.mrb[21].mxu1  ;;  %v1515_v34 = vpop.permute.xlu1 %1514 }
 0x2b0   : > { %v2117_v42 = vadd.f32 %v2116_v33, %v2112_v37  ;;  %v1511_v33 = vadd.f32 %v1510_v26, %v7774_v58 }
 0x2b2   : > { %v2119_v46 = vsub.f32 %v2117_v42, %v2118_v41  ;;  %v1517_v38 = vadd.f32 %v1515_v34, %v1511_v33 }
 0x2b4   : > { %v2123_v1 = vmul.f32 %v2122_v43, %v2119_v46 }
 0x2b6   : > { %v2124_v63 = vadd.f32 %v2123_v1, %v1629_v47 }
 0x2b8   : > { %v2125_v2 = vadd.f32 %v2124_v63, %v7897_v24 }
 0x2ba   : > { %v2127_v4 = vadd.f32 %v2126_v60, %v2125_v2 }
 0x2bc   : > { %v2128_v10 = vsel %vm1552_vm2, %v2127_v4, -inf }
 0x2bd   : > { %2129 = vmax.xlane.f32.xlu0 %v2128_v10 }
 0x2d3   : > { %1528 = vrot.lane.b32.xlu0 %v1526_v12, %s8845_s0 }
 0x2d7   : > { %1520 = vrot.lane.b32.xlu0 %v1518_v15, %s8844_s27  ;;  %v1524_v15 = vmul.f32 %v7782_v0, %v7692_v14 }
 0x2db   : > { %1548 = vrot.lane.b32.xlu0 %v1546_v20, %s8844_s27  ;;  %v1525_v20 = vadd.f32 %v1524_v15, %v7776_v59 }
 0x2df   : > { %2562 = vrot.lane.b32.xlu0 %v7639_v50, %s7245_s29 }
 0x2e3   : > { %2643 = vrot.lane.b32.xlu0 %v7787_v7, %s7246_s30 }
 0x2e7   : > { %2893 = vrot.lane.b32.xlu0 %v7836_v44, %s7246_s30 }
 0x2eb   : > { %2808 = vrot.lane.b32.xlu0 %v7831_v39, %s7246_s30 }
 0x2ef   : > { %2977 = vrot.lane.b32.xlu0 %v7850_v51, %s7246_s30 }
 0x2f3   : > { %2720 = vrot.lane.b32.xlu0 %v7806_v23, %s7246_s30 }
 0x2f7   : > { %3054 = vrot.lane.b32.xlu0 %v7873_v9, %s7246_s30 }
 0x34a   : > { %v2130_v22 = vpop.xlane.xlu0 %2129 }
 0x34b   : > { %v2131_v27 = vsub.f32 %v2127_v4, %v2130_v22 }
 0x34d   : > { %v2132_v30 = vmul.f32 1.442695, %v2131_v27  ;;  %v1538_v27 = vmul.f32 %v7780_v61, %v7692_v14 }
 0x34e   : > { %v1529_v37 = vpop.permute.xlu0 %1528 }
 0x34f   : > { %7096 = vpow2.f32 %v2132_v30  ;;  %v1531_v22 = vadd.f32 %v1529_v37, %v1525_v20  ;;  %v1543_v30 = vpop.permute.xlu1 %1542  ;;  %v1539_v34 = vadd.f32 %v1538_v27, %v7826_v31 }
 0x351   : > { %v7961_v26 = vadd.f32 %v1535_v16, %v1531_v22  ;;  %v1545_v33 = vadd.f32 %v1543_v30, %v1539_v34 }
 0x352   : > { %v1521_v41 = vpop.permute.xlu0 %1520 }
 0x353   : > { %v7932_v42 = vadd.f32 %v1521_v41, %v1517_v38 }
 0x355   : > { %6637 = vmatpush3.msra.mxu0 %v7932_v42 }
 0x356   : > { %6646 = vmatprep.subr.mxu0 %v7232_v11  ;;  %v1549_v47 = vpop.permute.xlu0 %1548 }
 0x357   : > { %v7970_v38 = vadd.f32 %v1549_v47, %v1545_v33 }
 0x359   : > { %v7097_v43 = vpop.eup %7096 }
 0x35a   : > { %v2134_v46 = vsel %vm1552_vm2, %v7097_v43, 0.0  ;;  %v2563_v1 = vpop.permute.xlu0 %2562 }
 0x35b   : > { %2135 = vadd.xlane.f32.xlu1 %v2134_v46 }
 0x35e   : > { %v2644_v63 = vpop.permute.xlu0 %2643 }
 0x362   : > { %v7951_v60 = vpop.permute.xlu0 %2893 }
 0x366   : > { %v2809_v2 = vpop.permute.xlu0 %2808 }
 0x36a   : > { %v7953_v4 = vpop.permute.xlu0 %2977 }
 0x36c   : > { %2564 = vrot.lane.b32.xlu1 %v7647_v56, %s7245_s29 }
 0x36e   : > { %v2721_v10 = vpop.permute.xlu0 %2720 }
 0x36f   : > { %v2723_v12 = vsel %vm1630_vm3, %v2721_v10, 0.0 }
 0x370   : > { %2726 = vrot.lane.b32.xlu1 %v7799_v21, %s7246_s30 }
 0x372   : > { %v3055_v15 = vpop.permute.xlu0 %3054 }
 0x374   : > { %2641 = vrot.lane.b32.xlu1 %v7795_v17, %s7246_s30 }
 0x378   : > { %2810 = vrot.lane.b32.xlu1 %v7815_v28, %s7246_s30 }
 0x37c   : > { %3060 = vrot.lane.b32.xlu1 %v7867_v6, %s7246_s30 }
 0x380   : > { %2975 = vrot.lane.b32.xlu1 %v7862_v5, %s7246_s30 }
 0x384   : > { %2887 = vrot.lane.b32.xlu1 %v7844_v57, %s7246_s30 }
 0x3a8   : > { %2724 = vadd.xlane.f32.xlu1 %v2723_v12 }
 0x3b9   : > { %3148 = vrot.lane.b32.xlu1 %v7897_v24, %s7245_s29 }
 0x3bd   : > { %3323 = vrot.lane.b32.xlu1 %v7961_v26, %s7246_s30 }
 0x3c1   : > { %3249 = vrot.lane.b32.xlu1 %v7932_v42, %s7246_s30 }
 0x3c5   : > { %3397 = vrot.lane.b32.xlu1 %v7970_v38, %s7246_s30  ;;  %s6324_s30 = sld [smem:[#allocation6 + $0x3]] }
 0x3c9   : > { %3611 = vrot.lane.b32.xlu1 %v7647_v56, %s8845_s0 }
 0x3cd   : > { %3772 = vrot.lane.b32.xlu1 %v7799_v21, %s7245_s29 }
 0x3d1   : > { %3688 = vrot.lane.b32.xlu1 %v7795_v17, %s7245_s29 }
 0x3d5   : > { %3856 = vrot.lane.b32.xlu1 %v7815_v28, %s7245_s29 }
 0x3d9   : > { %4104 = vrot.lane.b32.xlu1 %v7867_v6, %s7245_s29 }
 0x3dd   : > { %4020 = vrot.lane.b32.xlu1 %v7862_v5, %s7245_s29 }
 0x3e1   : > { %3932 = vrot.lane.b32.xlu1 %v7844_v57, %s7245_s29 }
 0x3e8   : > { %v2136_v14 = vpop.xlane.xlu1 %2135 }
 0x3e9   : > { %7098 = vrcp.f32 %v2136_v14 }
 0x3ec   : > { %v2565_v16 = vpop.permute.xlu1 %2564 }
 0x3f0   : > { %v2727_v37 = vpop.permute.xlu1 %2726 }
 0x3f3   : > { %v7099_v41 = vpop.eup %7098 }
 0x3f4   : > { %v7988_v46 = vmul.f32 %v7099_v41, %v7097_v43  ;;  %v2642_v47 = vpop.permute.xlu1 %2641 }
 0x3f6   : > { %6634 = vmatmul.mubr.msk.f32.vlgmr.msra.gmra.mrb[22].mxu1 %vm1552_vm2, %v7988_v46  ;;  %6639 = vmatmul.mubr.msk.f32.vlgmr.msra.gmra.mrb[6].mxu0 %vm1552_vm2, %v7988_v46 }
 0x3f7   : > { %6642 = vmatpush3.msra.mxu1 %v7961_v26  ;;  %6647 = vmatpush3.msra.mxu0 %v7970_v38 }
 0x3f8   : > { %v2811_v10 = vpop.permute.xlu1 %2810  ;;  %6643 = vmatprep.mubr.msk.f32.mxu1 %vm7231_vm0, %v7232_v11  ;;  %6648 = vmatprep.mubr.msk.f32.mxu0 %vm7231_vm0, %v7232_v11 }
 0x3f9   : > { %6651 = vmatprep.subr.mxu1 %v7232_v11  ;;  %6656 = vmatprep.subr.mxu0 %v7232_v11 }
 0x3fa   : > { %6644 = vmatmul.mubr.msk.f32.vlgmr.msra.gmra.mrb[24].mxu1 %vm1552_vm2, %v7988_v46  ;;  %6649 = vmatmul.mubr.msk.f32.vlgmr.msra.gmra.mrb[8].mxu0 %vm1552_vm2, %v7988_v46 }
 0x3fb   : > { %6653 = vmatprep.mubr.msk.f32.mxu1 %vm7231_vm0, %v7232_v11  ;;  %6658 = vmatprep.mubr.msk.f32.mxu0 %vm7231_vm0, %v7232_v11 }
 0x3fc   : > { %v3061_v43 = vpop.permute.xlu1 %3060 }
 0x3fe   : > { %6652 = vmatpush3.xpose.msk.msra.mxu1 %vm1552_vm2, %v2565_v16  ;;  %6657 = vmatpush3.xpose.msk.msra.mxu0 %vm1630_vm3, %v2644_v63 }
 0x3ff   : > { %6661 = vmatprep.subr.mxu1 %v7232_v11  ;;  %6666 = vmatprep.subr.mxu0 %v7232_v11 }
 0x400   : > { %v2976_v12 = vpop.permute.xlu1 %2975 }
 0x401   : > { %6654 = vmatmul.mubr.msk.f32.vlgmr.msra.gmra.mrb[26].mxu1 %vm1552_vm2, %v2563_v1  ;;  %6659 = vmatmul.mubr.msk.f32.vlgmr.msra.gmra.mrb[10].mxu0 %vm1630_vm3, %v2642_v47 }
 0x402   : > { %6662 = vmatpush3.xpose.msk.msra.mxu1 %vm1630_vm3, %v2727_v37  ;;  %6667 = vmatpush3.xpose.msk.msra.mxu0 %vm1630_vm3, %v2811_v10 }
 0x403   : > { %6663 = vmatprep.mubr.msk.f32.mxu1 %vm7231_vm0, %v7232_v11  ;;  %6668 = vmatprep.mubr.msk.f32.mxu0 %vm7231_vm0, %v7232_v11 }
 0x404   : > { %v2888_v63 = vpop.permute.xlu1 %2887  ;;  %6671 = vmatprep.subr.mxu1 %v7232_v11  ;;  %6676 = vmatprep.subr.mxu0 %v7232_v11 }
 0x405   : > { %6664 = vmatmul.mubr.msk.f32.vlgmr.msra.gmra.mrb[28].mxu1 %vm1630_vm3, %v7244_v29  ;;  %6669 = vmatmul.mubr.msk.f32.vlgmr.msra.gmra.mrb[12].mxu0 %vm1630_vm3, %v2809_v2  ;;  %v2890_v1 = vsel %vm1630_vm3, %v2888_v63, 0.0 }
 0x406   : > { %6672 = vmatpush3.xpose.msk.msra.mxu1 %vm1630_vm3, %v7951_v60  ;;  %6677 = vmatpush3.xpose.msk.msra.mxu0 %vm1630_vm3, %v7953_v4  ;;  %v3057_v60 = vsel %vm1630_vm3, %v3055_v15, 0.0 }
 0x407   : > { %2891 = vadd.xlane.f32.xlu0 %v2890_v1  ;;  %6678 = vmatprep.mubr.msk.f32.mxu0 %vm7231_vm0, %v7232_v11 }
 0x408   : > { %6673 = vmatprep.mubr.msk.f32.mxu1 %vm7231_vm0, %v7232_v11  ;;  %6681 = vmatprep.subr.mxu1 %v7232_v11 }
 0x409   : > { %6679 = vmatmul.mubr.msk.f32.vlgmr.msra.gmra.mrb[14].mxu0 %vm1630_vm3, %v2976_v12  ;;  %6674 = vmatmul.mubr.msk.f32.vlgmr.msra.gmra.mrb[30].mxu1 %vm1630_vm3, %v7244_v29 }
 0x40a   : > { %6682 = vmatpush3.xpose.msk.msra.mxu1 %vm1630_vm3, %v3061_v43  ;;  %6683 = vmatprep.mubr.msk.f32.mxu1 %vm7231_vm0, %v7232_v11 }
 0x40b   : > { %3058 = vadd.xlane.f32.xlu0 %v3057_v60  ;;  %6691 = vmatprep.subr.mxu1 %v7232_v11 }
 0x40c   : > { %6686 = vmatprep.subr.mxu0 %v7232_v11  ;;  %6688 = vmatprep.mubr.msk.f32.mxu0 %vm7231_vm0, %v7232_v11 }
 0x40d   : > { %6684 = vmatmul.mubr.msk.f32.vlgmr.msra.gmra.mrb[32].mxu1 %vm1630_vm3, %v7244_v29 }
 0x40e   : > { %6693 = vmatprep.mubr.msk.f32.mxu1 %vm7231_vm0, %v7232_v11 }
 0x435   : > { %v2725_v2 = vpop.xlane.xlu1 %2724 }
 0x439   : > { %v8052_v4 = vpop.permute.xlu1 %3148 }
 0x43d   : > { %v8054_v20 = vpop.permute.xlu1 %3323 }
 0x441   : > { %v3250_v22 = vpop.permute.xlu1 %3249 }
 0x442   : > { %6692 = vmatpush3.msra.mxu1 %v3250_v22 }
 0x443   : > { %6701 = vmatprep.subr.mxu1 %v7232_v11 }
 0x494   : > { %v2892_v40 = vpop.xlane.xlu0 %2891 }
 0x4c9   : > { %v2208_v27 = vpop.f32.mrb[22].mxu1  ;;  %v2279_v30 = vpop.f32.mrb[6].mxu0 }
 0x4ca   : > { %2212 = vst.msk [vmem:[#allocation2] sm:$0xff] %vm1552_vm2, %v2208_v27  ;;  %v6635_v34 = vpop.f32.mrb[23].mxu1  ;;  %v6640_v33 = vpop.f32.mrb[7].mxu0  ;;  %v2423_v14 = vsub.f32 %v2279_v30, %v7774_v58 }
 0x4cc   : > { %v2424_v12 = vmul.f32 %v2423_v14, %v7772_v54  ;;  %v2440_v63 = vmul.f32 %v2423_v14, %v7643_v53  ;;  %v2454_v1 = vmul.f32 %v2423_v14, %v7645_v55 }
 0x4cd   : > { %v2349_v16 = vpop.f32.mrb[24].mxu1  ;;  %v2419_v37 = vpop.f32.mrb[8].mxu0 }
 0x4ce   : > { %v2426_v41 = vsub.f32 %v2349_v16, %v7776_v59  ;;  %v2429_v47 = vsub.f32 %v2419_v37, %v7826_v31  ;;  %v6645_v10 = vpop.f32.mrb[25].mxu1  ;;  %v6650_v43 = vpop.f32.mrb[9].mxu0 }
 0x4d0   : > { %v2427_v15 = vmul.f32 %v2426_v41, %v7782_v0  ;;  %v2442_v60 = vmul.f32 %v2426_v41, %v7664_v62  ;;  %v2456_v22 = vmul.f32 %v2426_v41, %v7683_v8  ;;  %v2430_v27 = vmul.f32 %v2429_v47, %v7780_v61 }
 0x4d1   : > { %v2444_v30 = vmul.f32 %v2429_v47, %v7701_v18  ;;  %v2458_v37 = vmul.f32 %v2429_v47, %v7716_v25 }
 0x4d2   : > { %v2428_v34 = vadd.f32 %v2427_v15, %v2424_v12  ;;  %v2443_v33 = vadd.f32 %v2442_v60, %v2440_v63  ;;  %v2457_v16 = vadd.f32 %v2456_v22, %v2454_v1 }
 0x4d4   : > { %v8070_v10 = vadd.f32 %v2430_v27, %v2428_v34  ;;  %v8072_v43 = vadd.f32 %v2444_v30, %v2443_v33  ;;  %v8074_v14 = vadd.f32 %v2458_v37, %v2457_v16  ;;  %v2636_v3 = vpop.f32.mrb[26].mxu1  ;;  %v2715_v32 = vpop.f32.mrb[10].mxu0 }
 0x4d5   : > { %v6655_v49 = vpop.f32.mrb[27].mxu1  ;;  %v6660_v45 = vpop.f32.mrb[11].mxu0  ;;  %v2806_v30 = vmul.f32 2.0, %v2715_v32 }
 0x4d6   : > { %v2438_v41 = vmul.f32 %v8070_v10, %v8070_v10  ;;  %v2452_v12 = vmul.f32 %v8072_v43, %v8072_v43  ;;  %v2466_v27 = vmul.f32 %v8074_v14, %v8074_v14 }
 0x4d8   : > { %v2439_v13 = vadd.f32 1e-08, %v2438_v41  ;;  %v2796_v63 = vpop.f32.mrb[28].mxu1  ;;  %v2882_v1 = vpop.f32.mrb[12].mxu0 }
 0x4d9   : > { %v2804_v47 = vrot.slane %v2796_v63, %v7899_v35  ;;  %v6665_v15 = vpop.f32.mrb[29].mxu1  ;;  %v6670_v60 = vpop.f32.mrb[13].mxu0 }
 0x4da   : > { %v2453_v22 = vadd.f32 %v2452_v12, %v2439_v13  ;;  %v2973_v15 = vmul.f32 2.0, %v2882_v1 }
 0x4db   : > { %v2805_v49 = vadd.f32 %v2804_v47, %v2725_v2  ;;  %v3059_v2 = vpop.xlane.xlu0 %3058 }
 0x4dc   : > { %v8083_v45 = vadd.f32 %v2466_v27, %v2453_v22  ;;  %v3049_v34 = vpop.f32.mrb[14].mxu0  ;;  %v2963_v33 = vpop.f32.mrb[30].mxu1 }
 0x4dd   : > { %v2807_v16 = vsub.f32 %v2805_v49, %v2806_v30  ;;  %v2971_v37 = vrot.slane %v2963_v33, %v7899_v35  ;;  %v6680_v41 = vpop.f32.mrb[15].mxu0  ;;  %v6675_v36 = vpop.f32.mrb[31].mxu1  ;;  %v3140_v22 = vmul.f32 2.0, %v3049_v34  ;;  %v3144_v30 = vstv %s6283_s1  ;;  %s7250_s1 = smov 80  }
 0x4de   : > { %v2640_v33 = vmul.f32 0.20412415, %v2636_v3  ;;  %v3398_v3 = vpop.permute.xlu1 %3397  ;;  %vm2470_vm4 = vcmp.eq.f32.partialorder %v8083_v45, inf  ;;  %vm2472_vm5 = vcmp.eq.f32.partialorder %v8083_v45, 0.0 }
 0x4df   : > { %v2967_v48 = vadd.f32 %v2892_v40, %v2807_v16 }
 0x4e0   : > { %v3130_v63 = vpop.f32.mrb[32].mxu1 }
 0x4e1   : > { %v2972_v13 = vadd.f32 %v2971_v37, %v2967_v48  ;;  %v6685_v12 = vpop.f32.mrb[33].mxu1  ;;  %v3138_v32 = vrot.slane %v3130_v63, %v7899_v35 }
 0x4e3   : > { %v2974_v60 = vsub.f32 %v2972_v13, %v2973_v15 }
 0x4e5   : > { %v3134_v47 = vadd.f32 %v3059_v2, %v2974_v60 }
 0x4e7   : > { %v3139_v27 = vadd.f32 %v3138_v32, %v3134_v47 }
 0x4e9   : > { %v3141_v49 = vsub.f32 %v3139_v27, %v3140_v22 }
 0x4eb   : > { %v3145_v41 = vmul.f32 %v3144_v30, %v3141_v49 }
 0x4ed   : > { %v3146_v36 = vadd.f32 %v3145_v41, %v2640_v33 }
 0x4ef   : > { %v3151_v40 = vadd.f32 %v8052_v4, %v3146_v36 }
 0x4f1   : > { %v3153_v16 = vadd.f32 %v3152_v19, %v3151_v40  ;;  %v3612_v19 = vpop.permute.xlu1 %3611 }
 0x4f3   : > { %v3154_v48 = vsel %vm1552_vm2, %v3153_v16, -inf }
 0x4f4   : > { %3155 = vmax.xlane.f32.xlu0 %v3154_v48 }
 0x4f5   : > { %v3773_v4 = vpop.permute.xlu1 %3772 }
 0x4f9   : > { %v3689_v13 = vpop.permute.xlu1 %3688 }
 0x4fd   : > { %v3857_v12 = vpop.permute.xlu1 %3856 }
 0x501   : > { %v4105_v60 = vpop.permute.xlu1 %4104 }
 0x505   : > { %v4021_v32 = vpop.permute.xlu1 %4020 }
 0x509   : > { %v3933_v2 = vpop.permute.xlu1 %3932 }
 0x50a   : > { %v3935_v47 = vsel %vm1630_vm3, %v3933_v2, 0.0 }
 0x581   : > { %v3156_v1 = vpop.xlane.xlu0 %3155 }
 0x582   : > { %v3157_v37 = vsub.f32 %v3153_v16, %v3156_v1 }
 0x584   : > { %v3158_v63 = vmul.f32 1.442695, %v3157_v37 }
 0x586   : > { %7100 = vpow2.f32 %v3158_v63 }
 0x590   : > { %v7101_v15 = vpop.eup %7100 }
 0x591   : > { %v3160_v34 = vsel %vm1552_vm2, %v7101_v15, 0.0 }
 0x592   : > { %3161 = vadd.xlane.f32.xlu0 %v3160_v34 }
 0x5a8   : > { %3166 = vrot.lane.b32.xlu0 %v7641_v52, %s7245_s29 }
 0x5ac   : > { %3609 = vrot.lane.b32.xlu0 %v7639_v50, %s8845_s0 }
 0x5b0   : > { %3690 = vrot.lane.b32.xlu0 %v7787_v7, %s7245_s29 }
 0x5b4   : > { %3938 = vrot.lane.b32.xlu0 %v7836_v44, %s7245_s29 }
 0x5b8   : > { %3854 = vrot.lane.b32.xlu0 %v7831_v39, %s7245_s29 }
 0x5bc   : > { %4022 = vrot.lane.b32.xlu0 %v7850_v51, %s7245_s29 }
 0x5c0   : > { %3766 = vrot.lane.b32.xlu0 %v7806_v23, %s7245_s29 }
 0x5c4   : > { %4098 = vrot.lane.b32.xlu0 %v7873_v9, %s7245_s29 }
 0x5e3   : > { %3936 = vadd.xlane.f32.xlu0 %v3935_v47 }
 0x61f   : > { %v3162_v22 = vpop.xlane.xlu0 %3161 }
 0x620   : > { %7102 = vrcp.f32 %v3162_v22 }
 0x623   : > { %v3167_v27 = vpop.permute.xlu0 %3166 }
 0x624   : > { %6687 = vmatpush3.msra.mxu0 %v3167_v27 }
 0x625   : > { %6696 = vmatprep.subr.mxu0 %v7232_v11 }
 0x627   : > { %v3610_v30 = vpop.permute.xlu0 %3609 }
 0x62a   : > { %v7103_v49 = vpop.eup %7102 }
 0x62b   : > { %v8108_v33 = vmul.f32 %v7103_v49, %v7101_v15  ;;  %v3691_v41 = vpop.permute.xlu0 %3690 }
 0x62d   : > { %6689 = vmatmul.mubr.msk.f32.vlgmr.msra.gmra.mrb[16].mxu0 %vm1552_vm2, %v8108_v33  ;;  %6694 = vmatmul.mubr.msk.f32.vlgmr.msra.gmra.mrb[34].mxu1 %vm1552_vm2, %v8108_v33 }
 0x62e   : > { %6697 = vmatpush3.msra.mxu0 %v8054_v20  ;;  %6702 = vmatpush3.msra.mxu1 %v3398_v3 }
 0x62f   : > { %v3939_v36 = vpop.permute.xlu0 %3938  ;;  %6698 = vmatprep.mubr.msk.f32.mxu0 %vm7231_vm0, %v7232_v11  ;;  %6703 = vmatprep.mubr.msk.f32.mxu1 %vm7231_vm0, %v7232_v11 }
 0x630   : > { %6706 = vmatprep.subr.mxu0 %v7232_v11  ;;  %6711 = vmatprep.subr.mxu1 %v7232_v11 }
 0x631   : > { %6699 = vmatmul.mubr.msk.f32.vlgmr.msra.gmra.mrb[18].mxu0 %vm1552_vm2, %v8108_v33  ;;  %6704 = vmatmul.mubr.msk.f32.vlgmr.msra.gmra.mrb[36].mxu1 %vm1552_vm2, %v8108_v33 }
 0x632   : > { %6708 = vmatprep.mubr.msk.f32.mxu0 %vm7231_vm0, %v7232_v11  ;;  %6713 = vmatprep.mubr.msk.f32.mxu1 %vm7231_vm0, %v7232_v11 }
 0x633   : > { %v3855_v20 = vpop.permute.xlu0 %3854 }
 0x635   : > { %6707 = vmatpush3.xpose.msk.msra.mxu0 %vm1552_vm2, %v3612_v19  ;;  %6712 = vmatpush3.xpose.msk.msra.mxu1 %vm1630_vm3, %v3691_v41 }
 0x636   : > { %6716 = vmatprep.subr.mxu0 %v7232_v11  ;;  %6721 = vmatprep.subr.mxu1 %v7232_v11 }
 0x637   : > { %v4023_v40 = vpop.permute.xlu0 %4022 }
 0x638   : > { %6709 = vmatmul.mubr.msk.f32.vlgmr.msra.gmra.mrb[20].mxu0 %vm1552_vm2, %v3610_v30  ;;  %6714 = vmatmul.mubr.msk.f32.vlgmr.msra.gmra.mrb[38].mxu1 %vm1630_vm3, %v3689_v13 }
 0x639   : > { %6717 = vmatpush3.xpose.msk.msra.mxu0 %vm1630_vm3, %v3773_v4  ;;  %6722 = vmatpush3.xpose.msk.msra.mxu1 %vm1630_vm3, %v3857_v12 }
 0x63a   : > { %6718 = vmatprep.mubr.msk.f32.mxu0 %vm7231_vm0, %v7232_v11  ;;  %6723 = vmatprep.mubr.msk.f32.mxu1 %vm7231_vm0, %v7232_v11 }
 0x63b   : > { %6726 = vmatprep.subr.mxu0 %v7232_v11  ;;  %6731 = vmatprep.subr.mxu1 %v7232_v11  ;;  %v3767_v16 = vpop.permute.xlu0 %3766 }
 0x63c   : > { %6719 = vmatmul.mubr.msk.f32.vlgmr.msra.gmra.mrb[22].mxu0 %vm1630_vm3, %v7244_v29  ;;  %6724 = vmatmul.mubr.msk.f32.vlgmr.msra.gmra.mrb[40].mxu1 %vm1630_vm3, %v3855_v20  ;;  %v3769_v48 = vsel %vm1630_vm3, %v3767_v16, 0.0 }
 0x63d   : > { %6727 = vmatpush3.xpose.msk.msra.mxu0 %vm1630_vm3, %v3939_v36  ;;  %6732 = vmatpush3.xpose.msk.msra.mxu1 %vm1630_vm3, %v4023_v40 }
 0x63e   : > { %3770 = vadd.xlane.f32.xlu1 %v3769_v48  ;;  %6733 = vmatprep.mubr.msk.f32.mxu1 %vm7231_vm0, %v7232_v11 }
 0x63f   : > { %6728 = vmatprep.mubr.msk.f32.mxu0 %vm7231_vm0, %v7232_v11  ;;  %6736 = vmatprep.subr.mxu0 %v7232_v11  ;;  %v4099_v1 = vpop.permute.xlu0 %4098 }
 0x640   : > { %6734 = vmatmul.mubr.msk.f32.vlgmr.msra.gmra.mrb[42].mxu1 %vm1630_vm3, %v4021_v32  ;;  %6729 = vmatmul.mubr.msk.f32.vlgmr.msra.gmra.mrb[24].mxu0 %vm1630_vm3, %v7244_v29  ;;  %v4101_v37 = vsel %vm1630_vm3, %v4099_v1, 0.0 }
 0x641   : > { %6737 = vmatpush3.xpose.msk.msra.mxu0 %vm1630_vm3, %v4105_v60  ;;  %4102 = vadd.xlane.f32.xlu0 %v4101_v37 }
 0x642   : > { %6738 = vmatprep.mubr.msk.f32.mxu0 %vm7231_vm0, %v7232_v11  ;;  %6746 = vmatprep.subr.mxu0 %v7232_v11 }
 0x643   : > { %6741 = vmatprep.subr.mxu1 %v7232_v11  ;;  %6743 = vmatprep.mubr.msk.f32.mxu1 %vm7231_vm0, %v7232_v11 }
 0x644   : > { %6739 = vmatmul.mubr.msk.f32.vlgmr.msra.gmra.mrb[26].mxu0 %vm1630_vm3, %v7244_v29 }
 0x645   : > { %6748 = vmatprep.mubr.msk.f32.mxu0 %vm7231_vm0, %v7232_v11 }
 0x64f   : > { %4191 = vrot.lane.b32.xlu1 %v7897_v24, %s8845_s0 }
 0x653   : > { %4363 = vrot.lane.b32.xlu1 %v7961_v26, %s7245_s29 }
 0x657   : > { %4290 = vrot.lane.b32.xlu1 %v7932_v42, %s7245_s29 }
 0x65b   : > { %4436 = vrot.lane.b32.xlu1 %v7970_v38, %s7245_s29  ;;  %s6323_s29 = sld [smem:[#allocation3 + $0x3]] }
 0x65f   : > { %4646 = vrot.lane.b32.xlu1 %v7647_v56, %s7247_s23 }
 0x663   : > { %4807 = vrot.lane.b32.xlu1 %v7799_v21, %s7248_s9 }
 0x667   : > { %4723 = vrot.lane.b32.xlu1 %v7795_v17, %s7248_s9 }
 0x66b   : > { %4891 = vrot.lane.b32.xlu1 %v7815_v28, %s7248_s9 }
 0x66f   : > { %5139 = vrot.lane.b32.xlu1 %v7867_v6, %s7248_s9 }
 0x673   : > { %5055 = vrot.lane.b32.xlu1 %v7862_v5, %s7248_s9 }
 0x677   : > { %4967 = vrot.lane.b32.xlu1 %v7844_v57, %s7248_s9 }
 0x6cb   : > { %v3771_v56 = vpop.xlane.xlu1 %3770 }
 0x6cf   : > { %v8191_v63 = vpop.permute.xlu1 %4191 }
 0x6d3   : > { %v8193_v15 = vpop.permute.xlu1 %4363 }
 0x6d7   : > { %v4291_v21 = vpop.permute.xlu1 %4290 }
 0x6d8   : > { %6747 = vmatpush3.msra.mxu0 %v4291_v21 }
 0x6d9   : > { %6756 = vmatprep.subr.mxu0 %v7232_v11 }
 0x700   : > { %v8196_v17 = vpop.f32.mrb[16].mxu0  ;;  %v3318_v28 = vpop.f32.mrb[34].mxu1 }
 0x701   : > { %v6690_v34 = vpop.f32.mrb[17].mxu0  ;;  %v6695_v6 = vpop.f32.mrb[35].mxu1  ;;  %v3470_v3 = vsub.f32 %v3318_v28, %v7774_v58 }
 0x703   : > { %v3471_v60 = vmul.f32 %v3470_v3, %v7772_v54  ;;  %v3487_v32 = vmul.f32 %v3470_v3, %v7643_v53  ;;  %v3501_v2 = vmul.f32 %v3470_v3, %v7645_v55 }
 0x704   : > { %v3392_v5 = vpop.f32.mrb[18].mxu0  ;;  %v3466_v19 = vpop.f32.mrb[36].mxu1 }
 0x705   : > { %v3473_v57 = vsub.f32 %v3392_v5, %v7776_v59  ;;  %v3476_v4 = vsub.f32 %v3466_v19, %v7826_v31  ;;  %v6700_v13 = vpop.f32.mrb[19].mxu0  ;;  %v6705_v12 = vpop.f32.mrb[37].mxu1 }
 0x707   : > { %v3474_v47 = vmul.f32 %v3473_v57, %v7782_v0  ;;  %v3489_v22 = vmul.f32 %v3473_v57, %v7664_v62  ;;  %v3503_v27 = vmul.f32 %v3473_v57, %v7683_v8  ;;  %v3477_v30 = vmul.f32 %v3476_v4, %v7780_v61 }
 0x708   : > { %v3491_v49 = vmul.f32 %v3476_v4, %v7701_v18  ;;  %v3505_v40 = vmul.f32 %v3476_v4, %v7716_v25 }
 0x709   : > { %v3475_v41 = vadd.f32 %v3474_v47, %v3471_v60  ;;  %v3490_v36 = vadd.f32 %v3489_v22, %v3487_v32  ;;  %v3504_v20 = vadd.f32 %v3503_v27, %v3501_v2 }
 0x70b   : > { %v8210_v16 = vadd.f32 %v3477_v30, %v3475_v41  ;;  %v8212_v48 = vadd.f32 %v3491_v49, %v3490_v36  ;;  %v8214_v1 = vadd.f32 %v3505_v40, %v3504_v20  ;;  %v3683_v37 = vpop.f32.mrb[20].mxu0  ;;  %v3762_v21 = vpop.f32.mrb[38].mxu1 }
 0x70c   : > { %v6710_v28 = vpop.f32.mrb[21].mxu0  ;;  %v6715_v34 = vpop.f32.mrb[39].mxu1  ;;  %v3852_v2 = vmul.f32 2.0, %v3762_v21 }
 0x70d   : > { %v3485_v6 = vmul.f32 %v8210_v16, %v8210_v16  ;;  %v3499_v5 = vmul.f32 %v8212_v48, %v8212_v48  ;;  %v3513_v32 = vmul.f32 %v8214_v1, %v8214_v1  ;;  %v3937_v40 = vpop.xlane.xlu0 %3936 }
 0x70f   : > { %v3486_v3 = vadd.f32 1e-08, %v3485_v6  ;;  %v3842_v19 = vpop.f32.mrb[22].mxu0  ;;  %v3928_v57 = vpop.f32.mrb[40].mxu1 }
 0x710   : > { %v3850_v4 = vrot.slane %v3842_v19, %v7899_v35  ;;  %v6720_v13 = vpop.f32.mrb[23].mxu0  ;;  %v6725_v12 = vpop.f32.mrb[41].mxu1  ;;  %v4018_v6 = vmul.f32 2.0, %v3928_v57 }
 0x711   : > { %v3500_v60 = vadd.f32 %v3499_v5, %v3486_v3 }
 0x712   : > { %v3851_v47 = vadd.f32 %v3850_v4, %v3771_v56  ;;  %v4103_v56 = vpop.xlane.xlu0 %4102 }
 0x713   : > { %v8223_v22 = vadd.f32 %v3513_v32, %v3500_v60  ;;  %v4094_v27 = vpop.f32.mrb[42].mxu1  ;;  %v4008_v30 = vpop.f32.mrb[24].mxu0  ;;  %v4188_v60 = vstv %s6303_s28  ;;  %s7254_s28 = smov 36  }
 0x714   : > { %v3853_v49 = vsub.f32 %v3851_v47, %v3852_v2  ;;  %v4016_v41 = vrot.slane %v4008_v30, %v7899_v35  ;;  %v6735_v36 = vpop.f32.mrb[43].mxu1  ;;  %v6730_v20 = vpop.f32.mrb[25].mxu0  ;;  %v4184_v13 = vmul.f32 2.0, %v4094_v27  ;;  %v3687_v2 = vmul.f32 0.20412415, %v3683_v37 }
 0x715   : > { %v4195_v36 = vstv %s6304_s3  ;;  %s7255_s3 = smov 40   ;;  %vm3517_vm6 = vcmp.eq.f32.partialorder %v8223_v22, inf  ;;  %vm3519_vm7 = vcmp.eq.f32.partialorder %v8223_v22, 0.0 }
 0x716   : > { %v4012_v28 = vadd.f32 %v3937_v40, %v3853_v49 }
 0x717   : > { %v4174_v34 = vpop.f32.mrb[26].mxu0 }
 0x718   : > { %v4017_v3 = vadd.f32 %v4016_v41, %v4012_v28  ;;  %v6740_v5 = vpop.f32.mrb[27].mxu0  ;;  %v4182_v21 = vrot.slane %v4174_v34, %v7899_v35 }
 0x71a   : > { %v4019_v19 = vsub.f32 %v4017_v3, %v4018_v6 }
 0x71c   : > { %v4178_v4 = vadd.f32 %v4103_v56, %v4019_v19 }
 0x71e   : > { %v4183_v12 = vadd.f32 %v4182_v21, %v4178_v4 }
 0x720   : > { %v4185_v32 = vsub.f32 %v4183_v12, %v4184_v13 }
 0x722   : > { %v4189_v47 = vmul.f32 %v4188_v60, %v4185_v32 }
 0x724   : > { %v4190_v30 = vadd.f32 %v4189_v47, %v3687_v2  ;;  %v8846_v47 = vmov 3  }
 0x726   : > { %v4194_v49 = vadd.f32 %v8191_v63, %v4190_v30  ;;  %v4437_v63 = vpop.permute.xlu1 %4436  ;;  %v8852_v30 = vmov 2  }
 0x728   : > { %v4196_v20 = vadd.f32 %v4195_v36, %v4194_v49 }
 0x72a   : > { %v4197_v57 = vsel %vm1552_vm2, %v4196_v20, -inf  ;;  %v4647_v37 = vpop.permute.xlu1 %4646 }
 0x72b   : > { %4198 = vmax.xlane.f32.xlu0 %v4197_v57 }
 0x72e   : > { %v4808_v6 = vpop.permute.xlu1 %4807 }
 0x7b8   : > { %v4199_v41 = vpop.xlane.xlu0 %4198 }
 0x7b9   : > { %v4200_v40 = vsub.f32 %v4196_v20, %v4199_v41 }
 0x7bb   : > { %v4201_v28 = vmul.f32 1.442695, %v4200_v40 }
 0x7bd   : > { %7104 = vpow2.f32 %v4201_v28 }
 0x7c7   : > { %v7105_v34 = vpop.eup %7104 }
 0x7c8   : > { %v4203_v27 = vsel %vm1552_vm2, %v7105_v34, 0.0 }
 0x7c9   : > { %4204 = vadd.xlane.f32.xlu0 %v4203_v27 }
 0x7df   : > { %4208 = vrot.lane.b32.xlu0 %v7641_v52, %s8845_s0 }
 0x7e3   : > { %4644 = vrot.lane.b32.xlu0 %v7639_v50, %s7247_s23  ;;  %v4724_v50 = vpop.permute.xlu1 %4723 }
 0x7e7   : > { %4725 = vrot.lane.b32.xlu0 %v7787_v7, %s7248_s9  ;;  %v4892_v7 = vpop.permute.xlu1 %4891 }
 0x7eb   : > { %4973 = vrot.lane.b32.xlu0 %v7836_v44, %s7248_s9  ;;  %v5140_v3 = vpop.permute.xlu1 %5139 }
 0x7ef   : > { %4889 = vrot.lane.b32.xlu0 %v7831_v39, %s7248_s9  ;;  %v5056_v5 = vpop.permute.xlu1 %5055 }
 0x7f3   : > { %5057 = vrot.lane.b32.xlu0 %v7850_v51, %s7248_s9  ;;  %v4968_v44 = vpop.permute.xlu1 %4967 }
 0x7f4   : > { %v4970_v19 = vsel %vm1630_vm3, %v4968_v44, 0.0 }
 0x7f7   : > { %4801 = vrot.lane.b32.xlu0 %v7806_v23, %s7248_s9 }
 0x7fb   : > { %5133 = vrot.lane.b32.xlu0 %v7873_v9, %s7248_s9 }
 0x81a   : > { %4971 = vadd.xlane.f32.xlu0 %v4970_v19 }
 0x856   : > { %v4205_v39 = vpop.xlane.xlu0 %4204 }
 0x857   : > { %7106 = vrcp.f32 %v4205_v39 }
 0x85a   : > { %v4209_v21 = vpop.permute.xlu0 %4208 }
 0x85b   : > { %6742 = vmatpush3.msra.mxu1 %v4209_v21 }
 0x85c   : > { %6751 = vmatprep.subr.mxu1 %v7232_v11 }
 0x85e   : > { %v4645_v51 = vpop.permute.xlu0 %4644 }
 0x861   : > { %v7107_v23 = vpop.eup %7106 }
 0x862   : > { %v8248_v56 = vmul.f32 %v7107_v23, %v7105_v34  ;;  %v4726_v4 = vpop.permute.xlu0 %4725 }
 0x864   : > { %6744 = vmatmul.mubr.msk.f32.vlgmr.msra.gmra.mrb[44].mxu1 %vm1552_vm2, %v8248_v56  ;;  %6749 = vmatmul.mubr.msk.f32.vlgmr.msra.gmra.mrb[28].mxu0 %vm1552_vm2, %v8248_v56 }
 0x865   : > { %6752 = vmatpush3.msra.mxu1 %v8193_v15  ;;  %6757 = vmatpush3.msra.mxu0 %v4437_v63 }
 0x866   : > { %v4974_v9 = vpop.permute.xlu0 %4973  ;;  %6753 = vmatprep.mubr.msk.f32.mxu1 %vm7231_vm0, %v7232_v11  ;;  %6758 = vmatprep.mubr.msk.f32.mxu0 %vm7231_vm0, %v7232_v11 }
 0x867   : > { %6761 = vmatprep.subr.mxu1 %v7232_v11  ;;  %6766 = vmatprep.subr.mxu0 %v7232_v11 }
 0x868   : > { %6754 = vmatmul.mubr.msk.f32.vlgmr.msra.gmra.mrb[46].mxu1 %vm1552_vm2, %v8248_v56  ;;  %6759 = vmatmul.mubr.msk.f32.vlgmr.msra.gmra.mrb[30].mxu0 %vm1552_vm2, %v8248_v56 }
 0x869   : > { %6763 = vmatprep.mubr.msk.f32.mxu1 %vm7231_vm0, %v7232_v11  ;;  %6768 = vmatprep.mubr.msk.f32.mxu0 %vm7231_vm0, %v7232_v11 }
 0x86a   : > { %v4890_v15 = vpop.permute.xlu0 %4889 }
 0x86c   : > { %6762 = vmatpush3.xpose.msk.msra.mxu1 %vm1552_vm2, %v4647_v37  ;;  %6767 = vmatpush3.xpose.msk.msra.mxu0 %vm1630_vm3, %v4726_v4 }
 0x86d   : > { %6771 = vmatprep.subr.mxu1 %v7232_v11  ;;  %6776 = vmatprep.subr.mxu0 %v7232_v11 }
 0x86e   : > { %v5058_v13 = vpop.permute.xlu0 %5057 }
 0x86f   : > { %6764 = vmatmul.mubr.msk.f32.vlgmr.msra.gmra.mrb[48].mxu1 %vm1552_vm2, %v4645_v51  ;;  %6769 = vmatmul.mubr.msk.f32.vlgmr.msra.gmra.mrb[32].mxu0 %vm1630_vm3, %v4724_v50 }
 0x870   : > { %6772 = vmatpush3.xpose.msk.msra.mxu1 %vm1630_vm3, %v4808_v6  ;;  %6777 = vmatpush3.xpose.msk.msra.mxu0 %vm1630_vm3, %v4892_v7 }
 0x871   : > { %6773 = vmatprep.mubr.msk.f32.mxu1 %vm7231_vm0, %v7232_v11  ;;  %6778 = vmatprep.mubr.msk.f32.mxu0 %vm7231_vm0, %v7232_v11 }
 0x872   : > { %6781 = vmatprep.subr.mxu1 %v7232_v11  ;;  %6786 = vmatprep.subr.mxu0 %v7232_v11  ;;  %v4802_v12 = vpop.permute.xlu0 %4801 }
 0x873   : > { %6774 = vmatmul.mubr.msk.f32.vlgmr.msra.gmra.mrb[50].mxu1 %vm1630_vm3, %v7244_v29  ;;  %6779 = vmatmul.mubr.msk.f32.vlgmr.msra.gmra.mrb[34].mxu0 %vm1630_vm3, %v4890_v15  ;;  %v4804_v60 = vsel %vm1630_vm3, %v4802_v12, 0.0 }
 0x874   : > { %6782 = vmatpush3.xpose.msk.msra.mxu1 %vm1630_vm3, %v4974_v9  ;;  %6787 = vmatpush3.xpose.msk.msra.mxu0 %vm1630_vm3, %v5058_v13 }
 0x875   : > { %4805 = vadd.xlane.f32.xlu1 %v4804_v60  ;;  %6788 = vmatprep.mubr.msk.f32.mxu0 %vm7231_vm0, %v7232_v11 }
 0x876   : > { %6783 = vmatprep.mubr.msk.f32.mxu1 %vm7231_vm0, %v7232_v11  ;;  %6791 = vmatprep.subr.mxu1 %v7232_v11  ;;  %v5134_v32 = vpop.permute.xlu0 %5133 }
 0x877   : > { %6789 = vmatmul.mubr.msk.f32.vlgmr.msra.gmra.mrb[36].mxu0 %vm1630_vm3, %v5056_v5  ;;  %6784 = vmatmul.mubr.msk.f32.vlgmr.msra.gmra.mrb[52].mxu1 %vm1630_vm3, %v7244_v29  ;;  %v5136_v2 = vsel %vm1630_vm3, %v5134_v32, 0.0 }
 0x878   : > { %6792 = vmatpush3.xpose.msk.msra.mxu1 %vm1630_vm3, %v5140_v3  ;;  %5137 = vadd.xlane.f32.xlu0 %v5136_v2 }
 0x879   : > { %6793 = vmatprep.mubr.msk.f32.mxu1 %vm7231_vm0, %v7232_v11  ;;  %6801 = vmatprep.subr.mxu1 %v7232_v11 }
 0x87a   : > { %6796 = vmatprep.subr.mxu0 %v7232_v11  ;;  %6798 = vmatprep.mubr.msk.f32.mxu0 %vm7231_vm0, %v7232_v11 }
 0x87b   : > { %6794 = vmatmul.mubr.msk.f32.vlgmr.msra.gmra.mrb[54].mxu1 %vm1630_vm3, %v7244_v29  ;;  %v8847_v29 = vmov 1   ;;  %vm3246_vm3 = vcmask 130112  }
 0x87c   : > { %6803 = vmatprep.mubr.msk.f32.mxu1 %vm7231_vm0, %v7232_v11 }
 0x886   : > { %5226 = vrot.lane.b32.xlu1 %v7897_v24, %s7247_s23  ;;  %v8848_v24 = vmov 5  }
 0x88a   : > { %5325 = vrot.lane.b32.xlu1 %v7932_v42, %s7248_s9  ;;  %v8849_v42 = vmov 6  }
 0x88e   : > { %5398 = vrot.lane.b32.xlu1 %v7961_v26, %s7248_s9  ;;  %v8850_v26 = vmov 4  }
 0x892   : > { %5471 = vrot.lane.b32.xlu1 %v7970_v38, %s7248_s9  ;;  %v8851_v38 = vmov 0   ;;  %s7253_s9 = smov 16  }
 0x896   : > { %2487 = vperm.xlu1 %7066, %v7988_v46  }
 0x89a   : > { %7067 = vset.pattern.permute.xlu1 %v8846_v47 }
 0x89b   : > { %2507 = vperm.xlu1 %7067, %v7988_v46  }
 0x89f   : > { %7070 = vset.pattern.permute.xlu1 %v8847_v29 }
 0x8a0   : > { %3534 = vperm.xlu1 %7070, %v8108_v33  }
 0x8a4   : > { %7071 = vset.pattern.permute.xlu1 %v8848_v24 }
 0x8a5   : > { %2527 = vperm.xlu1 %7071, %v7988_v46  }
 0x8a9   : > { %7072 = vset.pattern.permute.xlu1 %v8849_v42 }
 0x8aa   : > { %2537 = vperm.xlu1 %7072, %v7988_v46  }
 0x8ae   : > { %7073 = vset.pattern.permute.xlu1 %v8846_v47 }
 0x8af   : > { %3554 = vperm.xlu1 %7073, %v8108_v33  }
 0x8b3   : > { %7075 = vset.pattern.permute.xlu1 %v8850_v26 }
 0x8b4   : > { %3564 = vperm.xlu1 %7075, %v8108_v33  }
 0x8b8   : > { %7076 = vset.pattern.permute.xlu1 %v8848_v24 }
 0x8b9   : > { %3574 = vperm.xlu1 %7076, %v8108_v33  }
 0x8bd   : > { %7077 = vset.pattern.permute.xlu1 %v8849_v42 }
 0x8be   : > { %3584 = vperm.xlu1 %7077, %v8108_v33  }
 0x8c2   : > { %7079 = vset.pattern.permute.xlu1 %v8851_v38 }
 0x8c3   : > { %3529 = vperm.xlu1 %7079, %v8108_v33  }
 0x8c7   : > { %7081 = vset.pattern.permute.xlu1 %v8852_v30 }
 0x902   : > { %v4806_v36 = vpop.xlane.xlu1 %4805 }
 0x906   : > { %v8337_v49 = vpop.permute.xlu1 %5226 }
 0x90a   : > { %v5326_v20 = vpop.permute.xlu1 %5325 }
 0x90b   : > { %6802 = vmatpush3.msra.mxu1 %v5326_v20 }
 0x90c   : > { %6811 = vmatprep.subr.mxu1 %v7232_v11 }
 0x937   : > { %v4359_v57 = vpop.f32.mrb[28].mxu0  ;;  %v8340_v41 = vpop.f32.mrb[44].mxu1 }
 0x938   : > { %v6745_v40 = vpop.f32.mrb[45].mxu1  ;;  %v4509_v28 = vsub.f32 %v4359_v57, %v7774_v58  ;;  %v6750_v34 = vpop.f32.mrb[29].mxu0 }
 0x93a   : > { %v4510_v3 = vmul.f32 %v4509_v28, %v7772_v54  ;;  %v4526_v5 = vmul.f32 %v4509_v28, %v7643_v53  ;;  %v4540_v44 = vmul.f32 %v4509_v28, %v7645_v55 }
 0x93b   : > { %v4432_v27 = vpop.f32.mrb[46].mxu1  ;;  %v4505_v63 = vpop.f32.mrb[30].mxu0 }
 0x93c   : > { %v4512_v37 = vsub.f32 %v4432_v27, %v7776_v59  ;;  %v4515_v6 = vsub.f32 %v4505_v63, %v7826_v31  ;;  %v6760_v50 = vpop.f32.mrb[31].mxu0  ;;  %v6755_v7 = vpop.f32.mrb[47].mxu1 }
 0x93e   : > { %v4513_v19 = vmul.f32 %v4512_v37, %v7782_v0  ;;  %v4528_v39 = vmul.f32 %v4512_v37, %v7664_v62  ;;  %v4542_v21 = vmul.f32 %v4512_v37, %v7683_v8  ;;  %v4516_v51 = vmul.f32 %v4515_v6, %v7780_v61 }
 0x93f   : > { %v4530_v23 = vmul.f32 %v4515_v6, %v7701_v18  ;;  %v4544_v13 = vmul.f32 %v4515_v6, %v7716_v25 }
 0x940   : > { %v4514_v4 = vadd.f32 %v4513_v19, %v4510_v3  ;;  %v4529_v9 = vadd.f32 %v4528_v39, %v4526_v5  ;;  %v4543_v15 = vadd.f32 %v4542_v21, %v4540_v44 }
 0x942   : > { %v8354_v12 = vadd.f32 %v4516_v51, %v4514_v4  ;;  %v8356_v60 = vadd.f32 %v4530_v23, %v4529_v9  ;;  %v8358_v32 = vadd.f32 %v4544_v13, %v4543_v15  ;;  %v4797_v2 = vpop.f32.mrb[32].mxu0  ;;  %v4718_v20 = vpop.f32.mrb[48].mxu1 }
 0x943   : > { %v6770_v57 = vpop.f32.mrb[33].mxu0  ;;  %v6765_v28 = vpop.f32.mrb[49].mxu1  ;;  %v4887_v44 = vmul.f32 2.0, %v4797_v2 }
 0x944   : > { %v4524_v40 = vmul.f32 %v8354_v12, %v8354_v12  ;;  %v4538_v27 = vmul.f32 %v8356_v60, %v8356_v60  ;;  %v4552_v5 = vmul.f32 %v8358_v32, %v8358_v32  ;;  %v4972_v13 = vpop.xlane.xlu0 %4971 }
 0x946   : > { %v4525_v34 = vadd.f32 1e-08, %v4524_v40  ;;  %v4877_v63 = vpop.f32.mrb[50].mxu1  ;;  %v4963_v37 = vpop.f32.mrb[34].mxu0 }
 0x947   : > { %v4885_v6 = vrot.slane %v4877_v63, %v7899_v35  ;;  %v6775_v50 = vpop.f32.mrb[51].mxu1  ;;  %v6780_v7 = vpop.f32.mrb[35].mxu0  ;;  %v5053_v28 = vmul.f32 2.0, %v4963_v37 }
 0x948   : > { %v4539_v3 = vadd.f32 %v4538_v27, %v4525_v34 }
 0x949   : > { %v4886_v19 = vadd.f32 %v4885_v6, %v4806_v36  ;;  %v5138_v36 = vpop.xlane.xlu0 %5137 }
 0x94a   : > { %v8367_v39 = vadd.f32 %v4552_v5, %v4539_v3  ;;  %v5129_v21 = vpop.f32.mrb[36].mxu0  ;;  %v5043_v51 = vpop.f32.mrb[52].mxu1  ;;  %v5223_v3 = vstv %s6323_s29  ;;  %s7256_s29 = smov 44  }
 0x94b   : > { %v4888_v23 = vsub.f32 %v4886_v19, %v4887_v44  ;;  %v6790_v4 = vpop.f32.mrb[37].mxu0  ;;  %v5051_v9 = vrot.slane %v5043_v51, %v7899_v35  ;;  %v6785_v15 = vpop.f32.mrb[53].mxu1  ;;  %v5219_v50 = vmul.f32 2.0, %v5129_v21  ;;  %v4722_v44 = vmul.f32 0.20412415, %v4718_v20 }
 0x94c   : > { %v5230_v4 = vstv %s6324_s30  ;;  %s7257_s30 = smov 8   ;;  %vm4556_vm8 = vcmp.eq.f32.partialorder %v8367_v39, inf  ;;  %vm4558_vm9 = vcmp.eq.f32.partialorder %v8367_v39, 0.0 }
 0x94d   : > { %v5047_v57 = vadd.f32 %v4972_v13, %v4888_v23 }
 0x94e   : > { %v5209_v40 = vpop.f32.mrb[54].mxu1 }
 0x94f   : > { %v5052_v34 = vadd.f32 %v5051_v9, %v5047_v57  ;;  %v6795_v27 = vpop.f32.mrb[55].mxu1  ;;  %v5217_v2 = vrot.slane %v5209_v40, %v7899_v35 }
 0x951   : > { %v5054_v63 = vsub.f32 %v5052_v34, %v5053_v28 }
 0x953   : > { %v5213_v6 = vadd.f32 %v5138_v36, %v5054_v63 }
 0x955   : > { %v5218_v7 = vadd.f32 %v5217_v2, %v5213_v6  ;;  %v8854_v6 = vmov 0.0|0.0  }
 0x957   : > { %v5220_v5 = vsub.f32 %v5218_v7, %v5219_v50  ;;  %v8400_v50 = vld [vmem:[%s7765_s5] sm:$0xff]  ;;  %s7249_s5 = smov 32  }
 0x959   : > { %v5224_v19 = vmul.f32 %v5223_v3, %v5220_v5 }
 0x95b   : > { %v5225_v51 = vadd.f32 %v5224_v19, %v4722_v44 }
 0x95d   : > { %v5229_v23 = vadd.f32 %v8337_v49, %v5225_v51  ;;  %v8853_v49 = vmov 7  }
 0x95f   : > { %v5231_v15 = vadd.f32 %v5230_v4, %v5229_v23 }
 0x961   : > { %v5232_v37 = vsel %vm1552_vm2, %v5231_v15, -inf }
 0x962   : > { %5233 = vmax.xlane.f32.xlu0 %v5232_v37 }
 0x9ef   : > { %v5234_v9 = vpop.xlane.xlu0 %5233 }
 0x9f0   : > { %v5235_v13 = vsub.f32 %v5231_v15, %v5234_v9 }
 0x9f2   : > { %v5236_v35 = vmul.f32 1.442695, %v5235_v13 }
 0x9f4   : > { %7108 = vpow2.f32 %v5236_v35 }
 0x9fe   : > { %v7109_v57 = vpop.eup %7108 }
 0x9ff   : > { %v5238_v21 = vsel %vm1552_vm2, %v7109_v57, 0.0 }
 0xa00   : > { %5239 = vadd.xlane.f32.xlu0 %v5238_v21 }
 0xa16   : > { %5243 = vrot.lane.b32.xlu0 %v7641_v52, %s7247_s23  ;;  %v5399_v52 = vpop.permute.xlu1 %5398  ;;  %s7252_s23 = smov 48  }
 0xa1a   : > { %2517 = vperm.xlu0 %7068, %v7988_v46   ;;  %v5472_v40 = vpop.permute.xlu1 %5471 }
 0xa1e   : > { %7069 = vset.pattern.permute.xlu0 %v8852_v30  ;;  %v2488_v34 = vpop.permute.xlu1 %2487 }
 0xa1f   : > { %2497 = vperm.xlu0 %7069, %v7988_v46  }
 0xa22   : > { %v2508_v2 = vpop.permute.xlu1 %2507 }
 0xa23   : > { %3544 = vperm.xlu0 %7069, %v8108_v33   ;;  %v2510_v4 = vmul.f32 %v8400_v50, %v2508_v2 }
 0xa27   : > { %7074 = vset.pattern.permute.xlu0 %v8853_v49 }
 0xa28   : > { %2547 = vperm.xlu0 %7074, %v7988_v46  }
 0xa2c   : > { %3594 = vperm.xlu0 %7074, %v8108_v33  }
 0xa30   : > { %7078 = vset.pattern.permute.xlu0 %v8851_v38 }
 0xa31   : > { %2482 = vperm.xlu0 %7078, %v7988_v46   ;;  %v3535_v46 = vpop.permute.xlu1 %3534 }
 0xa32   : > { %v3537_v23 = vmul.f32 %v8400_v50, %v3535_v46 }
 0xa35   : > { %7080 = vset.pattern.permute.xlu0 %v8847_v29  ;;  %v2528_v3 = vpop.permute.xlu1 %2527 }
 0xa39   : > { %v2538_v19 = vpop.permute.xlu1 %2537 }
 0xa3a   : > { %v2540_v51 = vmul.f32 %v8400_v50, %v2538_v19 }
 0xa8d   : > { %v5240_v20 = vpop.xlane.xlu0 %5239 }
 0xa8e   : > { %7110 = vrcp.f32 %v5240_v20 }
 0xa8f   : > { %7112 = vrsqrt.f32 %v8083_v45 }
 0xa90   : > { %7114 = vrsqrt.f32 %v8223_v22 }
 0xa91   : > { %v5244_v28 = vpop.permute.xlu0 %5243  ;;  %7116 = vrsqrt.f32 %v8367_v39 }
 0xa92   : > { %6797 = vmatpush3.msra.mxu0 %v5244_v28 }
 0xa93   : > { %6806 = vmatprep.subr.mxu0 %v7232_v11 }
 0xa98   : > { %v7111_v27 = vpop.eup %7110 }
 0xa99   : > { %v5242_v63 = vmul.f32 %v7111_v27, %v7109_v57  ;;  %v2518_v36 = vpop.permute.xlu0 %2517 }
 0xa9b   : > { %5618 = vperm.xlu1 %7081, %v5242_v63   ;;  %5608 = vperm.xlu0 %7080, %v5242_v63  }
 0xa9c   : > { %6799 = vmatmul.mubr.msk.f32.vlgmr.msra.gmra.mrb[38].mxu0 %vm1552_vm2, %v5242_v63  ;;  %6804 = vmatmul.mubr.msk.f32.vlgmr.msra.gmra.mrb[56].mxu1 %vm1552_vm2, %v5242_v63 }
 0xa9d   : > { %6807 = vmatpush3.msra.mxu0 %v5399_v52  ;;  %6812 = vmatpush3.msra.mxu1 %v5472_v40 }
 0xa9e   : > { %6808 = vmatprep.mubr.msk.f32.mxu0 %vm7231_vm0, %v7232_v11  ;;  %6813 = vmatprep.mubr.msk.f32.mxu1 %vm7231_vm0, %v7232_v11  ;;  %v2498_v33 = vpop.permute.xlu0 %2497 }
 0xa9f   : > { %7082 = vset.pattern.permute.xlu1 %v8846_v47  ;;  %7084 = vset.pattern.permute.xlu0 %v8848_v24  ;;  %v2500_v7 = vmul.f32 %v8400_v50, %v2498_v33 }
 0xaa0   : > { %6809 = vmatmul.mubr.msk.f32.vlgmr.msra.gmra.mrb[40].mxu0 %vm1552_vm2, %v5242_v63  ;;  %6814 = vmatmul.mubr.msk.f32.vlgmr.msra.gmra.mrb[58].mxu1 %vm1552_vm2, %v5242_v63  ;;  %vm2560_vm2 = vcmask 917248  }
 0xaa1   : > { %5628 = vperm.xlu1 %7082, %v5242_v63   ;;  %5648 = vperm.xlu0 %7084, %v5242_v63  }
 0xaa2   : > { %6909 = vmatprep.subr.bf16.mxu0 %v8854_v6  ;;  %6939 = vmatprep.subr.bf16.mxu1 %v8854_v6  ;;  %v3545_v5 = vpop.permute.xlu0 %3544 }
 0xaa3   : > { %6824 = vmatprep.mubr.msk.f32.mxu1 %vm7231_vm0, %v7232_v11  ;;  %v3547_v44 = vmul.f32 %v8400_v50, %v3545_v5 }
 0xaa5   : > { %7083 = vset.pattern.permute.xlu1 %v8850_v26  ;;  %2502 = vrot.lane.b32.xlu0 %v2500_v7, %s8844_s27 }
 0xaa6   : > { %5638 = vperm.xlu1 %7083, %v5242_v63   ;;  %7087 = vset.pattern.permute.xlu0 %v8847_v29  ;;  %v2490_v29 = vmul.f32 %v8400_v50, %v2488_v34 }
 0xaa7   : > { %v2548_v37 = vpop.permute.xlu0 %2547 }
 0xaa8   : > { %v2550_v13 = vmul.f32 %v8400_v50, %v2548_v37 }
 0xaa9   : > { %4573 = vperm.xlu0 %7087, %v8248_v56  }
 0xaaa   : > { %7085 = vset.pattern.permute.xlu1 %v8849_v42 }
 0xaab   : > { %5658 = vperm.xlu1 %7085, %v5242_v63  }
 0xaad   : > { %3549 = vrot.lane.b32.xlu0 %v3547_v44, %s8844_s27  ;;  %v7113_v44 = vpop.eup %7112 }
 0xaae   : > { %7090 = vset.pattern.permute.xlu0 %v8850_v26  ;;  %v2520_v26 = vmul.f32 %v8400_v50, %v2518_v36 }
 0xaaf   : > { %7086 = vset.pattern.permute.xlu1 %v8853_v49 }
 0xab0   : > { %5668 = vperm.xlu1 %7086, %v5242_v63  }
 0xab1   : > { %2542 = vrot.lane.b32.xlu0 %v2540_v51, %s7249_s5 }
 0xab4   : > { %2492 = vrot.lane.b32.xlu1 %v2490_v29, %s8845_s0  ;;  %v2469_v29 = vmul.f32 %v7113_v44, %v8083_v45 }
 0xab5   : > { %4603 = vperm.xlu0 %7090, %v8248_v56   ;;  %7088 = vset.pattern.permute.xlu1 %v8852_v30  ;;  %v3555_v30 = vpop.permute.xlu1 %3554 }
 0xab6   : > { %v3557_v15 = vmul.f32 %v8400_v50, %v3555_v30 }
 0xab8   : > { %2512 = vrot.lane.b32.xlu1 %v2510_v4, %s7250_s1 }
 0xab9   : > { %7091 = vset.pattern.permute.xlu0 %v8848_v24  ;;  %v2530_v24 = vmul.f32 %v8400_v50, %v2528_v3  ;;  %v3565_v9 = vpop.permute.xlu1 %3564 }
 0xaba   : > { %4613 = vperm.xlu0 %7091, %v8248_v56   ;;  %v3567_v35 = vmul.f32 %v8400_v50, %v3565_v9 }
 0xabc   : > { %2522 = vrot.lane.b32.xlu1 %v2520_v26, %s7251_s24 }
 0xabd   : > { %v3575_v57 = vpop.permute.xlu1 %3574 }
 0xabe   : > { %7093 = vset.pattern.permute.xlu0 %v8851_v38 }
 0xabf   : > { %5603 = vperm.xlu0 %7093, %v5242_v63  }
 0xac0   : > { %3539 = vrot.lane.b32.xlu1 %v3537_v23, %s8845_s0  ;;  %v2471_v23 = vsel %vm2470_vm4, %v8083_v45, %v2469_v29  ;;  %vm3483_vm4 = vcmask 392544  }
 0xac1   : > { %v3585_v21 = vpop.permute.xlu1 %3584 }
 0xac3   : > { %7094 = vset.pattern.permute.xlu0 %v8853_v49  ;;  %v3587_v49 = vmul.f32 %v8400_v50, %v3585_v21 }
 0xac4   : > { %4583 = vperm.xlu1 %7088, %v8248_v56   ;;  %4633 = vperm.xlu0 %7094, %v8248_v56  }
 0xac5   : > { %v8451_v20 = vpop.permute.xlu1 %3529 }
 0xac8   : > { %2532 = vrot.lane.b32.xlu1 %v2530_v24, %s7252_s23  ;;  %v2473_v24 = vand.u32 2147483648, %v8083_v45 }
 0xac9   : > { %7089 = vset.pattern.permute.xlu1 %v8846_v47  ;;  %v3577_v47 = vmul.f32 %v8400_v50, %v3575_v57 }
 0xacc   : > { %4593 = vperm.xlu1 %7089, %v8248_v56  }
 0xad0   : > { %3559 = vrot.lane.b32.xlu1 %v3557_v15, %s7250_s1  ;;  %v2474_v15 = vsel %vm2472_vm5, %v2473_v24, %v2471_v23  ;;  %vm3497_vm5 = vcmask 425344  }
 0xad1   : > { %7092 = vset.pattern.permute.xlu1 %v8849_v42  ;;  %v3595_v42 = vpop.permute.xlu0 %3594 }
 0xad2   : > { %v3597_v52 = vmul.f32 %v8400_v50, %v3595_v42 }
 0xad4   : > { %2552 = vrot.lane.b32.xlu1 %v2550_v13, %s7253_s9 }
 0xad5   : > { %v2483_v40 = vpop.permute.xlu0 %2482 }
 0xad8   : > { %3569 = vrot.lane.b32.xlu1 %v3567_v35, %s7251_s24 }
 0xadc   : > { %3579 = vrot.lane.b32.xlu1 %v3577_v47, %s7252_s23 }
 0xae0   : > { %4623 = vperm.xlu1 %7092, %v8248_v56  }
 0xae4   : > { %3589 = vrot.lane.b32.xlu1 %v3587_v49, %s7249_s5 }
 0xae5   : > { %7095 = vset.pattern.permute.xlu1 %v8851_v38 }
 0xae8   : > { %3599 = vrot.lane.b32.xlu1 %v3597_v52, %s7253_s9 }
 0xb1a   : > { %v5619_v28 = vpop.permute.xlu1 %5618  ;;  %v5609_v34 = vpop.permute.xlu0 %5608 }
 0xb1b   : > { %v5621_v27 = vmul.f32 %v8400_v50, %v5619_v28  ;;  %v5611_v63 = vmul.f32 %v8400_v50, %v5609_v34 }
 0xb1d   : > { %5623 = vrot.lane.b32.xlu1 %v5621_v27, %s8844_s27  ;;  %5613 = vrot.lane.b32.xlu0 %v5611_v63, %s8845_s0  ;;  %v3532_v63 = vmul.f32 %v8400_v50, %v8451_v20 }
 0xb20   : > { %v5629_v2 = vpop.permute.xlu1 %5628  ;;  %v5649_v36 = vpop.permute.xlu0 %5648 }
 0xb21   : > { %v5631_v38 = vmul.f32 %v8400_v50, %v5629_v2  ;;  %v5651_v46 = vmul.f32 %v8400_v50, %v5649_v36 }
 0xb23   : > { %5633 = vrot.lane.b32.xlu0 %v5631_v38, %s7250_s1  ;;  %v7115_v38 = vpop.eup %7114 }
 0xb24   : > { %v2503_v4 = vpop.permute.xlu0 %2502 }
 0xb25   : > { %v5639_v33 = vpop.permute.xlu1 %5638 }
 0xb26   : > { %v5641_v7 = vmul.f32 %v8400_v50, %v5639_v33 }
 0xb27   : > { %5653 = vrot.lane.b32.xlu0 %v5651_v46, %s7252_s23 }
 0xb28   : > { %5643 = vrot.lane.b32.xlu1 %v5641_v7, %s7251_s24  ;;  %v3516_v7 = vmul.f32 %v7115_v38, %v8223_v22 }
 0xb2a   : > { %v5659_v3 = vpop.permute.xlu1 %5658 }
 0xb2b   : > { %v5661_v5 = vmul.f32 %v8400_v50, %v5659_v3 }
 0xb2d   : > { %5663 = vrot.lane.b32.xlu1 %v5661_v5, %s7249_s5 }
 0xb2f   : > { %v5669_v19 = vpop.permute.xlu1 %5668 }
 0xb30   : > { %v5671_v51 = vmul.f32 %v8400_v50, %v5669_v19 }
 0xb31   : > { %4568 = vperm.xlu1 %7095, %v8248_v56   ;;  %v4574_v56 = vpop.permute.xlu0 %4573 }
 0xb32   : > { %5673 = vrot.lane.b32.xlu0 %v5671_v51, %s7253_s9  ;;  %v4576_v37 = vmul.f32 %v8400_v50, %v4574_v56  ;;  %v3520_v51 = vand.u32 2147483648, %v8223_v22 }
 0xb33   : > { %v2493_v26 = vpop.permute.xlu1 %2492 }
 0xb35   : > { %2447 = vrot.lane.b32.xlu1 %v8072_v43, %s7254_s28  ;;  %s7260_s28 = smov 56  }
 0xb36   : > { %2433 = vrot.lane.b32.xlu0 %v8070_v10, %s7249_s5  ;;  %v2485_v10 = vmul.f32 %v8400_v50, %v2483_v40 }
 0xb37   : > { %v2513_v30 = vpop.permute.xlu1 %2512 }
 0xb38   : > { %v2495_v13 = vadd.f32 %v2493_v26, %v2485_v10 }
 0xb39   : > { %2476 = vrot.lane.b32.xlu1 %v2474_v15, %s7250_s1  ;;  %v7117_v15 = vpop.eup %7116 }
 0xb3a   : > { %2461 = vrot.lane.b32.xlu0 %v8074_v14, %s7255_s3  ;;  %v2505_v35 = vadd.f32 %v2503_v4, %v2495_v13  ;;  %v3550_v14 = vpop.permute.xlu0 %3549 }
 0xb3b   : > { %v2523_v43 = vpop.permute.xlu1 %2522 }
 0xb3c   : > { %v2515_v47 = vadd.f32 %v2513_v30, %v2505_v35 }
 0xb3d   : > { %4578 = vrot.lane.b32.xlu1 %v4576_v37, %s8845_s0 }
 0xb3e   : > { %v2525_v49 = vadd.f32 %v2523_v43, %v2515_v47  ;;  %v2543_v28 = vpop.permute.xlu0 %2542 }
 0xb3f   : > { %v3540_v9 = vpop.permute.xlu1 %3539 }
 0xb40   : > { %v3542_v2 = vadd.f32 %v3540_v9, %v3532_v63 }
 0xb41   : > { %3480 = vrot.lane.b32.xlu1 %v8210_v16, %s7256_s29 }
 0xb42   : > { %v3552_v33 = vadd.f32 %v3550_v14, %v3542_v2  ;;  %v4604_v5 = vpop.permute.xlu0 %4603 }
 0xb43   : > { %v4584_v45 = vpop.permute.xlu1 %4583  ;;  %v4606_v30 = vmul.f32 %v8400_v50, %v4604_v5 }
 0xb44   : > { %v4586_v46 = vmul.f32 %v8400_v50, %v4584_v45  ;;  %v4555_v45 = vmul.f32 %v7117_v15, %v8367_v39  ;;  %v5697_v15 = vld [vmem:[%s8747_s11 + $0x60] sm:$0xff] }
 0xb45   : > { %3494 = vrot.lane.b32.xlu1 %v8212_v48, %s7252_s23 }
 0xb46   : > { %v4614_v26 = vpop.permute.xlu0 %4613 }
 0xb47   : > { %v2533_v57 = vpop.permute.xlu1 %2532  ;;  %v4616_v43 = vmul.f32 %v8400_v50, %v4614_v26 }
 0xb48   : > { %v2535_v52 = vadd.f32 %v2533_v57, %v2525_v49 }
 0xb4a   : > { %v2545_v16 = vadd.f32 %v2543_v28, %v2535_v52  ;;  %v4559_v52 = vand.u32 2147483648, %v8367_v39 }
 0xb4b   : > { %v4594_v21 = vpop.permute.xlu1 %4593 }
 0xb4c   : > { %v4596_v42 = vmul.f32 %v8400_v50, %v4594_v21 }
 0xb4e   : > { %4598 = vrot.lane.b32.xlu1 %v4596_v42, %s7250_s1  ;;  %s7258_s1 = smov 52   ;;  %v4557_v42 = vsel %vm4556_vm8, %v8367_v39, %v4555_v45  ;;  %v5690_v39 = vld [vmem:[%s8747_s11 + $0x28] sm:$0xff]  ;;  %vm3607_vm8 = vcmask 1048448  }
 0xb4f   : > { %v3560_v40 = vpop.permute.xlu1 %3559 }
 0xb50   : > { %v3562_v44 = vadd.f32 %v3560_v40, %v3552_v33 }
 0xb53   : > { %v2553_v34 = vpop.permute.xlu1 %2552 }
 0xb54   : > { %v2555_v27 = vadd.f32 %v2553_v34, %v2545_v16 }
 0xb56   : > { %2557 = vrot.lane.b32.xlu0 %v2555_v27, %s8844_s27 }
 0xb57   : > { %v3570_v48 = vpop.permute.xlu1 %3569 }
 0xb58   : > { %v3572_v19 = vadd.f32 %v3570_v48, %v3562_v44 }
 0xb5a   : > { %3243 = vrot.lane.b32.xlu0 %v8196_v17, %s7257_s30  ;;  %v3518_v17 = vsel %vm3517_vm6, %v8223_v22, %v3516_v7  ;;  %s7263_s30 = smov 68   ;;  %vm3511_vm6 = vcmask 458144  }
 0xb5b   : > { %v3580_v36 = vpop.permute.xlu1 %3579  ;;  %v3521_v4 = vsel %vm3519_vm7, %v3520_v51, %v3518_v17  ;;  %v5691_v17 = vld [vmem:[%s8747_s11 + $0x30] sm:$0xff]  ;;  %v5693_v51 = vld [vmem:[%s8747_s11 + $0x40] sm:$0xff]  ;;  %vm3526_vm7 = vcmask 720544  }
 0xb5c   : > { %v3582_v29 = vadd.f32 %v3580_v36, %v3572_v19  ;;  %v5689_v36 = vld [vmem:[%s8747_s11 + $0x20] sm:$0xff] }
 0xb5e   : > { %4588 = vrot.lane.b32.xlu0 %v4586_v46, %s8844_s27  ;;  %s7259_s27 = smov 84  }
 0xb5f   : > { %v4624_v3 = vpop.permute.xlu1 %4623 }
 0xb62   : > { %3508 = vrot.lane.b32.xlu0 %v8214_v1, %s7258_s1  ;;  %v8504_v1 = vpop.permute.xlu0 %5603  ;;  %s7265_s1 = smov 76  }
 0xb63   : > { %v3590_v20 = vpop.permute.xlu1 %3589 }
 0xb64   : > { %v3592_v23 = vadd.f32 %v3590_v20, %v3582_v29  ;;  %v5692_v20 = vld [vmem:[%s8747_s11 + $0x38] sm:$0xff] }
 0xb65   : > { %v6919_v29 = vpack.c.bf16 %v5692_v20, %v5691_v17 }
 0xb66   : > { %3523 = vrot.lane.b32.xlu0 %v3521_v4, %s7259_s27  ;;  %v4634_v35 = vpop.permute.xlu0 %4633  ;;  %s7266_s27 = smov 72   ;;  %v5694_v4 = vld [vmem:[%s8747_s11 + $0x48] sm:$0xff] }
 0xb67   : > { %v3600_v24 = vpop.permute.xlu1 %3599  ;;  %v4636_v16 = vmul.f32 %v8400_v50, %v4634_v35  ;;  %v6922_v26 = vpack.c.bf16 %v5694_v4, %v5693_v51 }
 0xb68   : > { %v3602_v56 = vadd.f32 %v3600_v24, %v3592_v23  ;;  %v5695_v23 = vld [vmem:[%s8747_s11 + $0x50] sm:$0xff]  ;;  %v5696_v24 = vld [vmem:[%s8747_s11 + $0x58] sm:$0xff] }
 0xb6a   : > { %3604 = vrot.lane.b32.xlu1 %v3602_v56, %s8845_s0  ;;  %4608 = vrot.lane.b32.xlu0 %v4606_v30, %s7251_s24  ;;  %s7261_s0 = smov 60   ;;  %v6925_v30 = vpack.c.bf16 %v5696_v24, %v5695_v23 }
 0xb6e   : > { %4285 = vrot.lane.b32.xlu1 %v8340_v41, %s7253_s9  ;;  %4519 = vrot.lane.b32.xlu0 %v8354_v12, %s7260_s28  ;;  %v4626_v12 = vmul.f32 %v8400_v50, %v4624_v3  ;;  %v6916_v3 = vpack.c.bf16 %v5690_v39, %v5689_v36  ;;  %s7267_s28 = smov 92  }
 0xb6f   : > { %v5315_v22 = vpop.f32.mrb[38].mxu0  ;;  %v5394_v37 = vpop.f32.mrb[56].mxu1 }
 0xb70   : > { %v6800_v9 = vpop.f32.mrb[39].mxu0  ;;  %v6805_v10 = vpop.f32.mrb[57].mxu1  ;;  %v5544_v13 = vsub.f32 %v5394_v37, %v7774_v58  ;;  %v5606_v37 = vmul.f32 %v8400_v50, %v8504_v1  ;;  %v5700_v1 = vld [vmem:[%s8747_s11 + $0x78] sm:$0xff] }
 0xb72   : > { %4533 = vrot.lane.b32.xlu0 %v8356_v60, %s7261_s0  ;;  %4618 = vrot.lane.b32.xlu1 %v4616_v43, %s7252_s23  ;;  %v5545_v49 = vmul.f32 %v5544_v13, %v7772_v54  ;;  %v5561_v60 = vmul.f32 %v5544_v13, %v7643_v53  ;;  %v5575_v40 = vmul.f32 %v5544_v13, %v7645_v55  ;;  %v5685_v55 = vld [vmem:[%s8747_s11] sm:$0xff] }
 0xb73   : > { %v5467_v41 = vpop.f32.mrb[40].mxu0  ;;  %v5540_v57 = vpop.f32.mrb[58].mxu1 }
 0xb74   : > { %v5547_v47 = vsub.f32 %v5467_v41, %v7776_v59  ;;  %v5550_v14 = vsub.f32 %v5540_v57, %v7826_v31  ;;  %v6810_v21 = vpop.f32.mrb[41].mxu0  ;;  %v6815_v58 = vpop.f32.mrb[59].mxu1  ;;  %v5699_v57 = vld [vmem:[%s8747_s11 + $0x70] sm:$0xff] }
 0xb76   : > { %v5548_v28 = vmul.f32 %v5547_v47, %v7782_v0  ;;  %v5563_v59 = vmul.f32 %v5547_v47, %v7664_v62  ;;  %v5577_v31 = vmul.f32 %v5547_v47, %v7683_v8  ;;  %4628 = vrot.lane.b32.xlu0 %v4626_v12, %s7249_s5  ;;  %v5551_v54 = vmul.f32 %v5550_v14, %v7780_v61  ;;  %v5686_v62 = vld [vmem:[%s8747_s11 + $0x8] sm:$0xff]  ;;  %v5687_v8 = vld [vmem:[%s8747_s11 + $0x10] sm:$0xff]  ;;  %s7264_s5 = smov 24  }
 0xb77   : > { %v5565_v53 = vmul.f32 %v5550_v14, %v7701_v18  ;;  %v5579_v34 = vmul.f32 %v5550_v14, %v7716_v25  ;;  %4547 = vrot.lane.b32.xlu1 %v8358_v32, %s7251_s24  ;;  %v6910_v27 = vpack.c.bf16 %v5686_v62, %v5685_v55  ;;  %v5688_v25 = vld [vmem:[%s8747_s11 + $0x18] sm:$0xff]  ;;  %v4560_v32 = vsel %vm4558_vm9, %v4559_v52, %v4557_v42  ;;  %s7262_s24 = smov 88   ;;  %v5702_v42 = vld [vmem:[%s8747_s11 + $0x88] sm:$0xff]  ;;  %v5703_v52 = vld [vmem:[%s8747_s11 + $0x90] sm:$0xff] }
 0xb78   : > { %v5549_v61 = vadd.f32 %v5548_v28, %v5545_v49  ;;  %v5564_v0 = vadd.f32 %v5563_v59, %v5561_v60  ;;  %v5578_v18 = vadd.f32 %v5577_v31, %v5575_v40  ;;  %v6913_v48 = vpack.c.bf16 %v5688_v25, %v5687_v8  ;;  %v5701_v60 = vld [vmem:[%s8747_s11 + $0x80] sm:$0xff]  ;;  %v5704_v59 = vld [vmem:[%s8747_s11 + $0x98] sm:$0xff] }
 0xb79   : > { %6911 = vmatpush1.bf16.msra.mxu0 %v6910_v27  ;;  %v6931_v14 = vpack.c.bf16 %v5700_v1, %v5699_v57  ;;  %v6934_v28 = vpack.c.bf16 %v5702_v42, %v5701_v60  ;;  %v6937_v31 = vpack.c.bf16 %v5704_v59, %v5703_v52  ;;  %vm4288_vm9 = vcmask 195712  }
 0xb7a   : > { %v5552_v63 = vadd.f32 %v5551_v54, %v5549_v61  ;;  %v5566_v2 = vadd.f32 %v5565_v53, %v5564_v0  ;;  %v5580_v38 = vadd.f32 %v5579_v34, %v5578_v18  ;;  %4638 = vrot.lane.b32.xlu0 %v4636_v16, %s7253_s9  ;;  %6912 = vmatprep.subr.bf16.mxu0 %v8854_v6 }
 0xb7b   : > { %4562 = vrot.lane.b32.xlu1 %v4560_v32, %s7262_s24 }
 0xb7c   : > { %v5559_v46 = vmul.f32 %v5552_v63, %v5552_v63  ;;  %v5573_v7 = vmul.f32 %v5566_v2, %v5566_v2  ;;  %v5587_v44 = vmul.f32 %v5580_v38, %v5580_v38 }
 0xb7d   : > { %6914 = vmatpush1.bf16.msra.mxu0 %v6913_v48 }
 0xb7e   : > { %v5560_v33 = vadd.f32 1e-08, %v5559_v46  ;;  %5554 = vrot.lane.b32.xlu0 %v5552_v63, %s7263_s30  ;;  %6915 = vmatprep.subr.bf16.mxu0 %v8854_v6 }
 0xb7f   : > { %5320 = vrot.lane.b32.xlu1 %v5315_v22, %s7264_s5  ;;  %v5698_v22 = vld [vmem:[%s8747_s11 + $0x68] sm:$0xff] }
 0xb80   : > { %v5574_v5 = vadd.f32 %v5573_v7, %v5560_v33  ;;  %v6928_v35 = vpack.c.bf16 %v5698_v22, %v5697_v15 }
 0xb81   : > { %6917 = vmatpush1.bf16.msra.mxu0 %v6916_v3 }
 0xb82   : > { %v5588_v19 = vadd.f32 %v5587_v44, %v5574_v5  ;;  %5582 = vrot.lane.b32.xlu0 %v5580_v38, %s7265_s1  ;;  %6918 = vmatprep.subr.bf16.mxu0 %v8854_v6 }
 0xb83   : > { %5568 = vrot.lane.b32.xlu1 %v5566_v2, %s7266_s27 }
 0xb84   : > { %7118 = vrsqrt.f32 %v5588_v19  ;;  %vm5591_vm10 = vcmp.eq.f32.partialorder %v5588_v19, inf  ;;  %v5594_v10 = vand.u32 2147483648, %v5588_v19  ;;  %vm5593_vm11 = vcmp.eq.f32.partialorder %v5588_v19, 0.0 }
 0xb85   : > { %6920 = vmatpush1.bf16.msra.mxu0 %v6919_v29 }
 0xb86   : > { %6921 = vmatprep.subr.bf16.mxu0 %v8854_v6 }
 0xb89   : > { %6923 = vmatpush1.bf16.msra.mxu0 %v6922_v26 }
 0xb8a   : > { %6924 = vmatprep.subr.bf16.mxu0 %v8854_v6 }
 0xb8d   : > { %6926 = vmatpush1.bf16.msra.mxu0 %v6925_v30 }
 0xb8e   : > { %v7119_v56 = vpop.eup %7118  ;;  %6927 = vmatprep.subr.bf16.mxu0 %v8854_v6 }
 0xb8f   : > { %v5614_v43 = vpop.permute.xlu0 %5613  ;;  %v5590_v9 = vmul.f32 %v7119_v56, %v5588_v19  ;;  %v5624_v12 = vpop.permute.xlu1 %5623 }
 0xb90   : > { %v5616_v13 = vadd.f32 %v5614_v43, %v5606_v37 }
 0xb91   : > { %v5592_v45 = vsel %vm5591_vm10, %v5588_v19, %v5590_v9  ;;  %6929 = vmatpush1.bf16.msra.mxu0 %v6928_v35  ;;  %vm4522_vm10 = vcmask 490944  }
 0xb92   : > { %v5595_v41 = vsel %vm5593_vm11, %v5594_v10, %v5592_v45  ;;  %v5626_v47 = vadd.f32 %v5624_v12, %v5616_v13  ;;  %6930 = vmatprep.subr.bf16.mxu0 %v8854_v6  ;;  %vm4536_vm11 = vcmask 523744  }
 0xb93   : > { %5597 = vrot.lane.b32.xlu0 %v5595_v41, %s7267_s28  ;;  %v6329_v41 = vld [vmem:[%s8748_s12] ss:$0 sm:$0xff] }
 0xb95   : > { %v5634_v21 = vpop.permute.xlu0 %5633  ;;  %6932 = vmatpush1.bf16.msra.mxu0 %v6931_v14 }
 0xb96   : > { %v5636_v58 = vadd.f32 %v5634_v21, %v5626_v47  ;;  %6933 = vmatprep.subr.bf16.mxu0 %v8854_v6  ;;  %v7125_v47 = vld [vmem:[%s7536_s6] sm:$0xff]  ;;  %s6342_s6 = sshll.u32 %s7420_s7, 7  ;;  %s7268_s7 = smov [#allocation8]  }
 0xb97   : > { %s8693_s1 = scalar_lea.hbm %s8761_s25, %s6342_s6 }
 0xb99   : > { %6935 = vmatpush1.bf16.msra.mxu0 %v6934_v28  ;;  %v5654_v16 = vpop.permute.xlu0 %5653  ;;  %v5817_v28 = vld [vmem:[%s8751_s15 + $0x8] sm:$0xff] }
 0xb9a   : > { %v5644_v49 = vpop.permute.xlu1 %5643  ;;  %6936 = vmatprep.subr.bf16.mxu0 %v8854_v6 }
 0xb9b   : > { %v5646_v40 = vadd.f32 %v5644_v49, %v5636_v58 }
 0xb9d   : > { %v5656_v54 = vadd.f32 %v5654_v16, %v5646_v40  ;;  %6938 = vmatpush1.bf16.msra.mxu0 %v6937_v31  ;;  %v5816_v40 = vld [vmem:[%s8751_s15] sm:$0xff]  ;;  %v5818_v31 = vld [vmem:[%s8751_s15 + $0x10] sm:$0xff]  ;;  %v5819_v16 = vld [vmem:[%s8751_s15 + $0x18] sm:$0xff] }
 0xb9e   : > { %v6940_v59 = vpack.c.bf16 %v5817_v28, %v5816_v40 }
 0xb9f   : > { %v5664_v53 = vpop.permute.xlu1 %5663 }
 0xba0   : > { %v5666_v34 = vadd.f32 %v5664_v53, %v5656_v54  ;;  %6941 = vmatpush3.bf16.msra.mxu1 %v6940_v59  ;;  %v6943_v54 = vpack.c.bf16 %v5819_v16, %v5818_v31 }
 0xba1   : > { %6942 = vmatprep.subr.bf16.mxu1 %v8854_v6 }
 0xba4   : > { %v5674_v55 = vpop.permute.xlu0 %5673  ;;  %6944 = vmatpush3.bf16.msra.mxu1 %v6943_v54 }
 0xba5   : > { %v5676_v62 = vadd.f32 %v5674_v55, %v5666_v34  ;;  %6945 = vmatprep.subr.bf16.mxu1 %v8854_v6 }
 0xba7   : > { %5678 = vrot.lane.b32.xlu1 %v5676_v62, %s7253_s9  ;;  %s819_s9 = sand.u32 1, %s7218_s2  }
 0xba8   : > { %v2434_v8 = vpop.permute.xlu0 %2433  ;;  %s6240_s27 = sshll.u32 %s819_s9, 3  ;;  %s6102_s28 = scalar_lea.sflag [#allocation4], %s819_s9 }
 0xba9   : > { %2437 = vst.msk [vmem:[#allocation2] sm:$0xff] %vm2436_vm12, %v2434_v8  ;;  %vm4550_vm12 = vcmask 556544   ;;  %v6331_v8 = vld [vmem:[%s8749_s13] ss:$0 sm:$0xff]  ;;  %s821_s3 = scalar_lea.vmem [#allocation8], %s6240_s27  ;;  %s7160_s27 = sshll.u32 %s7268_s7, 4  ;;  %s7161_s27 = int_to_ptr.vmem [resolvable:$false] %s7160_s27 }
 0xbaa   : > { %s6115_s29 = sshll.u32 %s821_s3, 4  ;;  %s7162_s0 = scalar_lea.vmem %s7161_s27, 256  ;;  %s8695_s29 = int_to_ptr.vmem [resolvable:$true] %s6115_s29 }
 0xbab   : > { %s7156_s24 = scalar_lea.vmem %s8695_s29, 128  ;;  %p7163_p8 = scmp.lt.s32.totalorder %s8695_s29, %s7161_s27 }
 0xbac   : > { %v2462_v18 = vpop.permute.xlu0 %2461  ;;  %p7157_p10 = scmp.ne.s32.totalorder %s8695_s29, %s7156_s24  ;;  %p7164_p11 = scmp.lt.s32.totalorder %s7162_s0, %s7156_s24 }
 0xbae   : > { %p7158_p0 = pnand %p7157_p10, %p8855_p12  ;;  %p7165_p13 = por %p7164_p11, %p7163_p8 }
 0xbb0   : > { %v4569_v61 = vpop.permute.xlu1 %4568  ;;  %p7159_p7 = pneg %p7158_p0 }
 0xbb1   : > { %v4571_v3 = vmul.f32 %v8400_v50, %v4569_v61 }
 0xbb2   : > { %p7166_p1 = pnand %p7165_p13, %p7159_p7 }
 0xbb4   : > { %v2448_v0 = vpop.permute.xlu1 %2447 }
 0xbb5   : > { %2451 = vst.msk [vmem:[#allocation2] sm:$0xff] %vm2450_vm13, %v2448_v0  ;;  %vm4565_vm13 = vcmask 753344   ;;  %v5901_v0 = vld [vmem:[%s8753_s17] sm:$0xff] }
 0xbb6   : > { %2465 = vst.msk [vmem:[#allocation2] sm:$0xff] %vm2464_vm14, %v2462_v18  ;;  %vm4642_vm14 = vcmask 130048   ;;  %v5902_v18 = vld [vmem:[%s8753_s17 + $0x8] sm:$0xff] }
 0xbb8   : > { %v2477_v27 = vpop.permute.xlu1 %2476 }
 0xbb9   : > { %2480 = vst.msk [vmem:[#allocation2] sm:$0xff] %vm2479_vm15, %v2477_v27  ;;  %vm5323_vm15 = vcmask 261312   ;;  %v6332_v27 = vld [vmem:[%s8750_s14] ss:$0 sm:$0xff] }
 0xbbc   : > { %v4579_v25 = vpop.permute.xlu1 %4578 }
 0xbbd   : > { %v4581_v5 = vadd.f32 %v4579_v25, %v4571_v3 }
 0xbc0   : > { %v3481_v32 = vpop.permute.xlu1 %3480 }
 0xbc4   : > { %v3495_v2 = vpop.permute.xlu1 %3494 }
 0xbc8   : > { %v2558_v48 = vpop.permute.xlu0 %2557  ;;  %v4599_v39 = vpop.permute.xlu1 %4598 }
 0xbc9   : > { %2561 = vst.msk [vmem:[#allocation2] sm:$0xff] %vm2560_vm2, %v2558_v48  ;;  %vm5557_vm2 = vcmask 589344  }
 0xbcc   : > { %v3244_v63 = vpop.permute.xlu0 %3243 }
 0xbcd   : > { %3247 = vst.msk [vmem:[#allocation2] sm:$0xff] %vm3246_vm3, %v3244_v63  ;;  %vm5571_vm3 = vcmask 622144   ;;  %v5903_v63 = vld [vmem:[%s8753_s17 + $0x10] sm:$0xff] }
 0xbce   : > { %3484 = vst.msk [vmem:[#allocation2] sm:$0xff] %vm3483_vm4, %v3481_v32  ;;  %vm5585_vm4 = vcmask 654944   ;;  %v6946_v32 = vpack.c.bf16 %v5902_v18, %v5901_v0 }
 0xbcf   : > { %3498 = vst.msk [vmem:[#allocation2] sm:$0xff] %vm3497_vm5, %v3495_v2  ;;  %vm5600_vm5 = vcmask 786144   ;;  %v5904_v2 = vld [vmem:[%s8753_s17 + $0x18] sm:$0xff] }
 0xbd0   : > { %v4589_v38 = vpop.permute.xlu0 %4588 }
 0xbd1   : > { %v4591_v17 = vadd.f32 %v4589_v38, %v4581_v5  ;;  %v6949_v38 = vpack.c.bf16 %v5904_v2, %v5903_v63 }
 0xbd3   : > { %v4601_v29 = vadd.f32 %v4599_v39, %v4591_v17  ;;  %v5986_v39 = vld [vmem:[%s8755_s19] sm:$0xff]  ;;  %v5989_v17 = vld [vmem:[%s8755_s19 + $0x18] sm:$0xff] }
 0xbd4   : > { %v3509_v36 = vpop.permute.xlu0 %3508 }
 0xbd5   : > { %3512 = vst.msk [vmem:[#allocation2] sm:$0xff] %vm3511_vm6, %v3509_v36  ;;  %vm5681_vm6 = vcmask 261248   ;;  %v6333_v36 = vld [vmem:[%s8752_s16] ss:$0 sm:$0xff] }
 0xbd8   : > { %v3524_v46 = vpop.permute.xlu0 %3523 }
 0xbd9   : > { %3527 = vst.msk [vmem:[#allocation2] sm:$0xff] %vm3526_vm7, %v3524_v46  ;;  %v5987_v46 = vld [vmem:[%s8755_s19 + $0x8] sm:$0xff] }
 0xbda   : > { %v6952_v5 = vpack.c.bf16 %v5987_v46, %v5986_v39 }
 0xbdc   : > { %v3605_v33 = vpop.permute.xlu1 %3604  ;;  %v4609_v7 = vpop.permute.xlu0 %4608 }
 0xbdd   : > { %3608 = vst.msk [vmem:[#allocation2] sm:$0xff] %vm3607_vm8, %v3605_v33  ;;  %v4611_v4 = vadd.f32 %v4609_v7, %v4601_v29 }
 0xbe0   : > { %v4286_v44 = vpop.permute.xlu1 %4285  ;;  %v4520_v19 = vpop.permute.xlu0 %4519 }
 0xbe1   : > { %4289 = vst.msk [vmem:[#allocation2] sm:$0xff] %vm4288_vm9, %v4286_v44 }
 0xbe2   : > { %4523 = vst.msk [vmem:[#allocation2] sm:$0xff] %vm4522_vm10, %v4520_v19  ;;  %v5988_v19 = vld [vmem:[%s8755_s19 + $0x10] sm:$0xff] }
 0xbe4   : > { %v4619_v20 = vpop.permute.xlu1 %4618  ;;  %v4534_v51 = vpop.permute.xlu0 %4533 }
 0xbe5   : > { %4537 = vst.msk [vmem:[#allocation2] sm:$0xff] %vm4536_vm11, %v4534_v51  ;;  %v4621_v23 = vadd.f32 %v4619_v20, %v4611_v4  ;;  %v6955_v20 = vpack.c.bf16 %v5989_v17, %v5988_v19  ;;  %v6335_v51 = vld [vmem:[%s8754_s18] ss:$0 sm:$0xff] }
 0xbe8   : > { %v4629_v26 = vpop.permute.xlu0 %4628 }
 0xbe9   : > { %v4548_v24 = vpop.permute.xlu1 %4547  ;;  %v4631_v50 = vadd.f32 %v4629_v26, %v4621_v23 }
 0xbea   : > { %4551 = vst.msk [vmem:[#allocation2] sm:$0xff] %vm4550_vm12, %v4548_v24 }
 0xbec   : > { %v4639_v30 = vpop.permute.xlu0 %4638 }
 0xbed   : > { %v4563_v56 = vpop.permute.xlu1 %4562  ;;  %v4641_v15 = vadd.f32 %v4639_v30, %v4631_v50 }
 0xbee   : > { %4566 = vst.msk [vmem:[#allocation2] sm:$0xff] %vm4565_vm13, %v4563_v56 }
 0xbef   : > { %4643 = vst.msk [vmem:[#allocation2 + $0x8] sm:$0xff] %vm4642_vm14, %v4641_v15 }
 0xbf0   : > { %v5555_v22 = vpop.permute.xlu0 %5554 }
 0xbf1   : > { %v5321_v37 = vpop.permute.xlu1 %5320 }
 0xbf2   : > { %5324 = vst.msk [vmem:[#allocation2] sm:$0xff] %vm5323_vm15, %v5321_v37 }
 0xbf3   : > { %5558 = vst.msk [vmem:[#allocation2] sm:$0xff] %vm5557_vm2, %v5555_v22 }
 0xbf4   : > { %v5583_v43 = vpop.permute.xlu0 %5582 }
 0xbf5   : > { %v5569_v9 = vpop.permute.xlu1 %5568 }
 0xbf6   : > { %5572 = vst.msk [vmem:[#allocation2] sm:$0xff] %vm5571_vm3, %v5569_v9 }
 0xbf7   : > { %5586 = vst.msk [vmem:[#allocation2] sm:$0xff] %vm5585_vm4, %v5583_v43 }
 0xc05   : > { %v5598_v10 = vpop.permute.xlu0 %5597 }
 0xc06   : > { %5601 = vst.msk [vmem:[#allocation2] sm:$0xff] %vm5600_vm5, %v5598_v10 }
 0xc0d   : > { %v5683_v35 = vld [vmem:[#allocation2] sm:$0xff] }
 0xc19   : > { %v5679_v13 = vpop.permute.xlu1 %5678 }
 0xc1a   : > { %5682 = vst.msk [vmem:[#allocation2 + $0x8] sm:$0xff] %vm5681_vm6, %v5679_v13 }
 0xc21   : > { %v5684_v45 = vld [vmem:[#allocation2 + $0x8] sm:$0xff] }
 0xc22   : > { %6330 = vmatprep.mubr.msk.f32.mxu0 %vm846_vm1, %v5684_v45 }
 0xc23   : > { %5780 = vmatmul.mubr.f32.vlgmr.msra.gmra.mrb[42].mxu0 %v5683_v35 }
 0xcf6   : > { %v5781_v57 = vpop.f32.mrb[42].mxu0 }
 0xcf7   : > { %v5782_v1 = vadd.f32 %v6329_v41, %v5781_v57  ;;  %v5783_v12 = vpop.f32.mrb[43].mxu0  ;;  %v6339_v41 = vld [vmem:[%s8757_s21] ss:$0 sm:$0xff] }
 0xcf9   : > { %v5785_v14 = vadd.f32 %v7125_v47, %v5782_v1  ;;  %v6340_v1 = vld [vmem:[%s8758_s22] ss:$0 sm:$0xff] }
 0xcfb   : > { %v5788_v21 = vsel %vm846_vm1, %v5785_v14, 0.0 }
 0xcfc   : > { %5789 = vadd.xlane.f32.xlu1 %v5788_v21 }
 0xd89   : > { %v5790_v58 = vpop.xlane.xlu1 %5789 }
 0xd8a   : > { %v5792_v49 = vmul.f32 0.03125, %v5790_v58 }
 0xd8c   : > { %v5793_v60 = vsub.f32 %v5785_v14, %v5792_v49 }
 0xd8e   : > { %v5794_v42 = vmul.f32 %v5793_v60, %v5793_v60 }
 0xd90   : > { %v5795_v52 = vsel %vm846_vm1, %v5794_v42, 0.0 }
 0xd91   : > { %5796 = vadd.xlane.f32.xlu0 %v5795_v52 }
 0xe1e   : > { %v5797_v53 = vpop.xlane.xlu0 %5796 }
 0xe1f   : > { %v5798_v34 = vmul.f32 0.03125, %v5797_v53 }
 0xe21   : > { %v5799_v55 = vadd.f32 1e-05, %v5798_v34 }
 0xe23   : > { %7120 = vrsqrt.f32 %v5799_v55 }
 0xe2d   : > { %v7121_v62 = vpop.eup %7120 }
 0xe2e   : > { %v5801_v61 = vmul.f32 %v7121_v62, %v5793_v60 }
 0xe30   : > { %v5808_v25 = vmul.f32 %v6331_v8, %v5801_v61 }
 0xe32   : > { %v5815_v48 = vadd.f32 %v6332_v27, %v5808_v25 }
 0xe34   : > { %6825 = vmatmul.mubr.msk.f32.vlgmr.msra.gmra.mrb[60].mxu1 %vm846_vm1, %v5815_v48 }
 0xe35   : > { %6947 = vmatpush3.bf16.msra.mxu1 %v6946_v32  ;;  %6835 = vmatprep.mubr.msk.f32.mxu1 %vm7231_vm0, %v7232_v11 }
 0xe36   : > { %6948 = vmatprep.subr.bf16.mxu1 %v8854_v6 }
 0xe39   : > { %6950 = vmatpush3.bf16.msra.mxu1 %v6949_v38 }
 0xe3a   : > { %6951 = vmatprep.subr.bf16.mxu1 %v8854_v6 }
 0xf07   : > { %v5896_v33 = vpop.f32.mrb[60].mxu1 }
 0xf08   : > { %v5897_v7 = vadd.f32 %v6333_v36, %v5896_v33  ;;  %v6826_v3 = vpop.f32.mrb[61].mxu1 }
 0xf0a   : > { %v5900_v44 = vmax.f32 %v5897_v7, 0.0 }
 0xf0c   : > { %6836 = vmatmul.mubr.msk.f32.vlgmr.msra.gmra.mrb[62].mxu1 %vm846_vm1, %v5900_v44 }
 0xf0d   : > { %6953 = vmatpush3.bf16.msra.mxu1 %v6952_v5  ;;  %6846 = vmatprep.mubr.msk.f32.mxu1 %vm7231_vm0, %v7232_v11 }
 0xf0e   : > { %6954 = vmatprep.subr.bf16.mxu1 %v8854_v6  ;;  %v6337_v6 = vld [vmem:[%s8756_s20] ss:$0 sm:$0xff] }
 0xf11   : > { %6956 = vmatpush3.bf16.msra.mxu1 %v6955_v20 }
 0xfdf   : > { %v5981_v29 = vpop.f32.mrb[62].mxu1 }
 0xfe0   : > { %v5982_v4 = vadd.f32 %v6335_v51, %v5981_v29  ;;  %v6837_v26 = vpop.f32.mrb[63].mxu1 }
 0xfe2   : > { %v5985_v11 = vmax.f32 %v5982_v4, 0.0 }
 0xfe4   : > { %6847 = vmatmul.mubr.msk.f32.vlgmr.msra.gmra.mrb[64].mxu1 %vm846_vm1, %v5985_v11 }
0x10b7   : > { %v6066_v23 = vpop.f32.mrb[64].mxu1 }
0x10b8   : > { %v6067_v24 = vadd.f32 %v6337_v6, %v6066_v23  ;;  %v6848_v50 = vpop.f32.mrb[65].mxu1 }
0x10ba   : > { %v6070_v30 = vadd.f32 %v6067_v24, %v5815_v48 }
0x10bc   : > { %v6073_v56 = vsel %vm846_vm1, %v6070_v30, 0.0 }
0x10bd   : > { %6074 = vadd.xlane.f32.xlu0 %v6073_v56 }
0x114a   : > { %v6075_v15 = vpop.xlane.xlu0 %6074 }
0x114b   : > { %v6076_v22 = vmul.f32 0.03125, %v6075_v15 }
0x114d   : > { %v6077_v37 = vsub.f32 %v6070_v30, %v6076_v22 }
0x114f   : > { %v6078_v43 = vmul.f32 %v6077_v37, %v6077_v37 }
0x1151   : > { %v6079_v9 = vsel %vm846_vm1, %v6078_v43, 0.0 }
0x1152   : > { %6080 = vadd.xlane.f32.xlu1 %v6079_v9 }
0x11df   : > { %v6081_v10 = vpop.xlane.xlu1 %6080 }
0x11e0   : > { %v6082_v13 = vmul.f32 0.03125, %v6081_v10 }
0x11e2   : > { %v6083_v45 = vadd.f32 1e-05, %v6082_v13 }
0x11e4   : > { %7122 = vrsqrt.f32 %v6083_v45 }
0x11ee   : > { %v7123_v35 = vpop.eup %7122 }
0x11ef   : > { %v6085_v57 = vmul.f32 %v7123_v35, %v6077_v37 }
0x11f1   : > { %v6092_v12 = vmul.f32 %v6339_v41, %v6085_v57 }
0x11f3   : > { %v6099_v47 = vadd.f32 %v6340_v1, %v6092_v12 }
0x11f5   : > { %6100 = vst.msk [vmem:[%s821_s3] sm:$0xff] %vm846_vm1, %v6099_v47 }
0x11f6   : > { %7169 = shalt.err (!%p7166_p1)
}
0x11f7   : > { %s7170_s9 = scalar_lea.hbm %s8693_s1, 128  ;;  %s7174_s3 = scalar_lea.hbm %s8761_s25, 256 }
0x11f8   : > { %p7171_p2 = scmp.ne.s32.totalorder %s8693_s1, %s7170_s9  ;;  %p7175_p9 = scmp.lt.u32.totalorder %s8693_s1, %s8761_s25 }
0x11f9   : > { %p7176_p5 = scmp.lt.u32.totalorder %s7174_s3, %s7170_s9  ;;  %p7178_p10 = scmp.lt.u32.totalorder %s7170_s9, %s8693_s1 }
0x11fa   : > { %p7172_p3 = pnand %p7171_p2, %p8855_p12 }
0x11fb   : > { %p7177_p6 = por %p7176_p5, %p7175_p9 }
0x11fc   : > { %p7173_p4 = pneg %p7172_p3 }
0x11fd   : > { %p7179_p0 = por %p7178_p10, %p7177_p6 }
0x11ff   : > { %p7180_p7 = pnand %p7179_p0, %p7173_p4 }
0x1201   : > { %7183 = shalt.err (!%p7180_p7)
}
0x1202   : > { %6965 = dma.vmem_to_hbm [thread:$0]  (%p8855_p12), %s8695_s29, 128, %s8693_s1, %s6102_s28  }
0x1203 PF: > { %s8856_s24 = sld [smem:[#allocation14_spill]]  ;;  %s8857_s7 = sld [smem:[#allocation12_spill]] }
0x1204   : > { %s8858_s27 = sld [smem:[#allocation17_spill]] }
0x1209   : > { %p6982_p8 = scmp.ge.s32.totalorder %s8856_s24, 2  ;;  %s6127_s0 = sand.u32 1, %s8857_s7  }
0x120a   : > { %p8859_p11 = scmp.ne.s32.totalorder %s8858_s27, 0  ;;  %s6128_s23 = scalar_lea.sflag [#allocation4], %s6127_s0 }
0x120c   : > { %p6975_p13 = pnand %p6982_p8, %p8859_p11 }
0x120e   : > { %7209 = dma.done.wait (!%p6975_p13), %s6128_s23, 128  }
0x120f   : > { %7211 = vsyncadd (!%p6975_p13), %s6128_s23, 4294967168  ;;  %s8860_s30 = sld [smem:[#allocation15_spill]]  ;;  %s8861_s9 = sld [smem:[#allocation13_spill]] }
0x1210   : > { %s8862_s6 = sld [smem:[#allocation16_spill]]  ;;  %s8863_s29 = smov %s7218_s2 }
0x1215   : > { %p37_p1 = scmp.ge.s32.totalorder %s8860_s30, 4   ;;  %s8864_s2 = smov %s8861_s9 }
0x1217   :  { %39 = sbr.rel (!%p37_p1) target bundleno = 18 (0x12), region = 173 }
0x121e   :  { %6133 = vsyncpa [#allocation4], 1 }
0x121f   :  { %6135 = vsyncpa [#allocation4 + $0x1], 1 }
0x1220   :  { %6136 = vsyncpa [#allocation5], 1 }
0x1221   :  { %6138 = vsyncpa [#allocation5 + $0x1], 1 }
0x1222   :  { %6139 = vsyncpa [#allocation7], 1 }

</bundles_post_ra>
